<compile_context>
chip_gen: v7x
topology: tpu7x:2x2x1
jax: 0.10.0
libtpu: 0.0.40
codegen_flags: <defaults>
</compile_context>

<pallas_src>
from functools import partial

import numpy as np
import jax
import jax.numpy as jnp
from jax.experimental import pallas as pl
from jax.experimental.pallas import tpu as pltpu


# ---------------------------------------------------------------------------
# Bilinear-resize weight matrix (PyTorch align_corners=False semantics).
# ---------------------------------------------------------------------------
def bilinear_matrix(out_size: int, in_size: int) -> np.ndarray:
    scale = in_size / out_size
    i = np.arange(out_size, dtype=np.float64)
    src = scale * (i + 0.5) - 0.5
    src = np.maximum(src, 0.0)                     # PyTorch clamps negatives to 0
    i0 = np.floor(src).astype(np.int64)
    i0 = np.minimum(i0, in_size - 1)
    i1 = np.minimum(i0 + 1, in_size - 1)
    lam1 = src - i0
    lam0 = 1.0 - lam1
    R = np.zeros((out_size, in_size), dtype=np.float64)
    R[np.arange(out_size), i0] += lam0
    R[np.arange(out_size), i1] += lam1
    return R.astype(np.float32)


def _round_up(x: int, m: int) -> int:
    return ((x + m - 1) // m) * m


def _vmem_capacity_bytes() -> int:
    try:
        info = pltpu.get_tpu_info()
        cap = int(getattr(info, "vmem_capacity_bytes", 0) or 0)
        if cap > 0:
            return cap
    except Exception:
        pass
    return 128 * 1024 * 1024                      # v5e/v6e assumption


def _pick_batch_tile(B: int, vmem_cap: int) -> int:
    # v7x has 64 MiB VMEM per TensorCore -> cap the batch tile lower than on
    # v5e/v6e (128 MiB).  Keep >= 2 parallel grid steps so both v7x TCs /
    # megacore halves get work.  (For B == 1 / odd B a second parallel axis
    # over token-row chunks would be the next refinement.)
    max_bt = 8 if vmem_cap >= (96 << 20) else 4
    for bt in (8, 4, 2):
        if bt <= max_bt and B % bt == 0 and B // bt >= 2:
            return bt
    return 1 if B >= 2 else max(B, 1)


def _pick_h4_tile(h4_pad: int) -> int:
    for t in (512, 256, 128):
        if h4_pad % t == 0:
            return t
    return h4_pad


_SQRT_HALF = 0.7071067811865476


def _gelu_exact(x):
    # Exact (erf) GELU, open-coded so it lowers on Mosaic without relying on an
    # erf primitive rule.  Abramowitz & Stegun 7.1.26 rational approximation,
    # max abs error ~1.5e-7 (far below bf16-matmul noise); exp() -> EUP slot.
    z = x * _SQRT_HALF
    az = jnp.abs(z)
    t = 1.0 / (1.0 + 0.3275911 * az)
    poly = t * (0.254829592 + t * (-0.284496736 + t * (1.421413741
               + t * (-1.453152027 + t * 1.061405429))))
    erf_abs = 1.0 - poly * jnp.exp(-az * az)
    erf_z = jnp.where(z >= 0, erf_abs, -erf_abs)
    return 0.5 * x * (1.0 + erf_z)


# ---------------------------------------------------------------------------
# Kernel.  Grid = (batch tiles [parallel], H4 tiles [arbitrary]).
# ---------------------------------------------------------------------------
def cvfm_kernel(vit_ref, conv_ref, m_ref, w1v_ref, w1c_ref, b1_ref,
                w2_ref, b2_ref, gamma_ref, beta_ref, gate_ref,
                out_ref, acc_ref, aligned_ref, *, dv_true):
    bt, n_pad, dv_pad = vit_ref.shape
    rows = bt * n_pad
    k = pl.program_id(1)

    @pl.when(k == 0)
    def _init():
        # Bilinear resize + cls-mean row + token padding fused into one batched
        # MXU contraction:  aligned[b] = M_aug @ conv[b]^T.
        # FLOP note: keep ((M_aug @ conv^T) @ W1c); reassociating to
        # M_aug @ (conv^T @ W1c) costs ~3x more MACs at ViT scale (H4 >> Dc).
        m_bf = m_ref[...]                                   # [N_pad, HW_pad] bf16
        conv_bf = conv_ref[...]                             # [bt, Dc_pad, HW_pad]
        if bt == 1:
            a = jax.lax.dot_general(
                m_bf, conv_bf[0],
                dimension_numbers=(((1,), (1,)), ((), ())),
                preferred_element_type=jnp.float32)         # [N_pad, Dc_pad]
        else:
            m_b = jnp.broadcast_to(m_bf[None], (bt,) + m_bf.shape)
            a = jax.lax.dot_general(
                m_b, conv_bf,
                dimension_numbers=(((2,), (2,)), ((0,), (0,))),
                preferred_element_type=jnp.float32)         # [bt, N_pad, Dc_pad]
        aligned_ref[...] = a.reshape(rows, -1).astype(jnp.bfloat16)
        acc_ref[...] = jnp.zeros_like(acc_ref)

    # One tH4-wide slice of the MLP.  (vit cast to bf16 per step is negligible
    # vs. the matmuls; keeping the f32 copy avoids an extra bf16 scratch.)
    vit_bf = vit_ref[...].reshape(rows, dv_pad).astype(jnp.bfloat16)
    h1 = (jnp.dot(vit_bf, w1v_ref[...], preferred_element_type=jnp.float32)
          + jnp.dot(aligned_ref[...], w1c_ref[...],
                    preferred_element_type=jnp.float32)
          + b1_ref[...])                                    # [rows, tH4] f32
    h1 = _gelu_exact(h1)                                    # exact (erf) GELU
    acc_ref[...] += jnp.dot(h1.astype(jnp.bfloat16), w2_ref[...],
                            preferred_element_type=jnp.float32)

    @pl.when(k == pl.num_programs(1) - 1)
    def _finalize():
        vit = vit_ref[...].reshape(rows, dv_pad)            # f32
        mlp = acc_ref[...] + b2_ref[...]
        pre = vit + gate_ref[0, 0] * mlp                    # gate = tanh() from wrapper

        # LayerNorm over the TRUE feature dim (padded lanes of `pre` are exactly
        # zero, so sums over the padded lane dim are unchanged).  eps = 1e-5.
        inv_d = 1.0 / dv_true
        mean = jnp.sum(pre, axis=-1, keepdims=True) * inv_d
        meansq = jnp.sum(pre * pre, axis=-1, keepdims=True) * inv_d
        var = jnp.maximum(meansq - mean * mean, 0.0)
        normed = (pre - mean) * jax.lax.rsqrt(var + 1e-5)
        out = normed * gamma_ref[...] + beta_ref[...]
        out_ref[...] = out.reshape(bt, n_pad, dv_pad)


# ---------------------------------------------------------------------------
# Wrapper: padding, specs, grid.
# ---------------------------------------------------------------------------
def cvfm_forward(vit_features, convnext_features, params):
    """vit_features: [B, N, Dv] f32; convnext_features: [B, Dc, Hin, Win] f32."""
    B, N, Dv = vit_features.shape
    _, Dc, Hin, Win = convnext_features.shape
    hw = N - 1
    h = w = int(round(hw ** 0.5))
    assert h * w == hw
    HW = Hin * Win
    H4 = params["w2"].shape[0]

    # Lane-dense / (8,128)-aligned padded dims.  Padding is inert: padded
    # channels / features / hidden units carry zero weights, so results over
    # the real lanes are unchanged and padded lanes of `pre` are exactly zero.
    N_pad = _round_up(N, 8)
    Dv_pad = _round_up(Dv, 128)
    Dc_pad = _round_up(Dc, 128)
    HW_pad = _round_up(HW, 128)
    H4_pad = _round_up(H4, 128)
    tH4 = _pick_h4_tile(H4_pad)

    vmem_cap = _vmem_capacity_bytes()
    bt = _pick_batch_tile(B, vmem_cap)
    grid = (B // bt, H4_pad // tH4)

    # ViT tokens: pad token rows (sublanes) and feature lanes with zeros (f32).
    vit_pad = jnp.pad(vit_features.astype(jnp.float32),
                      ((0, 0), (0, N_pad - N), (0, Dv_pad - Dv)))
    # ConvNeXt: channel-major (free reshape of NCHW), pad channels/HW, bf16.
    conv_flat = jnp.pad(convnext_features.reshape(B, Dc, HW),
                        ((0, 0), (0, Dc_pad - Dc), (0, HW_pad - HW))
                        ).astype(jnp.bfloat16)

    # Augmented interpolation matrix: row 0 = spatial mean (cls token), rows
    # 1..hw = bilinear resize, remaining rows / columns = zero padding.
    M = np.kron(bilinear_matrix(h, Hin), bilinear_matrix(w, Win))   # [hw, HW]
    M_aug = np.zeros((N_pad, HW_pad), np.float32)
    M_aug[0, :HW] = M.mean(axis=0)
    M_aug[1:1 + hw, :HW] = M
    M_aug = jnp.asarray(M_aug, dtype=jnp.bfloat16)

    def pad2(a, r, c):
        return jnp.pad(a, ((0, r - a.shape[0]), (0, c - a.shape[1])))

    w1v = pad2(params["w1v"], Dv_pad, H4_pad).astype(jnp.bfloat16)
    w1c = pad2(params["w1c"], Dc_pad, H4_pad).astype(jnp.bfloat16)
    w2 = pad2(params["w2"], H4_pad, Dv_pad).astype(jnp.bfloat16)
    b1 = pad2(params["b1"].astype(jnp.float32), 1, H4_pad)
    b2 = pad2(params["b2"].astype(jnp.float32), 1, Dv_pad)
    gamma = pad2(params["gamma"].astype(jnp.float32), 1, Dv_pad)
    beta = pad2(params["beta"].astype(jnp.float32), 1, Dv_pad)
    gate_t = jnp.tanh(params["gate"].astype(jnp.float32)).reshape(1, 1)

    per_b = lambda i, k: (i, 0, 0)       # batch-tiled, resident across k
    k_cols = lambda i, k: (0, k)         # H4-streamed (column blocks)
    k_rows = lambda i, k: (k, 0)         # H4-streamed (row blocks)
    const2 = lambda i, k: (0, 0)         # grid-invariant

    flops = (2 * B * N_pad * HW_pad * Dc_pad
             + 2 * B * N_pad * ((Dv_pad + Dc_pad) * H4_pad + H4_pad * Dv_pad))
    transcendentals = B * N_pad * (H4_pad + Dv_pad)
    bytes_accessed = (4 * B * N_pad * Dv_pad * 2                 # vit in + out
                      + 2 * B * Dc_pad * HW_pad                  # conv (bf16)
                      + 2 * (N_pad * HW_pad + (Dv_pad + Dc_pad) * H4_pad
                             + H4_pad * Dv_pad)                  # bf16 weights
                      + 4 * (H4_pad + 3 * Dv_pad + 1))           # f32 small
    cost = pl.CostEstimate(flops=int(flops),
                           transcendentals=int(transcendentals),
                           bytes_accessed=int(bytes_accessed))

    # v7x: 64 MiB VMEM/TC -> cap at ~48 MiB (headroom for double buffers and
    # Mosaic scratch).  v5e/v6e: 128 MiB -> 64 MiB is fine.
    vmem_limit = int(min(64 * 1024 * 1024, (vmem_cap * 3) // 4))
    cparams = pltpu.CompilerParams(
        dimension_semantics=("parallel", "arbitrary"),
        vmem_limit_bytes=vmem_limit)

    kernel = partial(cvfm_kernel, dv_true=float(Dv))

    def _call(single_buffer_consts):
        extra = {"pipeline_mode": pl.Buffered(1)} if single_buffer_consts else {}
        in_specs = [
            pl.BlockSpec((bt, N_pad, Dv_pad), per_b),            # vit (f32)
            # conv is the largest streamed input; its block only changes on the
            # outer (batch) axis so default double buffering suffices.  Bump to
            # pl.Buffered(3) if the conv DMA ever shows up exposed.
            pl.BlockSpec((bt, Dc_pad, HW_pad), per_b),           # conv (bf16)
            pl.BlockSpec((N_pad, HW_pad), const2, **extra),      # M_aug
            pl.BlockSpec((Dv_pad, tH4), k_cols),                 # W1 (vit half)
            pl.BlockSpec((Dc_pad, tH4), k_cols),                 # W1 (conv half)
            pl.BlockSpec((1, tH4), k_cols),                      # b1
            pl.BlockSpec((tH4, Dv_pad), k_rows),                 # W2
            pl.BlockSpec((1, Dv_pad), const2, **extra),          # b2
            pl.BlockSpec((1, Dv_pad), const2, **extra),          # LN gamma
            pl.BlockSpec((1, Dv_pad), const2, **extra),          # LN beta
            pl.BlockSpec(memory_space=pltpu.MemorySpace.SMEM),   # tanh(gate)
        ]
        return pl.pallas_call(
            kernel,
            out_shape=jax.ShapeDtypeStruct((B, N_pad, Dv_pad), jnp.float32),
            grid=grid,
            in_specs=in_specs,
            out_specs=pl.BlockSpec((bt, N_pad, Dv_pad), per_b),
            scratch_shapes=[
                pltpu.VMEM((bt * N_pad, Dv_pad), jnp.float32),   # MLP accumulator
                pltpu.VMEM((bt * N_pad, Dc_pad), jnp.bfloat16),  # aligned (resize)
            ],
            compiler_params=cparams,
            cost_estimate=cost,
        )(vit_pad, conv_flat, M_aug, w1v, w1c, b1, w2, b2, gamma, beta, gate_t)

    try:
        out = _call(True)
    except Exception:
        # Older jax without BlockSpec(pipeline_mode=...)/Buffered(1): fall back
        # to default double buffering (identical results, slightly more VMEM).
        out = _call(False)
    return out[:, :N, :Dv]


# ---------------------------------------------------------------------------
# Pure-JAX f32 reference (mirrors the PyTorch forward).
# ---------------------------------------------------------------------------
def cvfm_reference(vit_features, convnext_features, params):
    B, N, Dv = vit_features.shape
    _, Dc, Hin, Win = convnext_features.shape
    h = w = int(round((N - 1) ** 0.5))
    M = jnp.asarray(np.kron(bilinear_matrix(h, Hin), bilinear_matrix(w, Win)))
    conv_t = convnext_features.reshape(B, Dc, Hin * Win).transpose(0, 2, 1)
    aligned = jnp.einsum("sk,bkc->bsc", M, conv_t)                   # [B, h*w, Dc]
    cls = aligned.mean(axis=1, keepdims=True)
    aligned = jnp.concatenate([cls, aligned], axis=1)                # [B, N, Dc]
    combined = jnp.concatenate([vit_features, aligned], axis=-1)     # [B, N, Dv+Dc]
    W1 = jnp.concatenate([params["w1v"], params["w1c"]], axis=0)     # [Dv+Dc, 4Dv]
    hmid = jax.nn.gelu(combined @ W1 + params["b1"], approximate=False)
    mlp = hmid @ params["w2"] + params["b2"]
    pre = vit_features + jnp.tanh(params["gate"][0, 0]) * mlp
    mean = pre.mean(-1, keepdims=True)
    var = ((pre - mean) ** 2).mean(-1, keepdims=True)
    return (pre - mean) / jnp.sqrt(var + 1e-5) * params["gamma"] + params["beta"]


if __name__ == "__main__":
    B = 4                       # bt=2 -> exercises the batched resize matmul
    vit_dim = 32
    convnext_dim = 16
    h = w = 4
    N = 1 + h * w               # 17 tokens (cls + 4x4 patches)
    Hin = Win = 8               # ConvNeXt spatial resolution before resize
    H4 = 4 * vit_dim

    key = jax.random.PRNGKey(0)
    ks = jax.random.split(key, 8)

    vit = jax.random.normal(ks[0], (B, N, vit_dim), jnp.float32)
    conv = jax.random.normal(ks[1], (B, convnext_dim, Hin, Win), jnp.float32)

    # Deterministic parameters (shapes from CVFM.__init__; weights stored
    # already transposed, i.e. [in, out]).  Gate is nonzero (the module inits
    # it to zero) so the gated MLP branch is actually exercised.
    params = {
        "w1v": 0.05 * jax.random.normal(ks[2], (vit_dim, H4), jnp.float32),
        "w1c": 0.05 * jax.random.normal(ks[3], (convnext_dim, H4), jnp.float32),
        "b1": 0.01 * jax.random.normal(ks[4], (1, H4), jnp.float32),
        "w2": 0.05 * jax.random.normal(ks[5], (H4, vit_dim), jnp.float32),
        "b2": 0.01 * jax.random.normal(ks[6], (1, vit_dim), jnp.float32),
        "gamma": 1.0 + 0.1 * jax.random.normal(ks[7], (1, vit_dim), jnp.float32),
        "beta": jnp.zeros((1, vit_dim), jnp.float32),
        "gate": jnp.full((1, 1), 0.25, jnp.float32),
    }

    out = jax.block_until_ready(cvfm_forward(vit, conv, params))
    ref = jax.block_until_ready(cvfm_reference(vit, conv, params))

    assert out.shape == (B, N, vit_dim)
    # bf16 MXU inputs with f32 accumulation -> loosened tolerance vs f32 ref.
    np.testing.assert_allclose(np.asarray(out), np.asarray(ref), rtol=2e-2, atol=2e-2)
    print("KERNEL_OK")
</pallas_src>

<mosaic_0001>
module attributes {stable_mosaic.version = 11 : i64} {
  func.func @cvfm_kernel(%arg0: i32, %arg1: i32, %arg2: memref<2x24x128xf32, #tpu.memory_space<vmem>>, %arg3: memref<2x128x128xbf16, #tpu.memory_space<vmem>>, %arg4: memref<24x128xbf16, #tpu.memory_space<vmem>>, %arg5: memref<128x128xbf16, #tpu.memory_space<vmem>>, %arg6: memref<128x128xbf16, #tpu.memory_space<vmem>>, %arg7: memref<1x128xf32, #tpu.memory_space<vmem>>, %arg8: memref<128x128xbf16, #tpu.memory_space<vmem>>, %arg9: memref<1x128xf32, #tpu.memory_space<vmem>>, %arg10: memref<1x128xf32, #tpu.memory_space<vmem>>, %arg11: memref<1x128xf32, #tpu.memory_space<vmem>>, %arg12: memref<1x1xf32, #tpu.memory_space<smem>>, %arg13: memref<2x24x128xf32, #tpu.memory_space<vmem>>, %arg14: memref<48x128xf32, #tpu.memory_space<vmem>>, %arg15: memref<48x128xbf16, #tpu.memory_space<vmem>>) attributes {dimension_semantics = [#tpu.dimension_semantics<parallel>, #tpu.dimension_semantics<arbitrary>], iteration_bounds = array<i64: 2, 1>, scalar_prefetch = 0 : i64, scratch_operands = 2 : i64, tpu.core_type = #tpu.core_type<tc>, window_params = [{transform_indices = @transform_0, window_bounds = array<i64: 2, 24, 128>}, {transform_indices = @transform_1, window_bounds = array<i64: 2, 128, 128>}, {pipeline_mode = #tpu.pipeline_mode<synchronous>, transform_indices = @transform_2, window_bounds = array<i64: 24, 128>}, {transform_indices = @transform_3, window_bounds = array<i64: 128, 128>}, {transform_indices = @transform_4, window_bounds = array<i64: 128, 128>}, {transform_indices = @transform_5, window_bounds = array<i64: 1, 128>}, {transform_indices = @transform_6, window_bounds = array<i64: 128, 128>}, {pipeline_mode = #tpu.pipeline_mode<synchronous>, transform_indices = @transform_7, window_bounds = array<i64: 1, 128>}, {pipeline_mode = #tpu.pipeline_mode<synchronous>, transform_indices = @transform_8, window_bounds = array<i64: 1, 128>}, {pipeline_mode = #tpu.pipeline_mode<synchronous>, transform_indices = @transform_9, window_bounds = array<i64: 1, 128>}, {transform_indices = @transform_10, window_bounds = array<i64: 1, 1>}, {transform_indices = @transform_11, window_bounds = array<i64: 2, 24, 128>}]} {
    %c0_i32 = arith.constant 0 : i32
    %0 = arith.cmpi eq, %arg1, %c0_i32 : i32
    %1 = arith.extui %0 : i1 to i32
    %c0_i32_0 = arith.constant 0 : i32
    %2 = arith.cmpi ne, %1, %c0_i32_0 : i32
    scf.if %2 {
      %c0_36 = arith.constant 0 : index
      %c0_37 = arith.constant 0 : index
      %64 = vector.load %arg4[%c0_36, %c0_37] : memref<24x128xbf16, #tpu.memory_space<vmem>>, vector<24x128xbf16>
      %c0_38 = arith.constant 0 : index
      %c0_39 = arith.constant 0 : index
      %c0_40 = arith.constant 0 : index
      %65 = vector.load %arg3[%c0_38, %c0_39, %c0_40] : memref<2x128x128xbf16, #tpu.memory_space<vmem>>, vector<2x128x128xbf16>
      %66 = vector.shape_cast %64 : vector<24x128xbf16> to vector<1x24x128xbf16>
      %67 = vector.shape_cast %66 : vector<1x24x128xbf16> to vector<1x24x128xbf16>
      %68 = vector.broadcast %67 : vector<1x24x128xbf16> to vector<2x24x128xbf16>
      %cst_41 = arith.constant dense<0.000000e+00> : vector<2x24x128xf32>
      %69 = tpu.matmul %68, %65, %cst_41 {dimension_numbers = #tpu.dot_dimension_numbers<[2], [2], [1], [1], [0, 0, 0, 1, 1, 1], [0], [0]>} : vector<2x24x128xbf16>, vector<2x128x128xbf16>, vector<2x24x128xf32> -> vector<2x24x128xf32>
      %70 = vector.shape_cast %69 : vector<2x24x128xf32> to vector<48x128xf32>
      %71 = arith.truncf %70 : vector<48x128xf32> to vector<48x128xbf16>
      %c0_42 = arith.constant 0 : index
      %c0_43 = arith.constant 0 : index
      %72 = vector.load %arg15[%c0_42, %c0_43] : memref<48x128xbf16, #tpu.memory_space<vmem>>, vector<48x128xbf16>
      tpu.vector_store %arg15[%c0_42, %c0_43], %71 {strides = array<i32>} : memref<48x128xbf16, #tpu.memory_space<vmem>>, vector<48x128xbf16>,
      %cst_44 = arith.constant 0.000000e+00 : f32
      %73 = vector.broadcast %cst_44 : f32 to vector<48x128xf32>
      %c0_45 = arith.constant 0 : index
      %c0_46 = arith.constant 0 : index
      %74 = vector.load %arg14[%c0_45, %c0_46] : memref<48x128xf32, #tpu.memory_space<vmem>>, vector<48x128xf32>
      tpu.vector_store %arg14[%c0_45, %c0_46], %73 {strides = array<i32>} : memref<48x128xf32, #tpu.memory_space<vmem>>, vector<48x128xf32>,
    } else {
    }
    %c0 = arith.constant 0 : index
    %c0_1 = arith.constant 0 : index
    %c0_2 = arith.constant 0 : index
    %3 = vector.load %arg2[%c0, %c0_1, %c0_2] : memref<2x24x128xf32, #tpu.memory_space<vmem>>, vector<2x24x128xf32>
    %4 = vector.shape_cast %3 : vector<2x24x128xf32> to vector<48x128xf32>
    %5 = arith.truncf %4 : vector<48x128xf32> to vector<48x128xbf16>
    %c0_3 = arith.constant 0 : index
    %c0_4 = arith.constant 0 : index
    %6 = vector.load %arg5[%c0_3, %c0_4] : memref<128x128xbf16, #tpu.memory_space<vmem>>, vector<128x128xbf16>
    %cst = arith.constant dense<0.000000e+00> : vector<48x128xf32>
    %7 = tpu.matmul %5, %6, %cst {dimension_numbers = #tpu.dot_dimension_numbers<[1], [0], [0], [1], [0, 0, 1, 1], [], []>} : vector<48x128xbf16>, vector<128x128xbf16>, vector<48x128xf32> -> vector<48x128xf32>
    %c0_5 = arith.constant 0 : index
    %c0_6 = arith.constant 0 : index
    %8 = vector.load %arg15[%c0_5, %c0_6] : memref<48x128xbf16, #tpu.memory_space<vmem>>, vector<48x128xbf16>
    %c0_7 = arith.constant 0 : index
    %c0_8 = arith.constant 0 : index
    %9 = vector.load %arg6[%c0_7, %c0_8] : memref<128x128xbf16, #tpu.memory_space<vmem>>, vector<128x128xbf16>
    %cst_9 = arith.constant dense<0.000000e+00> : vector<48x128xf32>
    %10 = tpu.matmul %8, %9, %cst_9 {dimension_numbers = #tpu.dot_dimension_numbers<[1], [0], [0], [1], [0, 0, 1, 1], [], []>} : vector<48x128xbf16>, vector<128x128xbf16>, vector<48x128xf32> -> vector<48x128xf32>
    %11 = arith.addf %7, %10 : vector<48x128xf32>
    %c0_10 = arith.constant 0 : index
    %c0_11 = arith.constant 0 : index
    %12 = vector.load %arg7[%c0_10, %c0_11] : memref<1x128xf32, #tpu.memory_space<vmem>>, vector<1x128xf32>
    %13 = vector.broadcast %12 : vector<1x128xf32> to vector<48x128xf32>
    %14 = arith.addf %11, %13 : vector<48x128xf32>
    %cst_12 = arith.constant 0.707106769 : f32
    %15 = vector.broadcast %cst_12 : f32 to vector<48x128xf32>
    %16 = arith.mulf %14, %15 : vector<48x128xf32>
    %17 = math.absf %16 : vector<48x128xf32>
    %cst_13 = arith.constant 0.327591091 : f32
    %18 = vector.broadcast %cst_13 : f32 to vector<48x128xf32>
    %19 = arith.mulf %18, %17 : vector<48x128xf32>
    %cst_14 = arith.constant 1.000000e+00 : f32
    %20 = vector.broadcast %cst_14 : f32 to vector<48x128xf32>
    %21 = arith.addf %20, %19 : vector<48x128xf32>
    %cst_15 = arith.constant 1.000000e+00 : f32
    %22 = vector.broadcast %cst_15 : f32 to vector<48x128xf32>
    %23 = arith.divf %22, %21 : vector<48x128xf32>
    %cst_16 = arith.constant 1.06140542 : f32
    %24 = vector.broadcast %cst_16 : f32 to vector<48x128xf32>
    %25 = arith.mulf %23, %24 : vector<48x128xf32>
    %cst_17 = arith.constant -1.45315206 : f32
    %26 = vector.broadcast %cst_17 : f32 to vector<48x128xf32>
    %27 = arith.addf %26, %25 : vector<48x128xf32>
    %28 = arith.mulf %23, %27 : vector<48x128xf32>
    %cst_18 = arith.constant 1.42141378 : f32
    %29 = vector.broadcast %cst_18 : f32 to vector<48x128xf32>
    %30 = arith.addf %29, %28 : vector<48x128xf32>
    %31 = arith.mulf %23, %30 : vector<48x128xf32>
    %cst_19 = arith.constant -0.284496725 : f32
    %32 = vector.broadcast %cst_19 : f32 to vector<48x128xf32>
    %33 = arith.addf %32, %31 : vector<48x128xf32>
    %34 = arith.mulf %23, %33 : vector<48x128xf32>
    %cst_20 = arith.constant 0.254829586 : f32
    %35 = vector.broadcast %cst_20 : f32 to vector<48x128xf32>
    %36 = arith.addf %35, %34 : vector<48x128xf32>
    %37 = arith.mulf %23, %36 : vector<48x128xf32>
    %cst_21 = arith.constant 0.000000e+00 : f32
    %38 = vector.broadcast %cst_21 : f32 to vector<48x128xf32>
    %39 = arith.subf %38, %17 : vector<48x128xf32>
    %40 = arith.mulf %39, %17 : vector<48x128xf32>
    %41 = math.exp %40 : vector<48x128xf32>
    %42 = arith.mulf %37, %41 : vector<48x128xf32>
    %cst_22 = arith.constant 1.000000e+00 : f32
    %43 = vector.broadcast %cst_22 : f32 to vector<48x128xf32>
    %44 = arith.subf %43, %42 : vector<48x128xf32>
    %cst_23 = arith.constant 0.000000e+00 : f32
    %45 = vector.broadcast %cst_23 : f32 to vector<48x128xf32>
    %46 = arith.cmpf oge, %16, %45 : vector<48x128xf32>
    %cst_24 = arith.constant 0.000000e+00 : f32
    %47 = vector.broadcast %cst_24 : f32 to vector<48x128xf32>
    %48 = arith.subf %47, %44 : vector<48x128xf32>
    %49 = arith.select %46, %44, %48 : vector<48x128xi1>, vector<48x128xf32>
    %cst_25 = arith.constant 5.000000e-01 : f32
    %50 = vector.broadcast %cst_25 : f32 to vector<48x128xf32>
    %51 = arith.mulf %50, %14 : vector<48x128xf32>
    %cst_26 = arith.constant 1.000000e+00 : f32
    %52 = vector.broadcast %cst_26 : f32 to vector<48x128xf32>
    %53 = arith.addf %52, %49 : vector<48x128xf32>
    %54 = arith.mulf %51, %53 : vector<48x128xf32>
    %c0_27 = arith.constant 0 : index
    %c0_28 = arith.constant 0 : index
    %55 = vector.load %arg14[%c0_27, %c0_28] : memref<48x128xf32, #tpu.memory_space<vmem>>, vector<48x128xf32>
    %56 = arith.truncf %54 : vector<48x128xf32> to vector<48x128xbf16>
    %c0_29 = arith.constant 0 : index
    %c0_30 = arith.constant 0 : index
    %57 = vector.load %arg8[%c0_29, %c0_30] : memref<128x128xbf16, #tpu.memory_space<vmem>>, vector<128x128xbf16>
    %cst_31 = arith.constant dense<0.000000e+00> : vector<48x128xf32>
    %58 = tpu.matmul %56, %57, %cst_31 {dimension_numbers = #tpu.dot_dimension_numbers<[1], [0], [0], [1], [0, 0, 1, 1], [], []>} : vector<48x128xbf16>, vector<128x128xbf16>, vector<48x128xf32> -> vector<48x128xf32>
    %59 = arith.addf %55, %58 : vector<48x128xf32>
    %c0_32 = arith.constant 0 : index
    %c0_33 = arith.constant 0 : index
    %60 = vector.load %arg14[%c0_32, %c0_33] : memref<48x128xf32, #tpu.memory_space<vmem>>, vector<48x128xf32>
    tpu.vector_store %arg14[%c0_32, %c0_33], %59 {strides = array<i32>} : memref<48x128xf32, #tpu.memory_space<vmem>>, vector<48x128xf32>,
    %c0_i32_34 = arith.constant 0 : i32
    %61 = arith.cmpi eq, %arg1, %c0_i32_34 : i32
    %62 = arith.extui %61 : i1 to i32
    %c0_i32_35 = arith.constant 0 : i32
    %63 = arith.cmpi ne, %62, %c0_i32_35 : i32
    scf.if %63 {
      %c0_36 = arith.constant 0 : index
      %c0_37 = arith.constant 0 : index
      %c0_38 = arith.constant 0 : index
      %64 = vector.load %arg2[%c0_36, %c0_37, %c0_38] : memref<2x24x128xf32, #tpu.memory_space<vmem>>, vector<2x24x128xf32>
      %65 = vector.shape_cast %64 : vector<2x24x128xf32> to vector<48x128xf32>
      %c0_39 = arith.constant 0 : index
      %c0_40 = arith.constant 0 : index
      %66 = vector.load %arg14[%c0_39, %c0_40] : memref<48x128xf32, #tpu.memory_space<vmem>>, vector<48x128xf32>
      %c0_41 = arith.constant 0 : index
      %c0_42 = arith.constant 0 : index
      %67 = vector.load %arg9[%c0_41, %c0_42] : memref<1x128xf32, #tpu.memory_space<vmem>>, vector<1x128xf32>
      %68 = vector.broadcast %67 : vector<1x128xf32> to vector<48x128xf32>
      %69 = arith.addf %66, %68 : vector<48x128xf32>
      %c0_43 = arith.constant 0 : index
      %c0_44 = arith.constant 0 : index
      %70 = memref.load %arg12[%c0_43, %c0_44] : memref<1x1xf32, #tpu.memory_space<smem>>
      %71 = vector.broadcast %70 : f32 to vector<48x128xf32>
      %72 = arith.mulf %71, %69 : vector<48x128xf32>
      %73 = arith.addf %65, %72 : vector<48x128xf32>
      %cst_45 = arith.constant dense<0.000000e+00> : vector<48xf32>
      %74 = vector.multi_reduction <add>, %73, %cst_45 [1] : vector<48x128xf32> to vector<48xf32>
      %75 = vector.shape_cast %74 : vector<48xf32> to vector<48x1xf32>
      %cst_46 = arith.constant 3.125000e-02 : f32
      %76 = vector.broadcast %cst_46 : f32 to vector<48x1xf32>
      %77 = arith.mulf %75, %76 : vector<48x1xf32>
      %78 = arith.mulf %73, %73 : vector<48x128xf32>
      %cst_47 = arith.constant dense<0.000000e+00> : vector<48xf32>
      %79 = vector.multi_reduction <add>, %78, %cst_47 [1] : vector<48x128xf32> to vector<48xf32>
      %80 = vector.shape_cast %79 : vector<48xf32> to vector<48x1xf32>
      %cst_48 = arith.constant 3.125000e-02 : f32
      %81 = vector.broadcast %cst_48 : f32 to vector<48x1xf32>
      %82 = arith.mulf %80, %81 : vector<48x1xf32>
      %83 = arith.mulf %77, %77 : vector<48x1xf32>
      %84 = arith.subf %82, %83 : vector<48x1xf32>
      %cst_49 = arith.constant 0.000000e+00 : f32
      %85 = vector.broadcast %cst_49 : f32 to vector<48x1xf32>
      %86 = arith.maximumf %84, %85 : vector<48x1xf32>
      %87 = vector.broadcast %77 : vector<48x1xf32> to vector<48x128xf32>
      %88 = arith.subf %73, %87 : vector<48x128xf32>
      %cst_50 = arith.constant 9.99999974E-6 : f32
      %89 = vector.broadcast %cst_50 : f32 to vector<48x1xf32>
      %90 = arith.addf %86, %89 : vector<48x1xf32>
      %91 = math.rsqrt %90 : vector<48x1xf32>
      %92 = vector.broadcast %91 : vector<48x1xf32> to vector<48x128xf32>
      %93 = arith.mulf %88, %92 : vector<48x128xf32>
      %c0_51 = arith.constant 0 : index
      %c0_52 = arith.constant 0 : index
      %94 = vector.load %arg10[%c0_51, %c0_52] : memref<1x128xf32, #tpu.memory_space<vmem>>, vector<1x128xf32>
      %95 = vector.broadcast %94 : vector<1x128xf32> to vector<48x128xf32>
      %96 = arith.mulf %93, %95 : vector<48x128xf32>
      %c0_53 = arith.constant 0 : index
      %c0_54 = arith.constant 0 : index
      %97 = vector.load %arg11[%c0_53, %c0_54] : memref<1x128xf32, #tpu.memory_space<vmem>>, vector<1x128xf32>
      %98 = vector.broadcast %97 : vector<1x128xf32> to vector<48x128xf32>
      %99 = arith.addf %96, %98 : vector<48x128xf32>
      %100 = vector.shape_cast %99 : vector<48x128xf32> to vector<2x24x128xf32>
      %c0_55 = arith.constant 0 : index
      %c0_56 = arith.constant 0 : index
      %c0_57 = arith.constant 0 : index
      %101 = vector.load %arg13[%c0_55, %c0_56, %c0_57] : memref<2x24x128xf32, #tpu.memory_space<vmem>>, vector<2x24x128xf32>
      tpu.vector_store %arg13[%c0_55, %c0_56, %c0_57], %100 {strides = array<i32>} : memref<2x24x128xf32, #tpu.memory_space<vmem>>, vector<2x24x128xf32>,
    } else {
    }
    return
  }
  func.func @transform_0(%arg0: i32, %arg1: i32) -> (i32, i32, i32) {
    %c0_i32 = arith.constant 0 : i32
    %c0_i32_0 = arith.constant 0 : i32
    %c0_i32_1 = arith.constant 0 : i32
    return %arg0, %c0_i32, %c0_i32_0 : i32, i32, i32
  }
  func.func @transform_1(%arg0: i32, %arg1: i32) -> (i32, i32, i32) {
    %c0_i32 = arith.constant 0 : i32
    %c0_i32_0 = arith.constant 0 : i32
    %c0_i32_1 = arith.constant 0 : i32
    return %arg0, %c0_i32, %c0_i32_0 : i32, i32, i32
  }
  func.func @transform_2(%arg0: i32, %arg1: i32) -> (i32, i32) {
    %c0_i32 = arith.constant 0 : i32
    %c0_i32_0 = arith.constant 0 : i32
    %c0_i32_1 = arith.constant 0 : i32
    return %c0_i32, %c0_i32_0 : i32, i32
  }
  func.func @transform_3(%arg0: i32, %arg1: i32) -> (i32, i32) {
    %c0_i32 = arith.constant 0 : i32
    %c0_i32_0 = arith.constant 0 : i32
    return %c0_i32, %arg1 : i32, i32
  }
  func.func @transform_4(%arg0: i32, %arg1: i32) -> (i32, i32) {
    %c0_i32 = arith.constant 0 : i32
    %c0_i32_0 = arith.constant 0 : i32
    return %c0_i32, %arg1 : i32, i32
  }
  func.func @transform_5(%arg0: i32, %arg1: i32) -> (i32, i32) {
    %c0_i32 = arith.constant 0 : i32
    %c0_i32_0 = arith.constant 0 : i32
    return %c0_i32, %arg1 : i32, i32
  }
  func.func @transform_6(%arg0: i32, %arg1: i32) -> (i32, i32) {
    %c0_i32 = arith.constant 0 : i32
    %c0_i32_0 = arith.constant 0 : i32
    return %arg1, %c0_i32 : i32, i32
  }
  func.func @transform_7(%arg0: i32, %arg1: i32) -> (i32, i32) {
    %c0_i32 = arith.constant 0 : i32
    %c0_i32_0 = arith.constant 0 : i32
    %c0_i32_1 = arith.constant 0 : i32
    return %c0_i32, %c0_i32_0 : i32, i32
  }
  func.func @transform_8(%arg0: i32, %arg1: i32) -> (i32, i32) {
    %c0_i32 = arith.constant 0 : i32
    %c0_i32_0 = arith.constant 0 : i32
    %c0_i32_1 = arith.constant 0 : i32
    return %c0_i32, %c0_i32_0 : i32, i32
  }
  func.func @transform_9(%arg0: i32, %arg1: i32) -> (i32, i32) {
    %c0_i32 = arith.constant 0 : i32
    %c0_i32_0 = arith.constant 0 : i32
    %c0_i32_1 = arith.constant 0 : i32
    return %c0_i32, %c0_i32_0 : i32, i32
  }
  func.func @transform_10(%arg0: i32, %arg1: i32) -> (i32, i32) {
    %c0_i32 = arith.constant 0 : i32
    %c0_i32_0 = arith.constant 0 : i32
    %c0_i32_1 = arith.constant 0 : i32
    return %c0_i32, %c0_i32_0 : i32, i32
  }
  func.func @transform_11(%arg0: i32, %arg1: i32) -> (i32, i32, i32) {
    %c0_i32 = arith.constant 0 : i32
    %c0_i32_0 = arith.constant 0 : i32
    %c0_i32_1 = arith.constant 0 : i32
    return %arg0, %c0_i32, %c0_i32_0 : i32, i32, i32
  }
}

module attributes {stable_mosaic.version = 11 : i64} {
  func.func @cvfm_kernel(%arg0: i32, %arg1: i32, %arg2: memref<2x24x128xf32, #tpu.memory_space<vmem>>, %arg3: memref<2x128x128xbf16, #tpu.memory_space<vmem>>, %arg4: memref<24x128xbf16, #tpu.memory_space<vmem>>, %arg5: memref<128x128xbf16, #tpu.memory_space<vmem>>, %arg6: memref<128x128xbf16, #tpu.memory_space<vmem>>, %arg7: memref<1x128xf32, #tpu.memory_space<vmem>>, %arg8: memref<128x128xbf16, #tpu.memory_space<vmem>>, %arg9: memref<1x128xf32, #tpu.memory_space<vmem>>, %arg10: memref<1x128xf32, #tpu.memory_space<vmem>>, %arg11: memref<1x128xf32, #tpu.memory_space<vmem>>, %arg12: memref<1x1xf32, #tpu.memory_space<smem>>, %arg13: memref<2x24x128xf32, #tpu.memory_space<vmem>>, %arg14: memref<48x128xf32, #tpu.memory_space<vmem>>, %arg15: memref<48x128xbf16, #tpu.memory_space<vmem>>) attributes {dimension_semantics = [#tpu.dimension_semantics<parallel>, #tpu.dimension_semantics<arbitrary>], iteration_bounds = array<i64: 2, 1>, scalar_prefetch = 0 : i64, scratch_operands = 2 : i64, tpu.core_type = #tpu.core_type<tc>, window_params = [{transform_indices = @transform_0, window_bounds = array<i64: 2, 24, 128>}, {transform_indices = @transform_1, window_bounds = array<i64: 2, 128, 128>}, {pipeline_mode = #tpu.pipeline_mode<synchronous>, transform_indices = @transform_2, window_bounds = array<i64: 24, 128>}, {transform_indices = @transform_3, window_bounds = array<i64: 128, 128>}, {transform_indices = @transform_4, window_bounds = array<i64: 128, 128>}, {transform_indices = @transform_5, window_bounds = array<i64: 1, 128>}, {transform_indices = @transform_6, window_bounds = array<i64: 128, 128>}, {pipeline_mode = #tpu.pipeline_mode<synchronous>, transform_indices = @transform_7, window_bounds = array<i64: 1, 128>}, {pipeline_mode = #tpu.pipeline_mode<synchronous>, transform_indices = @transform_8, window_bounds = array<i64: 1, 128>}, {pipeline_mode = #tpu.pipeline_mode<synchronous>, transform_indices = @transform_9, window_bounds = array<i64: 1, 128>}, {transform_indices = @transform_10, window_bounds = array<i64: 1, 1>}, {transform_indices = @transform_11, window_bounds = array<i64: 2, 24, 128>}]} {
    %c0_i32 = arith.constant 0 : i32
    %0 = arith.cmpi eq, %arg1, %c0_i32 : i32
    %1 = arith.extui %0 : i1 to i32
    %c0_i32_0 = arith.constant 0 : i32
    %2 = arith.cmpi ne, %1, %c0_i32_0 : i32
    scf.if %2 {
      %c0_36 = arith.constant 0 : index
      %c0_37 = arith.constant 0 : index
      %64 = vector.load %arg4[%c0_36, %c0_37] : memref<24x128xbf16, #tpu.memory_space<vmem>>, vector<24x128xbf16>
      %c0_38 = arith.constant 0 : index
      %c0_39 = arith.constant 0 : index
      %c0_40 = arith.constant 0 : index
      %65 = vector.load %arg3[%c0_38, %c0_39, %c0_40] : memref<2x128x128xbf16, #tpu.memory_space<vmem>>, vector<2x128x128xbf16>
      %66 = vector.shape_cast %64 : vector<24x128xbf16> to vector<1x24x128xbf16>
      %67 = vector.shape_cast %66 : vector<1x24x128xbf16> to vector<1x24x128xbf16>
      %68 = vector.broadcast %67 : vector<1x24x128xbf16> to vector<2x24x128xbf16>
      %cst_41 = arith.constant dense<0.000000e+00> : vector<2x24x128xf32>
      %69 = tpu.matmul %68, %65, %cst_41 {dimension_numbers = #tpu.dot_dimension_numbers<[2], [2], [1], [1], [0, 0, 0, 1, 1, 1], [0], [0]>} : vector<2x24x128xbf16>, vector<2x128x128xbf16>, vector<2x24x128xf32> -> vector<2x24x128xf32>
      %70 = vector.shape_cast %69 : vector<2x24x128xf32> to vector<48x128xf32>
      %71 = arith.truncf %70 : vector<48x128xf32> to vector<48x128xbf16>
      %c0_42 = arith.constant 0 : index
      %c0_43 = arith.constant 0 : index
      %72 = vector.load %arg15[%c0_42, %c0_43] : memref<48x128xbf16, #tpu.memory_space<vmem>>, vector<48x128xbf16>
      tpu.vector_store %arg15[%c0_42, %c0_43], %71 {strides = array<i32>} : memref<48x128xbf16, #tpu.memory_space<vmem>>, vector<48x128xbf16>,
      %cst_44 = arith.constant 0.000000e+00 : f32
      %73 = vector.broadcast %cst_44 : f32 to vector<48x128xf32>
      %c0_45 = arith.constant 0 : index
      %c0_46 = arith.constant 0 : index
      %74 = vector.load %arg14[%c0_45, %c0_46] : memref<48x128xf32, #tpu.memory_space<vmem>>, vector<48x128xf32>
      tpu.vector_store %arg14[%c0_45, %c0_46], %73 {strides = array<i32>} : memref<48x128xf32, #tpu.memory_space<vmem>>, vector<48x128xf32>,
    } else {
    }
    %c0 = arith.constant 0 : index
    %c0_1 = arith.constant 0 : index
    %c0_2 = arith.constant 0 : index
    %3 = vector.load %arg2[%c0, %c0_1, %c0_2] : memref<2x24x128xf32, #tpu.memory_space<vmem>>, vector<2x24x128xf32>
    %4 = vector.shape_cast %3 : vector<2x24x128xf32> to vector<48x128xf32>
    %5 = arith.truncf %4 : vector<48x128xf32> to vector<48x128xbf16>
    %c0_3 = arith.constant 0 : index
    %c0_4 = arith.constant 0 : index
    %6 = vector.load %arg5[%c0_3, %c0_4] : memref<128x128xbf16, #tpu.memory_space<vmem>>, vector<128x128xbf16>
    %cst = arith.constant dense<0.000000e+00> : vector<48x128xf32>
    %7 = tpu.matmul %5, %6, %cst {dimension_numbers = #tpu.dot_dimension_numbers<[1], [0], [0], [1], [0, 0, 1, 1], [], []>} : vector<48x128xbf16>, vector<128x128xbf16>, vector<48x128xf32> -> vector<48x128xf32>
    %c0_5 = arith.constant 0 : index
    %c0_6 = arith.constant 0 : index
    %8 = vector.load %arg15[%c0_5, %c0_6] : memref<48x128xbf16, #tpu.memory_space<vmem>>, vector<48x128xbf16>
    %c0_7 = arith.constant 0 : index
    %c0_8 = arith.constant 0 : index
    %9 = vector.load %arg6[%c0_7, %c0_8] : memref<128x128xbf16, #tpu.memory_space<vmem>>, vector<128x128xbf16>
    %cst_9 = arith.constant dense<0.000000e+00> : vector<48x128xf32>
    %10 = tpu.matmul %8, %9, %cst_9 {dimension_numbers = #tpu.dot_dimension_numbers<[1], [0], [0], [1], [0, 0, 1, 1], [], []>} : vector<48x128xbf16>, vector<128x128xbf16>, vector<48x128xf32> -> vector<48x128xf32>
    %11 = arith.addf %7, %10 : vector<48x128xf32>
    %c0_10 = arith.constant 0 : index
    %c0_11 = arith.constant 0 : index
    %12 = vector.load %arg7[%c0_10, %c0_11] : memref<1x128xf32, #tpu.memory_space<vmem>>, vector<1x128xf32>
    %13 = vector.broadcast %12 : vector<1x128xf32> to vector<48x128xf32>
    %14 = arith.addf %11, %13 : vector<48x128xf32>
    %cst_12 = arith.constant 0.707106769 : f32
    %15 = vector.broadcast %cst_12 : f32 to vector<48x128xf32>
    %16 = arith.mulf %14, %15 : vector<48x128xf32>
    %17 = math.absf %16 : vector<48x128xf32>
    %cst_13 = arith.constant 0.327591091 : f32
    %18 = vector.broadcast %cst_13 : f32 to vector<48x128xf32>
    %19 = arith.mulf %18, %17 : vector<48x128xf32>
    %cst_14 = arith.constant 1.000000e+00 : f32
    %20 = vector.broadcast %cst_14 : f32 to vector<48x128xf32>
    %21 = arith.addf %20, %19 : vector<48x128xf32>
    %cst_15 = arith.constant 1.000000e+00 : f32
    %22 = vector.broadcast %cst_15 : f32 to vector<48x128xf32>
    %23 = arith.divf %22, %21 : vector<48x128xf32>
    %cst_16 = arith.constant 1.06140542 : f32
    %24 = vector.broadcast %cst_16 : f32 to vector<48x128xf32>
    %25 = arith.mulf %23, %24 : vector<48x128xf32>
    %cst_17 = arith.constant -1.45315206 : f32
    %26 = vector.broadcast %cst_17 : f32 to vector<48x128xf32>
    %27 = arith.addf %26, %25 : vector<48x128xf32>
    %28 = arith.mulf %23, %27 : vector<48x128xf32>
    %cst_18 = arith.constant 1.42141378 : f32
    %29 = vector.broadcast %cst_18 : f32 to vector<48x128xf32>
    %30 = arith.addf %29, %28 : vector<48x128xf32>
    %31 = arith.mulf %23, %30 : vector<48x128xf32>
    %cst_19 = arith.constant -0.284496725 : f32
    %32 = vector.broadcast %cst_19 : f32 to vector<48x128xf32>
    %33 = arith.addf %32, %31 : vector<48x128xf32>
    %34 = arith.mulf %23, %33 : vector<48x128xf32>
    %cst_20 = arith.constant 0.254829586 : f32
    %35 = vector.broadcast %cst_20 : f32 to vector<48x128xf32>
    %36 = arith.addf %35, %34 : vector<48x128xf32>
    %37 = arith.mulf %23, %36 : vector<48x128xf32>
    %cst_21 = arith.constant 0.000000e+00 : f32
    %38 = vector.broadcast %cst_21 : f32 to vector<48x128xf32>
    %39 = arith.subf %38, %17 : vector<48x128xf32>
    %40 = arith.mulf %39, %17 : vector<48x128xf32>
    %41 = math.exp %40 : vector<48x128xf32>
    %42 = arith.mulf %37, %41 : vector<48x128xf32>
    %cst_22 = arith.constant 1.000000e+00 : f32
    %43 = vector.broadcast %cst_22 : f32 to vector<48x128xf32>
    %44 = arith.subf %43, %42 : vector<48x128xf32>
    %cst_23 = arith.constant 0.000000e+00 : f32
    %45 = vector.broadcast %cst_23 : f32 to vector<48x128xf32>
    %46 = arith.cmpf oge, %16, %45 : vector<48x128xf32>
    %cst_24 = arith.constant 0.000000e+00 : f32
    %47 = vector.broadcast %cst_24 : f32 to vector<48x128xf32>
    %48 = arith.subf %47, %44 : vector<48x128xf32>
    %49 = arith.select %46, %44, %48 : vector<48x128xi1>, vector<48x128xf32>
    %cst_25 = arith.constant 5.000000e-01 : f32
    %50 = vector.broadcast %cst_25 : f32 to vector<48x128xf32>
    %51 = arith.mulf %50, %14 : vector<48x128xf32>
    %cst_26 = arith.constant 1.000000e+00 : f32
    %52 = vector.broadcast %cst_26 : f32 to vector<48x128xf32>
    %53 = arith.addf %52, %49 : vector<48x128xf32>
    %54 = arith.mulf %51, %53 : vector<48x128xf32>
    %c0_27 = arith.constant 0 : index
    %c0_28 = arith.constant 0 : index
    %55 = vector.load %arg14[%c0_27, %c0_28] : memref<48x128xf32, #tpu.memory_space<vmem>>, vector<48x128xf32>
    %56 = arith.truncf %54 : vector<48x128xf32> to vector<48x128xbf16>
    %c0_29 = arith.constant 0 : index
    %c0_30 = arith.constant 0 : index
    %57 = vector.load %arg8[%c0_29, %c0_30] : memref<128x128xbf16, #tpu.memory_space<vmem>>, vector<128x128xbf16>
    %cst_31 = arith.constant dense<0.000000e+00> : vector<48x128xf32>
    %58 = tpu.matmul %56, %57, %cst_31 {dimension_numbers = #tpu.dot_dimension_numbers<[1], [0], [0], [1], [0, 0, 1, 1], [], []>} : vector<48x128xbf16>, vector<128x128xbf16>, vector<48x128xf32> -> vector<48x128xf32>
    %59 = arith.addf %55, %58 : vector<48x128xf32>
    %c0_32 = arith.constant 0 : index
    %c0_33 = arith.constant 0 : index
    %60 = vector.load %arg14[%c0_32, %c0_33] : memref<48x128xf32, #tpu.memory_space<vmem>>, vector<48x128xf32>
    tpu.vector_store %arg14[%c0_32, %c0_33], %59 {strides = array<i32>} : memref<48x128xf32, #tpu.memory_space<vmem>>, vector<48x128xf32>,
    %c0_i32_34 = arith.constant 0 : i32
    %61 = arith.cmpi eq, %arg1, %c0_i32_34 : i32
    %62 = arith.extui %61 : i1 to i32
    %c0_i32_35 = arith.constant 0 : i32
    %63 = arith.cmpi ne, %62, %c0_i32_35 : i32
    scf.if %63 {
      %c0_36 = arith.constant 0 : index
      %c0_37 = arith.constant 0 : index
      %c0_38 = arith.constant 0 : index
      %64 = vector.load %arg2[%c0_36, %c0_37, %c0_38] : memref<2x24x128xf32, #tpu.memory_space<vmem>>, vector<2x24x128xf32>
      %65 = vector.shape_cast %64 : vector<2x24x128xf32> to vector<48x128xf32>
      %c0_39 = arith.constant 0 : index
      %c0_40 = arith.constant 0 : index
      %66 = vector.load %arg14[%c0_39, %c0_40] : memref<48x128xf32, #tpu.memory_space<vmem>>, vector<48x128xf32>
      %c0_41 = arith.constant 0 : index
      %c0_42 = arith.constant 0 : index
      %67 = vector.load %arg9[%c0_41, %c0_42] : memref<1x128xf32, #tpu.memory_space<vmem>>, vector<1x128xf32>
      %68 = vector.broadcast %67 : vector<1x128xf32> to vector<48x128xf32>
      %69 = arith.addf %66, %68 : vector<48x128xf32>
      %c0_43 = arith.constant 0 : index
      %c0_44 = arith.constant 0 : index
      %70 = memref.load %arg12[%c0_43, %c0_44] : memref<1x1xf32, #tpu.memory_space<smem>>
      %71 = vector.broadcast %70 : f32 to vector<48x128xf32>
      %72 = arith.mulf %71, %69 : vector<48x128xf32>
      %73 = arith.addf %65, %72 : vector<48x128xf32>
      %cst_45 = arith.constant dense<0.000000e+00> : vector<48xf32>
      %74 = vector.multi_reduction <add>, %73, %cst_45 [1] : vector<48x128xf32> to vector<48xf32>
      %75 = vector.shape_cast %74 : vector<48xf32> to vector<48x1xf32>
      %cst_46 = arith.constant 3.125000e-02 : f32
      %76 = vector.broadcast %cst_46 : f32 to vector<48x1xf32>
      %77 = arith.mulf %75, %76 : vector<48x1xf32>
      %78 = arith.mulf %73, %73 : vector<48x128xf32>
      %cst_47 = arith.constant dense<0.000000e+00> : vector<48xf32>
      %79 = vector.multi_reduction <add>, %78, %cst_47 [1] : vector<48x128xf32> to vector<48xf32>
      %80 = vector.shape_cast %79 : vector<48xf32> to vector<48x1xf32>
      %cst_48 = arith.constant 3.125000e-02 : f32
      %81 = vector.broadcast %cst_48 : f32 to vector<48x1xf32>
      %82 = arith.mulf %80, %81 : vector<48x1xf32>
      %83 = arith.mulf %77, %77 : vector<48x1xf32>
      %84 = arith.subf %82, %83 : vector<48x1xf32>
      %cst_49 = arith.constant 0.000000e+00 : f32
      %85 = vector.broadcast %cst_49 : f32 to vector<48x1xf32>
      %86 = arith.maximumf %84, %85 : vector<48x1xf32>
      %87 = vector.broadcast %77 : vector<48x1xf32> to vector<48x128xf32>
      %88 = arith.subf %73, %87 : vector<48x128xf32>
      %cst_50 = arith.constant 9.99999974E-6 : f32
      %89 = vector.broadcast %cst_50 : f32 to vector<48x1xf32>
      %90 = arith.addf %86, %89 : vector<48x1xf32>
      %91 = math.rsqrt %90 : vector<48x1xf32>
      %92 = vector.broadcast %91 : vector<48x1xf32> to vector<48x128xf32>
      %93 = arith.mulf %88, %92 : vector<48x128xf32>
      %c0_51 = arith.constant 0 : index
      %c0_52 = arith.constant 0 : index
      %94 = vector.load %arg10[%c0_51, %c0_52] : memref<1x128xf32, #tpu.memory_space<vmem>>, vector<1x128xf32>
      %95 = vector.broadcast %94 : vector<1x128xf32> to vector<48x128xf32>
      %96 = arith.mulf %93, %95 : vector<48x128xf32>
      %c0_53 = arith.constant 0 : index
      %c0_54 = arith.constant 0 : index
      %97 = vector.load %arg11[%c0_53, %c0_54] : memref<1x128xf32, #tpu.memory_space<vmem>>, vector<1x128xf32>
      %98 = vector.broadcast %97 : vector<1x128xf32> to vector<48x128xf32>
      %99 = arith.addf %96, %98 : vector<48x128xf32>
      %100 = vector.shape_cast %99 : vector<48x128xf32> to vector<2x24x128xf32>
      %c0_55 = arith.constant 0 : index
      %c0_56 = arith.constant 0 : index
      %c0_57 = arith.constant 0 : index
      %101 = vector.load %arg13[%c0_55, %c0_56, %c0_57] : memref<2x24x128xf32, #tpu.memory_space<vmem>>, vector<2x24x128xf32>
      tpu.vector_store %arg13[%c0_55, %c0_56, %c0_57], %100 {strides = array<i32>} : memref<2x24x128xf32, #tpu.memory_space<vmem>>, vector<2x24x128xf32>,
    } else {
    }
    return
  }
  func.func @transform_0(%arg0: i32, %arg1: i32) -> (i32, i32, i32) {
    %c0_i32 = arith.constant 0 : i32
    %c0_i32_0 = arith.constant 0 : i32
    %c0_i32_1 = arith.constant 0 : i32
    return %arg0, %c0_i32, %c0_i32_0 : i32, i32, i32
  }
  func.func @transform_1(%arg0: i32, %arg1: i32) -> (i32, i32, i32) {
    %c0_i32 = arith.constant 0 : i32
    %c0_i32_0 = arith.constant 0 : i32
    %c0_i32_1 = arith.constant 0 : i32
    return %arg0, %c0_i32, %c0_i32_0 : i32, i32, i32
  }
  func.func @transform_2(%arg0: i32, %arg1: i32) -> (i32, i32) {
    %c0_i32 = arith.constant 0 : i32
    %c0_i32_0 = arith.constant 0 : i32
    %c0_i32_1 = arith.constant 0 : i32
    return %c0_i32, %c0_i32_0 : i32, i32
  }
  func.func @transform_3(%arg0: i32, %arg1: i32) -> (i32, i32) {
    %c0_i32 = arith.constant 0 : i32
    %c0_i32_0 = arith.constant 0 : i32
    return %c0_i32, %arg1 : i32, i32
  }
  func.func @transform_4(%arg0: i32, %arg1: i32) -> (i32, i32) {
    %c0_i32 = arith.constant 0 : i32
    %c0_i32_0 = arith.constant 0 : i32
    return %c0_i32, %arg1 : i32, i32
  }
  func.func @transform_5(%arg0: i32, %arg1: i32) -> (i32, i32) {
    %c0_i32 = arith.constant 0 : i32
    %c0_i32_0 = arith.constant 0 : i32
    return %c0_i32, %arg1 : i32, i32
  }
  func.func @transform_6(%arg0: i32, %arg1: i32) -> (i32, i32) {
    %c0_i32 = arith.constant 0 : i32
    %c0_i32_0 = arith.constant 0 : i32
    return %arg1, %c0_i32 : i32, i32
  }
  func.func @transform_7(%arg0: i32, %arg1: i32) -> (i32, i32) {
    %c0_i32 = arith.constant 0 : i32
    %c0_i32_0 = arith.constant 0 : i32
    %c0_i32_1 = arith.constant 0 : i32
    return %c0_i32, %c0_i32_0 : i32, i32
  }
  func.func @transform_8(%arg0: i32, %arg1: i32) -> (i32, i32) {
    %c0_i32 = arith.constant 0 : i32
    %c0_i32_0 = arith.constant 0 : i32
    %c0_i32_1 = arith.constant 0 : i32
    return %c0_i32, %c0_i32_0 : i32, i32
  }
  func.func @transform_9(%arg0: i32, %arg1: i32) -> (i32, i32) {
    %c0_i32 = arith.constant 0 : i32
    %c0_i32_0 = arith.constant 0 : i32
    %c0_i32_1 = arith.constant 0 : i32
    return %c0_i32, %c0_i32_0 : i32, i32
  }
  func.func @transform_10(%arg0: i32, %arg1: i32) -> (i32, i32) {
    %c0_i32 = arith.constant 0 : i32
    %c0_i32_0 = arith.constant 0 : i32
    %c0_i32_1 = arith.constant 0 : i32
    return %c0_i32, %c0_i32_0 : i32, i32
  }
  func.func @transform_11(%arg0: i32, %arg1: i32) -> (i32, i32, i32) {
    %c0_i32 = arith.constant 0 : i32
    %c0_i32_0 = arith.constant 0 : i32
    %c0_i32_1 = arith.constant 0 : i32
    return %arg0, %c0_i32, %c0_i32_0 : i32, i32, i32
  }
}

</mosaic_0001>

<bundles_post_ra>
// kernel: tpu_custom_call.1
= control target key start
LH: loop header
LB: loop body
LE: loop exit
PB: predicated region body
PF: predicated region fallthrough
CT: control target
= control target key end

     0   :  { %s3448_s0 = inlined_call_operand.hbm [shape: f32[4,24,128], index: 0, kind: input, shape index: {}]   ;;  %s3449_s1 = inlined_call_operand.hbm [shape: bf16[4,128,128], index: 1, kind: input, shape index: {}]   ;;  %s3450_s2 = inlined_call_operand.hbm [shape: bf16[24,128], index: 2, kind: input, shape index: {}]   ;;  %s3451_s3 = inlined_call_operand.hbm [shape: bf16[128,128], index: 3, kind: input, shape index: {}]   ;;  %s3452_s4 = inlined_call_operand.hbm [shape: bf16[128,128], index: 4, kind: input, shape index: {}]   ;;  %s3453_s5 = inlined_call_operand.hbm [shape: f32[1,128], index: 5, kind: input, shape index: {}]   ;;  %s3454_s6 = inlined_call_operand.hbm [shape: bf16[128,128], index: 6, kind: input, shape index: {}]   ;;  %s3455_s7 = inlined_call_operand.hbm [shape: f32[1,128], index: 7, kind: input, shape index: {}]   ;;  %s3456_s8 = inlined_call_operand.hbm [shape: f32[1,128], index: 8, kind: input, shape index: {}]   ;;  %s3457_s9 = inlined_call_operand.hbm [shape: f32[1,128], index: 9, kind: input, shape index: {}]   ;;  %s3458_s10 = inlined_call_operand.<no memory space> [shape: f32[1,1], index: 10, kind: input, shape index: {}]   ;;  %s3459_s11 = inlined_call_operand.hbm [shape: f32[4,24,128], index: 11, kind: output, shape index: {}]  }
   0x1   :  { %3469 = sst [smem:[#allocation33_spill]] %s3448_s0 }
   0x2   :  { %3470 = sst [smem:[#allocation34_spill]] %s3449_s1 }
   0x3   :  { %3471 = sst [smem:[#allocation35_spill]] %s3450_s2 }
   0x4   :  { %3472 = sst [smem:[#allocation36_spill]] %s3451_s3 }
   0x5   :  { %3473 = sst [smem:[#allocation37_spill]] %s3452_s4 }
   0x6   :  { %3474 = sst [smem:[#allocation38_spill]] %s3453_s5 }
   0x7   :  { %3475 = sst [smem:[#allocation39_spill]] %s3454_s6 }
   0x8   :  { %3476 = sst [smem:[#allocation40_spill]] %s3455_s7 }
   0x9   :  { %3477 = sst [smem:[#allocation41_spill]] %s3456_s8 }
   0xa   :  { %3478 = sst [smem:[#allocation42_spill]] %s3459_s11 }
   0xb   :  { %16 = sst [smem:[#allocation4]] %s3458_s10 }
   0xc   :  { %17 = vsyncpa [#allocation6], 0 }
   0xd   :  { %19 = vsyncpa [#allocation6 + $0x1], 0 }
   0xe   :  { %20 = vsyncpa [#allocation9], 0 }
   0xf   :  { %22 = vsyncpa [#allocation9 + $0x1], 0 }
  0x10   :  { %23 = vsyncpa [#allocation12], 0 }
  0x11   :  { %24 = vsyncpa [#allocation15], 0 }
  0x12   :  { %25 = vsyncpa [#allocation18], 0 }
  0x13   :  { %26 = vsyncpa [#allocation21], 0 }
  0x14   :  { %27 = vsyncpa [#allocation7], 0 }
  0x15   :  { %29 = vsyncpa [#allocation7 + $0x1], 0  ;;  %s2774_s19 = smov 0   ;;  %s2776_s20 = smov 0  }
  0x16   :  { %s2778_s21 = smov 0   ;;  %s2780_s22 = smov 0  }
  0x17   :  { %s2782_s23 = smov 0   ;;  %s2784_s10 = smov 0  }
  0x18 LB: > { %3479 = sst [smem:[#allocation31_spill]] %s2682_s22  ;;  %s2805_s24 = sadd.s32 4294967295, %s2690_s10   ;;  %s2690_s10 = sphi %s2784_s10, %s35_s10   ;;  %s2686_s23 = sphi %s2782_s23, %s3523_s23   ;;  %s2682_s22 = sphi %s2780_s22, %s3522_s22   ;;  %s2678_s21 = sphi %s2778_s21, %s3521_s21   ;;  %s2674_s20 = sphi %s2776_s20, %s3520_s20   ;;  %s2670_s19 = sphi %s2774_s19, %s3519_s19  }
  0x19   : > { %p1789_p0 = scmp.ge.s32.totalorder %s2690_s10, 1  ;;  %p3463_p1 = scmp.eq.s32.totalorder %s2805_s24, 0 }
  0x1a   : > { %p339_p2 = scmp.lt.s32.totalorder %s2690_s10, 3  ;;  %s2692_s26 = smov [#allocation10]  }
  0x1b   : > { %s351_s27 = sshll.u32 %s2692_s26, 4  ;;  %s2693_s29 = smov [#allocation11]   ;;  %s2814_s27 = int_to_ptr.vmem [resolvable:$true] %s351_s27 }
  0x1c   : > { %p2810_p3 = pnand %p1789_p0, %p339_p2  ;;  %s366_s30 = sshll.u32 %s2693_s29, 4  ;;  %s2825_s30 = int_to_ptr.vmem [resolvable:$true] %s366_s30 }
  0x1d   : > { %s2694_s12 = smov [#allocation14]   ;;  %s3483_s2 = sld [smem:[#allocation35_spill]] }
  0x1e   : > { %s3480_s25 = scalar_select %p2810_p3, 1, 0 }
  0x1f   : > { %p2104_p4 = pneg %p2810_p3  ;;  %s2827_s13 = sshll.u32 %s2694_s12, 4  ;;  %s398_s13 = int_to_ptr.vmem [resolvable:$true] %s2827_s13 }
  0x20   : > { %3481 = sst [smem:[#allocation32_spill]] %s3480_s25 }
  0x21   : > { %p2821_p6 = pnand %p2104_p4, %p3463_p1 }
  0x23   : > { %s2300_s16 = scalar_lea.hbm %s3483_s2, 192  ;;  %p2837_p8 = pneg %p2821_p6 }
  0x24   : > { %p2301_p7 = scmp.ne.s32.totalorder %s3483_s2, %s2300_s16  ;;  %p2307_p11 = scmp.lt.u32.totalorder %s2300_s16, %s3483_s2 }
  0x26   : > { %p2303_p9 = pnand %p2837_p8, %p2301_p7 }
  0x28   : > { %p2304_p10 = pneg %p2303_p9 }
  0x2a   : > { %p2309_p12 = pnand %p2307_p11, %p2304_p10 }
  0x2c   : > { %2312 = shalt.err (!%p2309_p12)
}
  0x2d   : > { %s2313_s14 = scalar_lea.vmem %s2814_s27, 192  ;;  %p2321_p4 = scmp.lt.s32.totalorder %s2814_s27, %s2814_s27 }
  0x2e   : > { %p2314_p13 = scmp.ne.s32.totalorder %s2814_s27, %s2313_s14  ;;  %p2322_p5 = scmp.lt.s32.totalorder %s2313_s14, %s2313_s14 }
  0x30   : > { %p2316_p0 = pnand %p2314_p13, %p2837_p8  ;;  %p2323_p7 = por %p2322_p5, %p2321_p4 }
  0x32   : > { %p2317_p2 = pneg %p2316_p0 }
  0x34   : > { %p2324_p9 = pnand %p2323_p7, %p2317_p2 }
  0x36   : > { %2327 = shalt.err (!%p2324_p9)
}
  0x37   : > { %s3465_s15 = smov 64   ;;  %s3467_s16 = smov 4  }
  0x38   : > { %2107 = dma.hbm_to_vmem [thread:$0]  (!%p2821_p6), %s3483_s2, 192, %s2814_s27, [#allocation9], %s3465_s15, %s3465_s15, %s3467_s16  }
  0x39   : > { %s3485_s3 = sld [smem:[#allocation36_spill]] }
  0x3f   : > { %s2328_s14 = scalar_lea.hbm %s3485_s3, 1024 }
  0x40   : > { %p2329_p5 = scmp.ne.s32.totalorder %s3485_s3, %s2328_s14  ;;  %p2335_p12 = scmp.lt.u32.totalorder %s2328_s14, %s3485_s3 }
  0x42   : > { %p2331_p10 = pnand %p2329_p5, %p2837_p8 }
  0x44   : > { %p2332_p11 = pneg %p2331_p10 }
  0x46   : > { %p2337_p13 = pnand %p2335_p12, %p2332_p11 }
  0x48   : > { %2340 = shalt.err (!%p2337_p13)
}
  0x49   : > { %s2341_s27 = scalar_lea.vmem %s2825_s30, 1024  ;;  %p2349_p7 = scmp.lt.s32.totalorder %s2825_s30, %s2825_s30 }
  0x4a   : > { %p2342_p0 = scmp.ne.s32.totalorder %s2825_s30, %s2341_s27  ;;  %p2350_p9 = scmp.lt.s32.totalorder %s2341_s27, %s2341_s27 }
  0x4c   : > { %p2344_p2 = pnand %p2342_p0, %p2837_p8  ;;  %p2351_p5 = por %p2350_p9, %p2349_p7 }
  0x4e   : > { %p2345_p4 = pneg %p2344_p2 }
  0x50   : > { %p2352_p10 = pnand %p2351_p5, %p2345_p4 }
  0x52   : > { %2355 = shalt.err (!%p2352_p10)
}
  0x53   : > { %2110 = dma.hbm_to_vmem [thread:$0]  (!%p2821_p6), %s3485_s3, 1024, %s2825_s30, [#allocation12], %s3465_s15, %s3465_s15, %s3467_s16  }
  0x54   : > { %s3486_s5 = sld [smem:[#allocation38_spill]] }
  0x5a   : > { %s2356_s17 = scalar_lea.hbm %s3486_s5, 16 }
  0x5b   : > { %p2357_p11 = scmp.ne.s32.totalorder %s3486_s5, %s2356_s17  ;;  %p2363_p0 = scmp.lt.u32.totalorder %s2356_s17, %s3486_s5 }
  0x5d   : > { %p2359_p12 = pnand %p2357_p11, %p2837_p8 }
  0x5f   : > { %p2360_p13 = pneg %p2359_p12 }
  0x61   : > { %p2365_p2 = pnand %p2363_p0, %p2360_p13 }
  0x63   : > { %2368 = shalt.err (!%p2365_p2)
}
  0x64   : > { %s2369_s27 = scalar_lea.vmem %s398_s13, 16  ;;  %s2376_s30 = scalar_lea.vmem %s398_s13, 32 }
  0x65   : > { %p2370_p4 = scmp.ne.s32.totalorder %s398_s13, %s2369_s27  ;;  %p2377_p5 = scmp.lt.s32.totalorder %s398_s13, %s398_s13 }
  0x66   : > { %p2378_p10 = scmp.lt.s32.totalorder %s2376_s30, %s2369_s27 }
  0x67   : > { %p2372_p7 = pnand %p2370_p4, %p2837_p8 }
  0x68   : > { %p2379_p1 = por %p2378_p10, %p2377_p5 }
  0x69   : > { %p2373_p9 = pneg %p2372_p7 }
  0x6b   : > { %p2380_p3 = pnand %p2379_p1, %p2373_p9 }
  0x6d   : > { %2383 = shalt.err (!%p2380_p3)
}
  0x6e   : > { %2116 = dma.hbm_to_vmem [thread:$0]  (!%p2821_p6), %s3486_s5, 16, %s398_s13, [#allocation15]  }
  0x6f   : > { %s2697_s22 = smov [#allocation17]   ;;  %s2698_s17 = smov [#allocation13]  }
  0x70   : > { %s424_s25 = sshll.u32 %s2697_s22, 4  ;;  %s381_s18 = sshll.u32 %s2698_s17, 4  ;;  %s425_s25 = int_to_ptr.vmem [resolvable:$true] %s424_s25  ;;  %s382_s18 = int_to_ptr.vmem [resolvable:$true] %s381_s18 }
  0x71   : > { %s3487_s7 = sld [smem:[#allocation40_spill]] }
  0x77   : > { %s2384_s14 = scalar_lea.hbm %s3487_s7, 16 }
  0x78   : > { %p2385_p1 = scmp.ne.s32.totalorder %s3487_s7, %s2384_s14  ;;  %p2391_p12 = scmp.lt.u32.totalorder %s2384_s14, %s3487_s7 }
  0x7a   : > { %p2387_p3 = pnand %p2385_p1, %p2837_p8 }
  0x7c   : > { %p2388_p11 = pneg %p2387_p3 }
  0x7e   : > { %p2393_p13 = pnand %p2391_p12, %p2388_p11 }
  0x80   : > { %2396 = shalt.err (!%p2393_p13)
}
  0x81   : > { %s2397_s13 = scalar_lea.vmem %s425_s25, 16  ;;  %s2404_s11 = scalar_lea.vmem %s425_s25, 32 }
  0x82   : > { %p2398_p0 = scmp.ne.s32.totalorder %s425_s25, %s2397_s13  ;;  %p2405_p7 = scmp.lt.s32.totalorder %s425_s25, %s425_s25 }
  0x83   : > { %p2406_p9 = scmp.lt.s32.totalorder %s2404_s11, %s2397_s13 }
  0x84   : > { %p2400_p2 = pnand %p2398_p0, %p2837_p8 }
  0x85   : > { %p2407_p5 = por %p2406_p9, %p2405_p7 }
  0x86   : > { %p2401_p4 = pneg %p2400_p2 }
  0x88   : > { %p2408_p10 = pnand %p2407_p5, %p2401_p4 }
  0x8a   : > { %2411 = shalt.err (!%p2408_p10)
}
  0x8b   : > { %2122 = dma.hbm_to_vmem [thread:$0]  (!%p2821_p6), %s3487_s7, 16, %s425_s25, [#allocation18]  }
  0x8c   : > { %s3488_s4 = sld [smem:[#allocation37_spill]] }
  0x92   : > { %s2412_s12 = scalar_lea.hbm %s3488_s4, 1024 }
  0x93   : > { %p2413_p1 = scmp.ne.s32.totalorder %s3488_s4, %s2412_s12  ;;  %p2419_p12 = scmp.lt.u32.totalorder %s2412_s12, %s3488_s4 }
  0x95   : > { %p2415_p3 = pnand %p2413_p1, %p2837_p8 }
  0x97   : > { %p2416_p11 = pneg %p2415_p3 }
  0x99   : > { %p2421_p13 = pnand %p2419_p12, %p2416_p11 }
  0x9b   : > { %2424 = shalt.err (!%p2421_p13)
}
  0x9c   : > { %s2425_s13 = scalar_lea.vmem %s382_s18, 1024  ;;  %p2433_p7 = scmp.lt.s32.totalorder %s382_s18, %s382_s18 }
  0x9d   : > { %p2426_p0 = scmp.ne.s32.totalorder %s382_s18, %s2425_s13  ;;  %p2434_p9 = scmp.lt.s32.totalorder %s2425_s13, %s2425_s13 }
  0x9f   : > { %p2428_p2 = pnand %p2426_p0, %p2837_p8  ;;  %p2435_p5 = por %p2434_p9, %p2433_p7 }
  0xa1   : > { %p2429_p4 = pneg %p2428_p2 }
  0xa3   : > { %p2436_p10 = pnand %p2435_p5, %p2429_p4 }
  0xa5   : > { %2439 = shalt.err (!%p2436_p10)
}
  0xa6   : > { %s3489_s25 = smov 64   ;;  %s2699_s17 = smov [#allocation16]  }
  0xa7   : > { %2113 = dma.hbm_to_vmem [thread:$0]  (!%p2821_p6), %s3488_s4, 1024, %s382_s18, [#allocation12], %s3489_s25, %s3489_s25, %s3467_s16  }
  0xa8   : > { %s410_s15 = sshll.u32 %s2699_s17, 4  ;;  %s2700_s29 = smov [#allocation19]   ;;  %s411_s15 = int_to_ptr.vmem [resolvable:$true] %s410_s15 }
  0xa9   : > { %s435_s12 = sshll.u32 %s2700_s29, 4  ;;  %s3490_s6 = sld [smem:[#allocation39_spill]]  ;;  %s436_s12 = int_to_ptr.vmem [resolvable:$true] %s435_s12 }
  0xaf   : > { %s2440_s30 = scalar_lea.hbm %s3490_s6, 1024 }
  0xb0   : > { %p2441_p1 = scmp.ne.s32.totalorder %s3490_s6, %s2440_s30  ;;  %p2447_p12 = scmp.lt.u32.totalorder %s2440_s30, %s3490_s6 }
  0xb2   : > { %p2443_p3 = pnand %p2441_p1, %p2837_p8 }
  0xb4   : > { %p2444_p11 = pneg %p2443_p3 }
  0xb6   : > { %p2449_p13 = pnand %p2447_p12, %p2444_p11 }
  0xb8   : > { %2452 = shalt.err (!%p2449_p13)
}
  0xb9   : > { %s2453_s18 = scalar_lea.vmem %s411_s15, 1024  ;;  %p2461_p7 = scmp.lt.s32.totalorder %s411_s15, %s411_s15 }
  0xba   : > { %p2454_p0 = scmp.ne.s32.totalorder %s411_s15, %s2453_s18  ;;  %p2462_p9 = scmp.lt.s32.totalorder %s2453_s18, %s2453_s18 }
  0xbc   : > { %p2456_p2 = pnand %p2454_p0, %p2837_p8  ;;  %p2463_p5 = por %p2462_p9, %p2461_p7 }
  0xbe   : > { %p2457_p4 = pneg %p2456_p2 }
  0xc0   : > { %p2464_p10 = pnand %p2463_p5, %p2457_p4 }
  0xc2   : > { %2467 = shalt.err (!%p2464_p10)
}
  0xc3   : > { %2119 = dma.hbm_to_vmem [thread:$0]  (!%p2821_p6), %s3490_s6, 1024, %s411_s15, [#allocation15], %s3489_s25, %s3489_s25, %s3467_s16  }
  0xc4   : > { %s3491_s8 = sld [smem:[#allocation41_spill]] }
  0xca   : > { %s2468_s14 = scalar_lea.hbm %s3491_s8, 16 }
  0xcb   : > { %p2469_p1 = scmp.ne.s32.totalorder %s3491_s8, %s2468_s14  ;;  %p2475_p12 = scmp.lt.u32.totalorder %s2468_s14, %s3491_s8 }
  0xcd   : > { %p2471_p3 = pnand %p2469_p1, %p2837_p8 }
  0xcf   : > { %p2472_p11 = pneg %p2471_p3 }
  0xd1   : > { %p2477_p13 = pnand %p2475_p12, %p2472_p11 }
  0xd3   : > { %2480 = shalt.err (!%p2477_p13)
}
  0xd4   : > { %s2481_s11 = scalar_lea.vmem %s436_s12, 16  ;;  %s2488_s15 = scalar_lea.vmem %s436_s12, 32 }
  0xd5   : > { %p2482_p0 = scmp.ne.s32.totalorder %s436_s12, %s2481_s11  ;;  %p2489_p7 = scmp.lt.s32.totalorder %s436_s12, %s436_s12 }
  0xd6   : > { %p2490_p9 = scmp.lt.s32.totalorder %s2488_s15, %s2481_s11 }
  0xd7   : > { %p2484_p2 = pnand %p2482_p0, %p2837_p8 }
  0xd8   : > { %p2491_p5 = por %p2490_p9, %p2489_p7 }
  0xd9   : > { %p2485_p4 = pneg %p2484_p2 }
  0xdb   : > { %p2492_p10 = pnand %p2491_p5, %p2485_p4 }
  0xdd   : > { %2495 = shalt.err (!%p2492_p10)
}
  0xde   : > { %2125 = dma.hbm_to_vmem [thread:$0]  (!%p2821_p6), %s3491_s8, 16, %s436_s12, [#allocation18]  }
  0xdf   : > { %s2701_s22 = smov [#allocation20]   ;;  %s2496_s27 = scalar_lea.hbm %s3457_s9, 16 }
  0xe0   : > { %s446_s17 = sshll.u32 %s2701_s22, 4  ;;  %p2497_p1 = scmp.ne.s32.totalorder %s3457_s9, %s2496_s27  ;;  %s447_s17 = int_to_ptr.vmem [resolvable:$true] %s446_s17 }
  0xe1   : > { %p2503_p12 = scmp.lt.u32.totalorder %s2496_s27, %s3457_s9 }
  0xe2   : > { %p2499_p3 = pnand %p2497_p1, %p2837_p8 }
  0xe4   : > { %p2500_p11 = pneg %p2499_p3 }
  0xe6   : > { %p2505_p13 = pnand %p2503_p12, %p2500_p11 }
  0xe8   : > { %2508 = shalt.err (!%p2505_p13)
}
  0xe9   : > { %s2509_s12 = scalar_lea.vmem %s447_s17, 16  ;;  %s2516_s15 = scalar_lea.vmem %s447_s17, 32 }
  0xea   : > { %p2510_p0 = scmp.ne.s32.totalorder %s447_s17, %s2509_s12  ;;  %p2517_p7 = scmp.lt.s32.totalorder %s447_s17, %s447_s17 }
  0xeb   : > { %p2518_p9 = scmp.lt.s32.totalorder %s2516_s15, %s2509_s12 }
  0xec   : > { %p2512_p2 = pnand %p2510_p0, %p2837_p8 }
  0xed   : > { %p2519_p5 = por %p2518_p9, %p2517_p7 }
  0xee   : > { %p2513_p4 = pneg %p2512_p2 }
  0xf0   : > { %p2520_p10 = pnand %p2519_p5, %p2513_p4 }
  0xf2   : > { %2523 = shalt.err (!%p2520_p10)
}
  0xf3   : > { %2128 = dma.hbm_to_vmem [thread:$0]  (!%p2821_p6), %s3457_s9, 16, %s447_s17, [#allocation21]  }
  0xf4   : > { %s1788_s26 = sadd.s32 4294967294, %s2690_s10   ;;  %s47_s22 = sadd.s32 1, %s2686_s23 }
  0xf5   : > { %p49_p8 = scmp.ge.s32.totalorder %s47_s22, 2  ;;  %s54_s28 = sadd.s32 1, %s2678_s21 }
  0xf6   : > { %p61_p1 = scmp.ne.s32.totalorder %s2678_s21, %s2674_s20  ;;  %p62_p3 = scmp.eq.s32.totalorder %s2690_s10, 0 }
  0xf7   : > { %s3525_s22 = smov (%p49_p8, %s47_s22), 0  ;;  %p67_p12 = scmp.ne.s32.totalorder %s2674_s20, %s2670_s19 }
  0xf8   : > { %p3010_p11 = por %p62_p3, %p61_p1  ;;  %s51_s17 = ssub.s32 %s2686_s23, %s3525_s22 }
  0xf9   : > { %p326_p6 = scmp.eq.s32.totalorder %s2805_s24, 1  ;;  %p52_p13 = scmp.eq.s32.totalorder %s51_s17, 0 }
  0xfa   : > { %p3493_p0 = scmp.eq.s32.totalorder %s2805_s24, 0  ;;  %p332_p7 = scmp.eq.s32.totalorder %s1788_s26, 1 }
  0xfb   : > { %p3025_p4 = por %p326_p6, %p61_p1  ;;  %p2148_p5 = scmp.lt.s32.totalorder %s2690_s10, 2 }
  0xfc   : > { %p3021_p2 = por %p3493_p0, %p67_p12  ;;  %p3032_p9 = por %p332_p7, %p67_p12 }
  0xfd   : > { %s3495_s27 = scalar_select %p3025_p4, 1, 0 }
  0xfe   : > { %s3030_s30 = scalar_select %p52_p13, %s2678_s21, %s54_s28  }
  0xff   : > { %s3496_s1 = scalar_select %p3032_p9, 1, 0 }
 0x100   : > { %s3038_s13 = sand.u32 1, %s2678_s21   ;;  %s2063_s11 = smul.u32 768, %s2686_s23 }
 0x101   : > { %s2062_s12 = smul.u32 48, %s3038_s13  ;;  %s3497_s0 = sld [smem:[#allocation33_spill]] }
 0x102   : > { %p3049_p10 = pnand %p2148_p5, %p3010_p11  ;;  %s461_s16 = scalar_lea.sflag [#allocation6], %s3038_s13 }
 0x103   : > { %s464_s28 = scalar_lea.vmem [#allocation5], %s2062_s12 }
 0x104   : > { %s472_s17 = sshll.u32 %s464_s28, 4  ;;  %p2526_p1 = pneg %p3049_p10  ;;  %s3053_s17 = int_to_ptr.vmem [resolvable:$true] %s472_s17 }
 0x107   : > { %s3045_s2 = scalar_lea.hbm %s3497_s0, %s2063_s11  ;;  %s2529_s15 = scalar_lea.hbm %s3497_s0, 1536 }
 0x108   : > { %s2524_s3 = scalar_lea.hbm %s3045_s2, 768  ;;  %p2530_p11 = scmp.lt.u32.totalorder %s3045_s2, %s3497_s0 }
 0x109   : > { %p2525_p8 = scmp.ne.s32.totalorder %s3045_s2, %s2524_s3  ;;  %p2531_p6 = scmp.lt.u32.totalorder %s2529_s15, %s2524_s3 }
 0x10a   : > { %p2533_p0 = scmp.lt.u32.totalorder %s2524_s3, %s3045_s2 }
 0x10b   : > { %p2527_p3 = pnand %p2526_p1, %p2525_p8  ;;  %p2532_p13 = por %p2531_p6, %p2530_p11 }
 0x10d   : > { %p2528_p12 = pneg %p2527_p3  ;;  %p2534_p7 = por %p2533_p0, %p2532_p13 }
 0x10f   : > { %p2535_p5 = pnand %p2534_p7, %p2528_p12 }
 0x111   : > { %2538 = shalt.err (!%p2535_p5)
}
 0x112   : > { %s2539_s12 = scalar_lea.vmem %s3053_s17, 768  ;;  %s2702_s28 = smov [#allocation5]  }
 0x113   : > { %p2540_p8 = scmp.ne.s32.totalorder %s3053_s17, %s2539_s12  ;;  %s2544_s29 = sshll.u32 %s2702_s28, 4  ;;  %s2545_s29 = int_to_ptr.vmem [resolvable:$false] %s2544_s29 }
 0x114   : > { %s2546_s4 = scalar_lea.vmem %s2545_s29, 1536  ;;  %p2547_p4 = scmp.lt.s32.totalorder %s3053_s17, %s2545_s29 }
 0x115   : > { %p2542_p3 = pnand %p2540_p8, %p2526_p1  ;;  %p2548_p11 = scmp.lt.s32.totalorder %s2546_s4, %s2539_s12 }
 0x117   : > { %p2543_p9 = pneg %p2542_p3  ;;  %p2549_p6 = por %p2548_p11, %p2547_p4 }
 0x119   : > { %p2550_p13 = pnand %p2549_p6, %p2543_p9 }
 0x11b   : > { %2553 = shalt.err (!%p2550_p13)
}
 0x11c   : > { %s2703_s3 = smov 128   ;;  %s2704_s11 = smov 8  }
 0x11d   : > { %2132 = dma.hbm_to_vmem [thread:$0]  (!%p3049_p10), %s3045_s2, 768, %s3053_s17, %s461_s16, %s2703_s3, %s2703_s3, %s2704_s11  }
 0x11e   : > { %s482_s15 = sand.u32 1, %s2690_s10   ;;  %s1802_s18 = sshll.u32 %s3038_s13, 7 }
 0x11f   : > { %s1868_s28 = sshll.u32 %s2686_s23, 11  ;;  %s486_s12 = scalar_lea.vmem [#allocation8], %s1802_s18 }
 0x120   : > { %s494_s29 = sshll.u32 %s486_s12, 4  ;;  %s3499_s5 = sld [smem:[#allocation34_spill]]  ;;  %s3091_s29 = int_to_ptr.vmem [resolvable:$true] %s494_s29 }
 0x121   : > { %s3093_s7 = scalar_lea.sflag [#allocation9], %s482_s15 }
 0x126   : > { %s3089_s6 = scalar_lea.hbm %s3499_s5, %s1868_s28  ;;  %s2559_s0 = scalar_lea.hbm %s3499_s5, 4096 }
 0x127   : > { %s2554_s8 = scalar_lea.hbm %s3089_s6, 2048  ;;  %p2560_p0 = scmp.lt.u32.totalorder %s3089_s6, %s3499_s5 }
 0x128   : > { %p2555_p4 = scmp.ne.s32.totalorder %s3089_s6, %s2554_s8  ;;  %p2561_p7 = scmp.lt.u32.totalorder %s2559_s0, %s2554_s8 }
 0x129   : > { %p2563_p8 = scmp.lt.u32.totalorder %s2554_s8, %s3089_s6 }
 0x12a   : > { %p2557_p9 = pnand %p2555_p4, %p2526_p1  ;;  %p2562_p5 = por %p2561_p7, %p2560_p0 }
 0x12c   : > { %p2558_p12 = pneg %p2557_p9  ;;  %p2564_p3 = por %p2563_p8, %p2562_p5 }
 0x12e   : > { %p2565_p11 = pnand %p2564_p3, %p2558_p12 }
 0x130   : > { %2568 = shalt.err (!%p2565_p11)
}
 0x131   : > { %s2569_s3 = scalar_lea.vmem %s3091_s29, 2048  ;;  %s2705_s11 = smov [#allocation8]  }
 0x132   : > { %p2570_p6 = scmp.ne.s32.totalorder %s3091_s29, %s2569_s3  ;;  %s2574_s15 = sshll.u32 %s2705_s11, 4  ;;  %s2575_s15 = int_to_ptr.vmem [resolvable:$false] %s2574_s15 }
 0x133   : > { %s2576_s18 = scalar_lea.vmem %s2575_s15, 4096  ;;  %p2577_p9 = scmp.lt.s32.totalorder %s3091_s29, %s2575_s15 }
 0x134   : > { %p2572_p13 = pnand %p2570_p6, %p2526_p1  ;;  %p2578_p0 = scmp.lt.s32.totalorder %s2576_s18, %s2569_s3 }
 0x136   : > { %p2573_p4 = pneg %p2572_p13  ;;  %p2579_p7 = por %p2578_p0, %p2577_p9 }
 0x138   : > { %p2580_p5 = pnand %p2579_p7, %p2573_p4 }
 0x13a   : > { %2583 = shalt.err (!%p2580_p5)
}
 0x13b   : > { %s3500_s8 = smov 4   ;;  %s3501_s28 = sld [smem:[#allocation32_spill]] }
 0x13c   : > { %2135 = dma.hbm_to_vmem [thread:$0]  (!%p3049_p10), %s3089_s6, 2048, %s3091_s29, %s3093_s7, %s3489_s25, %s3489_s25, %s3500_s8  }
 0x141   : > { %p3502_p1 = scmp.ne.s32.totalorder %s3501_s28, 0 }
 0x142   : > { %s3125_s12 = sand.u32 (!%p3502_p1), 1, %s2674_s20  }
 0x143   : > { %506 = sbr.rel (%p3502_p1) target bundleno = 1325 (0x52d), region = 64  ;;  %s509_s16 = scalar_lea.sflag (!%p3502_p1), [#allocation6], %s3125_s12 }
 0x144   : > { %s2064_s4 = smul.u32 (!%p3502_p1), 48, %s3125_s12 }
 0x146   : > { %s3131_s26 = scalar_lea.vmem (!%p3502_p1), [#allocation5], %s2064_s4 }
 0x14a   : > { %2637 = dma.done.wait (%p3021_p2), %s509_s16, 768  }
 0x14b   : > { %2639 = vsyncadd (%p3021_p2), %s509_s16, 4294966528  ;;  %s517_s6 = sand.u32 1, %s2805_s24   ;;  %s1807_s7 = sshll.u32 %s3125_s12, 7 }
 0x14c   : > { %s518_s25 = scalar_lea.sflag [#allocation9], %s517_s6  ;;  %s3139_s29 = scalar_lea.vmem [#allocation8], %s1807_s7 }
 0x14d   : > { %2641 = dma.done.wait (%p3021_p2), %s518_s25, 2048  }
 0x14e   : > { %2643 = vsyncadd (%p3021_p2), %s518_s25, 4294965248  ;;  %p3503_p10 = scmp.eq.s32.totalorder %s2805_s24, 0 }
 0x150   : > { %2645 = dma.done.wait (%p3503_p10), [#allocation9], 192   ;;  %p3504_p12 = pmov %p3503_p10 }
 0x151   : > { %p3505_p8 = pmov %p3503_p10 }
 0x152   : > { %2647 = vsyncadd (%p3504_p12), [#allocation9], 4294967104 }
 0x153   : > { %2649 = dma.done.wait (%p3505_p8), [#allocation12], 2048   ;;  %p3506_p3 = pmov %p3505_p8 }
 0x155   : > { %2651 = vsyncadd (%p3506_p3), [#allocation12], 4294965248  ;;  %p3507_p11 = pmov %p3506_p3 }
 0x156   : > { %p3508_p6 = pmov %p3506_p3 }
 0x157   : > { %2653 = dma.done.wait (%p3507_p11), [#allocation15], 1040  }
 0x158   : > { %2655 = vsyncadd (%p3508_p6), [#allocation15], 4294966256  ;;  %p3509_p2 = pmov %p3506_p3 }
 0x15a   : > { %2657 = dma.done.wait (%p3509_p2), [#allocation18], 32   ;;  %p3510_p13 = pmov %p3509_p2 }
 0x15b   : > { %p3511_p4 = pmov %p3509_p2 }
 0x15c   : > { %2659 = vsyncadd (%p3510_p13), [#allocation18], 4294967264 }
 0x15d   : > { %2661 = dma.done.wait (%p3511_p4), [#allocation21], 16   ;;  %p3512_p9 = pmov %p3509_p2 }
 0x15e   : > { %v2222_v0 = vld [vmem:[%s3139_s29] sm:$0xff]   ;;  %v2224_v2 = vld [vmem:[%s3139_s29 + $0x8] sm:$0xff]   ;;  %v2226_v4 = vld [vmem:[%s3139_s29 + $0x10] sm:$0xff]   ;;  %v2706_v17 = vmov 0.0   ;;  %vm2707_vm0 = vmmov 0   ;;  %s1454_s24 = sld [smem:[#allocation4]] }
 0x15f   : > { %2663 = vsyncadd (%p3512_p9), [#allocation21], 4294967280  ;;  %v2223_v1 = vld [vmem:[%s3139_s29 + $0x40] sm:$0xff]   ;;  %1922 = vmatprep.subr.bf16.mxu0 %v2222_v0  ;;  %v2225_v3 = vld [vmem:[%s3139_s29 + $0x48] sm:$0xff]   ;;  %s3381_s14 = scalar_lea.vmem [#allocation22], %s2064_s4  ;;  %s3513_s13 = sld [smem:[#allocation31_spill]] }
 0x160   : > { %1942 = vmatprep.subr.bf16.mxu1 %v2223_v1  ;;  %1923 = vmatpush3.bf16.xpose.msra.mxu0 %v2222_v0  ;;  %v2227_v5 = vld [vmem:[%s3139_s29 + $0x50] sm:$0xff]   ;;  %v2228_v6 = vld [vmem:[%s3139_s29 + $0x18] sm:$0xff]   ;;  %v2238_v7 = vld [vmem:[#allocation10] sm:$0xff]   ;;  %s1599_s2 = sshll.u32 %s3381_s14, 4  ;;  %s3514_s11 = sld [smem:[#allocation42_spill]]  ;;  %s3398_s2 = int_to_ptr.vmem [resolvable:$true] %s1599_s2 }
 0x161   : > { %1943 = vmatpush3.bf16.xpose.msra.mxu1 %v2223_v1  ;;  %1924 = vmatprep.subr.bf16.mxu0 %v2224_v2  ;;  %v2229_v8 = vld [vmem:[%s3139_s29 + $0x58] sm:$0xff]   ;;  %v2230_v9 = vld [vmem:[%s3139_s29 + $0x20] sm:$0xff]   ;;  %v2232_v11 = vld [vmem:[%s3139_s29 + $0x28] sm:$0xff]   ;;  %s1585_s18 = scalar_lea.sflag [#allocation7], %s3125_s12  ;;  %s2584_s8 = scalar_lea.vmem %s3398_s2, 768 }
 0x162   : > { %1944 = vmatprep.subr.bf16.mxu1 %v2225_v3  ;;  %1938 = vmatprep.mubr.bf16.mxu0 %v2238_v7  ;;  %v2231_v10 = vld [vmem:[%s3139_s29 + $0x60] sm:$0xff]   ;;  %v2233_v12 = vld [vmem:[%s3139_s29 + $0x68] sm:$0xff]   ;;  %v2234_v13 = vld [vmem:[%s3139_s29 + $0x30] sm:$0xff]   ;;  %p2585_p0 = scmp.ne.s32.totalorder %s3398_s2, %s2584_s8  ;;  %p3515_p7 = scmp.ne.s32.totalorder %s3495_s27, 0 }
 0x163   : > { %1958 = vmatprep.mubr.bf16.mxu1 %v2238_v7  ;;  %v2235_v14 = vld [vmem:[%s3139_s29 + $0x70] sm:$0xff]   ;;  %v2236_v15 = vld [vmem:[%s3139_s29 + $0x38] sm:$0xff]   ;;  %v2239_v18 = vld [vmem:[#allocation10 + $0x8] ss:$0 sps:$4 sm:$0xff]   ;;  %s2708_s28 = smov [#allocation22]  }
 0x164   : > { %v2237_v16 = vld [vmem:[%s3139_s29 + $0x78] sm:$0xff]   ;;  %v2241_v19 = vld [vmem:[#allocation13] sm:$0xff]   ;;  %v2247_v25 = vld [vmem:[#allocation13 + $0x18] sm:$0xff]   ;;  %p2586_p5 = pnand %p2585_p0, %p3515_p7  ;;  %s2588_s4 = sshll.u32 %s2708_s28, 4  ;;  %s2589_s4 = int_to_ptr.vmem [resolvable:$false] %s2588_s4 }
 0x165   : > { %v2240_v20 = vld [vmem:[#allocation11] sm:$0xff]   ;;  %v2243_v21 = vld [vmem:[#allocation13 + $0x8] sm:$0xff]   ;;  %v2245_v23 = vld [vmem:[#allocation13 + $0x10] sm:$0xff]   ;;  %s2065_s0 = smul.u32 768, %s3513_s13  ;;  %s2590_s16 = scalar_lea.vmem %s2589_s4, 1536 }
 0x166   : > { %v2242_v22 = vld [vmem:[#allocation11 + $0x8] sm:$0xff]   ;;  %v2244_v24 = vld [vmem:[#allocation11 + $0x10] sm:$0xff]   ;;  %v2246_v26 = vld [vmem:[#allocation11 + $0x18] sm:$0xff]   ;;  %p2587_p1 = pneg %p2586_p5  ;;  %p2591_p10 = scmp.lt.s32.totalorder %s3398_s2, %s2589_s4 }
 0x167   : > { %v2249_v27 = vld [vmem:[#allocation13 + $0x20] sm:$0xff]   ;;  %v2251_v29 = vld [vmem:[#allocation13 + $0x28] sm:$0xff]   ;;  %v2253_v31 = vld [vmem:[#allocation13 + $0x30] sm:$0xff]   ;;  %s3396_s15 = scalar_lea.hbm %s3514_s11, %s2065_s0  ;;  %p2592_p12 = scmp.lt.s32.totalorder %s2590_s16, %s2584_s8 }
 0x168   : > { %1925 = vmatpush3.bf16.xpose.msra.mxu0 %v2224_v2  ;;  %v2248_v28 = vld [vmem:[#allocation11 + $0x20] sm:$0xff]   ;;  %v2250_v30 = vld [vmem:[#allocation11 + $0x28] sm:$0xff]   ;;  %v2252_v32 = vld [vmem:[#allocation11 + $0x30] sm:$0xff]  }
 0x169   : > { %1945 = vmatpush3.bf16.xpose.msra.mxu1 %v2225_v3  ;;  %1926 = vmatprep.subr.bf16.mxu0 %v2226_v4  ;;  %v2254_v33 = vld [vmem:[#allocation11 + $0x38] sm:$0xff]   ;;  %v2256_v3 = vld [vmem:[#allocation16] sm:$0xff]   ;;  %p2593_p8 = por %p2592_p12, %p2591_p10 }
 0x16a   : > { %1946 = vmatprep.subr.bf16.mxu1 %v2227_v5  ;;  %v3198_v34 = vld [vmem:[%s3131_s26] sm:$0xff]  ;;  %v3201_v35 = vld [vmem:[%s3131_s26 + $0x8] sm:$0xff]  ;;  %v3214_v38 = vld [vmem:[%s3131_s26 + $0x10] sm:$0xff] }
 0x16b   : > { %v2255_v36 = vld [vmem:[#allocation13 + $0x38] sm:$0xff]   ;;  %v861_v37 = vpack.c.bf16 %v3201_v35, %v3198_v34  ;;  %v2260_v7 = vld [vmem:[#allocation16 + $0x20] sm:$0xff]   ;;  %p2594_p3 = pnand %p2593_p8, %p2587_p1 }
 0x16c   : > { %v3217_v39 = vld [vmem:[%s3131_s26 + $0x18] sm:$0xff]  ;;  %v3224_v41 = vld [vmem:[%s3131_s26 + $0x20] sm:$0xff]  ;;  %v3227_v42 = vld [vmem:[%s3131_s26 + $0x28] sm:$0xff] }
 0x16d   : > { %v862_v40 = vpack.c.bf16 %v3217_v39, %v3214_v38  ;;  %v863_v43 = vpack.c.bf16 %v3227_v42, %v3224_v41 }
 0x170   : > { %1927 = vmatpush3.bf16.xpose.msra.mxu0 %v2226_v4  ;;  %v2257_v4 = vld [vmem:[#allocation16 + $0x8] sm:$0xff]  }
 0x171   : > { %1947 = vmatpush3.bf16.xpose.msra.mxu1 %v2227_v5  ;;  %1928 = vmatprep.subr.bf16.mxu0 %v2228_v6  ;;  %v2258_v5 = vld [vmem:[#allocation16 + $0x10] sm:$0xff]  }
 0x172   : > { %1948 = vmatprep.subr.bf16.mxu1 %v2229_v8 }
 0x178   : > { %1929 = vmatpush3.bf16.xpose.msra.mxu0 %v2228_v6  ;;  %v2259_v6 = vld [vmem:[#allocation16 + $0x18] sm:$0xff]  }
 0x179   : > { %1949 = vmatpush3.bf16.xpose.msra.mxu1 %v2229_v8  ;;  %1930 = vmatprep.subr.bf16.mxu0 %v2230_v9  ;;  %v2261_v8 = vld [vmem:[#allocation16 + $0x28] sm:$0xff]  }
 0x17a   : > { %1950 = vmatprep.subr.bf16.mxu1 %v2231_v10 }
 0x180   : > { %1931 = vmatpush3.bf16.xpose.msra.mxu0 %v2230_v9  ;;  %v2262_v9 = vld [vmem:[#allocation16 + $0x30] sm:$0xff]  }
 0x181   : > { %1951 = vmatpush3.bf16.xpose.msra.mxu1 %v2231_v10  ;;  %1932 = vmatprep.subr.bf16.mxu0 %v2232_v11  ;;  %v2263_v10 = vld [vmem:[#allocation16 + $0x38] sm:$0xff]  }
 0x182   : > { %1952 = vmatprep.subr.bf16.mxu1 %v2233_v12 }
 0x188   : > { %1933 = vmatpush3.bf16.xpose.msra.mxu0 %v2232_v11 }
 0x189   : > { %1953 = vmatpush3.bf16.xpose.msra.mxu1 %v2233_v12  ;;  %1934 = vmatprep.subr.bf16.mxu0 %v2234_v13  ;;  %v1850_v12 = vld [vmem:[#allocation14] ss:$0 sm:$0xff] }
 0x18a   : > { %1954 = vmatprep.subr.bf16.mxu1 %v2235_v14 }
 0x190   : > { %1935 = vmatpush3.bf16.xpose.msra.mxu0 %v2234_v13 }
 0x191   : > { %1955 = vmatpush3.bf16.xpose.msra.mxu1 %v2235_v14  ;;  %1936 = vmatprep.subr.bf16.mxu0 %v2236_v15 }
 0x192   : > { %1956 = vmatprep.subr.bf16.mxu1 %v2237_v16 }
 0x198   : > { %1937 = vmatpush3.bf16.xpose.msra.mxu0 %v2236_v15 }
 0x199   : > { %1957 = vmatpush3.bf16.xpose.msra.mxu1 %v2237_v16  ;;  %1962 = vmatprep.subr.bf16.mxu0 %v2706_v17 }
 0x19a   : > { %1990 = vmatprep.subr.bf16.mxu1 %v2706_v17 }
 0x19f   : > { %1939 = vmatmul.mubr.bf16.vlgmr.msra.gmra.mrb[0].mxu0 %v2239_v18 }
 0x1a0   : > { %1959 = vmatmul.mubr.bf16.vlgmr.msra.gmra.mrb[0].mxu1 %v2239_v18  ;;  %1963 = vmatpush3.bf16.msra.mxu0 %v2241_v19 }
 0x1a1   : > { %1991 = vmatpush3.bf16.msra.mxu1 %v2240_v20  ;;  %1964 = vmatprep.subr.bf16.mxu0 %v2706_v17 }
 0x1a2   : > { %1992 = vmatprep.subr.bf16.mxu1 %v2706_v17  ;;  %2006 = vmatprep.mubr.msk.bf16.mxu1 %vm2707_vm0, %v2706_v17 }
 0x1a3   : > { %1978 = vmatprep.mubr.msk.bf16.mxu0 %vm2707_vm0, %v2706_v17 }
 0x1a4   : > { %1965 = vmatpush3.bf16.msra.mxu0 %v2243_v21 }
 0x1a5   : > { %1993 = vmatpush3.bf16.msra.mxu1 %v2242_v22  ;;  %1966 = vmatprep.subr.bf16.mxu0 %v2706_v17 }
 0x1a6   : > { %1994 = vmatprep.subr.bf16.mxu1 %v2706_v17 }
 0x1a8   : > { %1967 = vmatpush3.bf16.msra.mxu0 %v2245_v23 }
 0x1a9   : > { %1995 = vmatpush3.bf16.msra.mxu1 %v2244_v24  ;;  %1968 = vmatprep.subr.bf16.mxu0 %v2706_v17 }
 0x1aa   : > { %1996 = vmatprep.subr.bf16.mxu1 %v2706_v17 }
 0x1ac   : > { %1969 = vmatpush3.bf16.msra.mxu0 %v2247_v25 }
 0x1ad   : > { %1997 = vmatpush3.bf16.msra.mxu1 %v2246_v26  ;;  %1970 = vmatprep.subr.bf16.mxu0 %v2706_v17 }
 0x1ae   : > { %1998 = vmatprep.subr.bf16.mxu1 %v2706_v17 }
 0x1b0   : > { %1971 = vmatpush3.bf16.msra.mxu0 %v2249_v27 }
 0x1b1   : > { %1999 = vmatpush3.bf16.msra.mxu1 %v2248_v28  ;;  %1972 = vmatprep.subr.bf16.mxu0 %v2706_v17 }
 0x1b2   : > { %2000 = vmatprep.subr.bf16.mxu1 %v2706_v17 }
 0x1b4   : > { %1973 = vmatpush3.bf16.msra.mxu0 %v2251_v29 }
 0x1b5   : > { %2001 = vmatpush3.bf16.msra.mxu1 %v2250_v30  ;;  %1974 = vmatprep.subr.bf16.mxu0 %v2706_v17 }
 0x1b6   : > { %2002 = vmatprep.subr.bf16.mxu1 %v2706_v17 }
 0x1b8   : > { %1975 = vmatpush3.bf16.msra.mxu0 %v2253_v31 }
 0x1b9   : > { %2003 = vmatpush3.bf16.msra.mxu1 %v2252_v32  ;;  %1976 = vmatprep.subr.bf16.mxu0 %v2706_v17 }
 0x1ba   : > { %2004 = vmatprep.subr.bf16.mxu1 %v2706_v17 }
 0x1bc   : > { %1977 = vmatpush3.bf16.msra.mxu0 %v2255_v36 }
 0x1bd   : > { %2005 = vmatpush3.bf16.msra.mxu1 %v2254_v33  ;;  %2018 = vmatprep.subr.bf16.mxu0 %v2706_v17 }
 0x1be   : > { %2046 = vmatprep.subr.bf16.mxu1 %v2706_v17 }
 0x1c0   : > { %2007 = vmatmul.mubr.bf16.vlgmr.msra.gmra.mrb[4].mxu1 %v861_v37 }
 0x1c1   : > { %2010 = vmatprep.mubr.msk.bf16.mxu1 %vm2707_vm0, %v2706_v17  ;;  %2054 = vmatpush3.bf16.msra.mxu1 %v2256_v3 }
 0x1c2   : > { %2047 = vmatprep.subr.bf16.mxu1 %v2706_v17 }
 0x1c5   : > { %2055 = vmatpush3.bf16.msra.mxu1 %v2257_v4 }
 0x1c6   : > { %2048 = vmatprep.subr.bf16.mxu1 %v2706_v17 }
 0x1c8   : > { %2011 = vmatmul.mubr.bf16.gmra.mrb[8].mxu1 %v862_v40 }
 0x1c9   : > { %2014 = vmatprep.mubr.msk.bf16.mxu1 %vm2707_vm0, %v2706_v17  ;;  %2056 = vmatpush3.bf16.msra.mxu1 %v2258_v5 }
 0x1ca   : > { %2049 = vmatprep.subr.bf16.mxu1 %v2706_v17 }
 0x1cd   : > { %2057 = vmatpush3.bf16.msra.mxu1 %v2259_v6 }
 0x1ce   : > { %2050 = vmatprep.subr.bf16.mxu1 %v2706_v17 }
 0x1d0   : > { %2015 = vmatmul.mubr.bf16.gmra.mrb[12].mxu1 %v863_v43 }
 0x1d1   : > { %2038 = vmatprep.mubr.msk.bf16.mxu1 %vm2707_vm0, %v2706_v17  ;;  %2058 = vmatpush3.bf16.msra.mxu1 %v2260_v7 }
 0x1d2   : > { %2051 = vmatprep.subr.bf16.mxu1 %v2706_v17 }
 0x1d5   : > { %2059 = vmatpush3.bf16.msra.mxu1 %v2261_v8 }
 0x1d6   : > { %2052 = vmatprep.subr.bf16.mxu1 %v2706_v17 }
 0x1d9   : > { %2060 = vmatpush3.bf16.msra.mxu1 %v2262_v9 }
 0x1da   : > { %2053 = vmatprep.subr.bf16.mxu1 %v2706_v17 }
 0x1dd   : > { %2061 = vmatpush3.bf16.msra.mxu1 %v2263_v10 }
 0x272   : > { %v1940_v44 = vpop.f32.mrb[0].mxu0 }
 0x273   : > { %v1960_v45 = vpop.f32.mrb[0].mxu1  ;;  %v733_v46 = vpop.f32.mrb[1].mxu0 }
 0x274   : > { %v829_v47 = vpop.f32.mrb[1].mxu1  ;;  %v1941_v48 = vpop.f32.mrb[2].mxu0 }
 0x275   : > { %v844_v49 = vpack.c.bf16 %v829_v47, %v1940_v44  ;;  %v736_v50 = vpop.f32.mrb[3].mxu0  ;;  %v1961_v51 = vpop.f32.mrb[2].mxu1 }
 0x276   : > { %v843_v52 = vpack.c.bf16 %v736_v50, %v733_v46  ;;  %v832_v53 = vpop.f32.mrb[3].mxu1 }
 0x277   : > { %v845_v54 = vpack.c.bf16 %v1960_v45, %v832_v53 }
 0x278   : > { %1979 = vmatmul.mubr.bf16.vlgmr.msra.gmra.mrb[4].mxu0 %v843_v52 }
 0x279   : > { %1982 = vmatprep.mubr.msk.bf16.mxu0 %vm2707_vm0, %v2706_v17  ;;  %2019 = vmatpush3.bf16.msra.mxu0 %v2256_v3 }
 0x27a   : > { %2020 = vmatprep.subr.bf16.mxu0 %v2706_v17 }
 0x27d   : > { %2021 = vmatpush3.bf16.msra.mxu0 %v2257_v4 }
 0x27e   : > { %2022 = vmatprep.subr.bf16.mxu0 %v2706_v17 }
 0x280   : > { %1983 = vmatmul.mubr.bf16.gmra.mrb[8].mxu0 %v844_v49 }
 0x281   : > { %1986 = vmatprep.mubr.msk.bf16.mxu0 %vm2707_vm0, %v2706_v17  ;;  %2023 = vmatpush3.bf16.msra.mxu0 %v2258_v5 }
 0x282   : > { %2024 = vmatprep.subr.bf16.mxu0 %v2706_v17 }
 0x285   : > { %2025 = vmatpush3.bf16.msra.mxu0 %v2259_v6 }
 0x286   : > { %2026 = vmatprep.subr.bf16.mxu0 %v2706_v17 }
 0x288   : > { %1987 = vmatmul.mubr.bf16.gmra.mrb[12].mxu0 %v845_v54 }
 0x289   : > { %2034 = vmatprep.mubr.msk.bf16.mxu0 %vm2707_vm0, %v2706_v17  ;;  %2027 = vmatpush3.bf16.msra.mxu0 %v2260_v7 }
 0x28a   : > { %2028 = vmatprep.subr.bf16.mxu0 %v2706_v17 }
 0x28d   : > { %2029 = vmatpush3.bf16.msra.mxu0 %v2261_v8 }
 0x28e   : > { %2030 = vmatprep.subr.bf16.mxu0 %v2706_v17 }
 0x291   : > { %2031 = vmatpush3.bf16.msra.mxu0 %v2262_v9 }
 0x292   : > { %2032 = vmatprep.subr.bf16.mxu0 %v2706_v17 }
 0x293   : > { %v1086_v55 = vpop.f32.mrb[4].mxu1 }
 0x294   : > { %v2008_v56 = vpop.f32.mrb[5].mxu1 }
 0x295   : > { %v1089_v57 = vpop.f32.mrb[6].mxu1  ;;  %2033 = vmatpush3.bf16.msra.mxu0 %v2263_v10 }
 0x296   : > { %v2009_v58 = vpop.f32.mrb[7].mxu1 }
 0x29b   : > { %v1094_v59 = vpop.f32.mrb[8].mxu1 }
 0x29c   : > { %v2012_v60 = vpop.f32.mrb[9].mxu1 }
 0x29d   : > { %v3239_v61 = vpop.f32.mrb[10].mxu1 }
 0x29e   : > { %v2013_v62 = vpop.f32.mrb[11].mxu1 }
 0x2a3   : > { %v3241_v63 = vpop.f32.mrb[12].mxu1 }
 0x2a4   : > { %v2016_v0 = vpop.f32.mrb[13].mxu1 }
 0x2a5   : > { %v3243_v1 = vpop.f32.mrb[14].mxu1 }
 0x2a6   : > { %v2017_v2 = vpop.f32.mrb[15].mxu1 }
 0x34b   : > { %v981_v11 = vpop.f32.mrb[4].mxu0 }
 0x34c   : > { %v1087_v13 = vadd.f32 %v1086_v55, %v981_v11  ;;  %v1980_v14 = vpop.f32.mrb[5].mxu0 }
 0x34d   : > { %v984_v15 = vpop.f32.mrb[6].mxu0 }
 0x34e   : > { %v3259_v16 = vadd.f32 %v1850_v12, %v1087_v13  ;;  %v1090_v18 = vadd.f32 %v1089_v57, %v984_v15  ;;  %v1981_v19 = vpop.f32.mrb[7].mxu0 }
 0x350   : > { %v3262_v20 = vmul.f32 0.70710677, %v3259_v16  ;;  %v3264_v21 = vadd.f32 %v1850_v12, %v1090_v18 }
 0x352   : > { %v1128_v22 = vand.u32 2147483647, %v3262_v20  ;;  %v3268_v23 = vmul.f32 0.70710677, %v3264_v21  ;;  %vm1248_vm1 = vcmp.ge.f32.partialorder %v3262_v20, 0.0 }
 0x353   : > { %v989_v24 = vpop.f32.mrb[8].mxu0 }
 0x354   : > { %v1134_v25 = vmul.f32 0.3275911, %v1128_v22  ;;  %v1129_v26 = vand.u32 2147483647, %v3268_v23  ;;  %v1095_v27 = vadd.f32 %v1094_v59, %v989_v24  ;;  %v1984_v28 = vpop.f32.mrb[9].mxu0  ;;  %v1212_v49 = vsub.f32 0.0, %v1128_v22 }
 0x355   : > { %v992_v31 = vpop.f32.mrb[10].mxu0  ;;  %vm1249_vm2 = vcmp.ge.f32.partialorder %v3268_v23, 0.0 }
 0x356   : > { %v1140_v29 = vadd.f32 1.0, %v1134_v25  ;;  %v1135_v30 = vmul.f32 0.3275911, %v1129_v26  ;;  %v3271_v32 = vadd.f32 %v1850_v12, %v1095_v27  ;;  %v1098_v33 = vadd.f32 %v3239_v61, %v992_v31  ;;  %v1985_v36 = vpop.f32.mrb[11].mxu0 }
 0x357   : > { %v1218_v59 = vmul.f32 %v1212_v49, %v1128_v22  ;;  %v1213_v60 = vsub.f32 0.0, %v1129_v26 }
 0x358   : > { %2264 = vrcp.f32 %v1140_v29  ;;  %v1141_v37 = vadd.f32 1.0, %v1135_v30  ;;  %v3275_v40 = vmul.f32 0.70710677, %v3271_v32  ;;  %v3277_v43 = vadd.f32 %v1850_v12, %v1098_v33 }
 0x359   : > { %v1224_v7 = vmul.f32 1.442695, %v1218_v59  ;;  %v1219_v8 = vmul.f32 %v1213_v60, %v1129_v26 }
 0x35a   : > { %2266 = vrcp.f32 %v1141_v37  ;;  %v1130_v44 = vand.u32 2147483647, %v3275_v40  ;;  %v3281_v45 = vmul.f32 0.70710677, %v3277_v43  ;;  %vm1250_vm3 = vcmp.ge.f32.partialorder %v3275_v40, 0.0 }
 0x35b   : > { %v997_v46 = vpop.f32.mrb[12].mxu0  ;;  %v1226_v18 = vmul.f32 1.442695, %v1219_v8  ;;  %v1268_v40 = vmul.f32 0.5, %v3271_v32 }
 0x35c   : > { %v1103_v47 = vadd.f32 %v3241_v63, %v997_v46  ;;  %v1988_v48 = vpop.f32.mrb[13].mxu0  ;;  %v1136_v50 = vmul.f32 0.3275911, %v1130_v44  ;;  %v1131_v51 = vand.u32 2147483647, %v3281_v45  ;;  %v1214_v13 = vsub.f32 0.0, %v1130_v44 }
 0x35d   : > { %v1000_v53 = vpop.f32.mrb[14].mxu0  ;;  %vm1251_vm4 = vcmp.ge.f32.partialorder %v3281_v45, 0.0 }
 0x35e   : > { %v3285_v52 = vadd.f32 %v1850_v12, %v1103_v47  ;;  %v1142_v54 = vadd.f32 1.0, %v1136_v50  ;;  %v1137_v55 = vmul.f32 0.3275911, %v1131_v51  ;;  %v1989_v56 = vpop.f32.mrb[15].mxu0  ;;  %v1106_v58 = vadd.f32 %v3243_v1, %v1000_v53 }
 0x35f   : > { %v1215_v22 = vsub.f32 0.0, %v1131_v51  ;;  %v1220_v28 = vmul.f32 %v1214_v13, %v1130_v44 }
 0x360   : > { %v3288_v57 = vmul.f32 0.70710677, %v3285_v52  ;;  %2268 = vrcp.f32 %v1142_v54  ;;  %v1143_v61 = vadd.f32 1.0, %v1137_v55  ;;  %v3292_v0 = vadd.f32 %v1850_v12, %v1106_v58 }
 0x361   : > { %v1221_v37 = vmul.f32 %v1215_v22, %v1131_v51  ;;  %v1228_v48 = vmul.f32 1.442695, %v1220_v28 }
 0x362   : > { %v2265_v62 = vpop.eup %2264  ;;  %v1132_v63 = vand.u32 2147483647, %v3288_v57  ;;  %2270 = vrcp.f32 %v1143_v61  ;;  %v3295_v4 = vmul.f32 0.70710677, %v3292_v0  ;;  %vm1252_vm5 = vcmp.ge.f32.partialorder %v3288_v57, 0.0 }
 0x363   : > { %v1158_v2 = vmul.f32 1.0614054, %v2265_v62  ;;  %v1230_v60 = vmul.f32 1.442695, %v1221_v37 }
 0x364   : > { %v1138_v3 = vmul.f32 0.3275911, %v1132_v63  ;;  %v2267_v5 = vpop.eup %2266  ;;  %v1133_v10 = vand.u32 2147483647, %v3295_v4  ;;  %v1216_v46 = vsub.f32 0.0, %v1132_v63  ;;  %vm1253_vm6 = vcmp.ge.f32.partialorder %v3295_v4, 0.0 }
 0x365   : > { %v1164_v6 = vadd.f32 -1.4531521, %v1158_v2  ;;  %v1159_v1 = vmul.f32 1.0614054, %v2267_v5 }
 0x366   : > { %v1144_v9 = vadd.f32 1.0, %v1138_v3  ;;  %v1139_v12 = vmul.f32 0.3275911, %v1133_v10  ;;  %v1217_v44 = vsub.f32 0.0, %v1133_v10  ;;  %v1222_v61 = vmul.f32 %v1216_v46, %v1132_v63 }
 0x367   : > { %v1170_v11 = vmul.f32 %v2265_v62, %v1164_v6  ;;  %v1165_v14 = vadd.f32 -1.4531521, %v1159_v1 }
 0x368   : > { %2272 = vrcp.f32 %v1144_v9  ;;  %v1145_v24 = vadd.f32 1.0, %v1139_v12  ;;  %v1223_v1 = vmul.f32 %v1217_v44, %v1133_v10  ;;  %v1232_v63 = vmul.f32 1.442695, %v1222_v61 }
 0x369   : > { %v1176_v15 = vadd.f32 1.4214138, %v1170_v11  ;;  %2274 = vpow2.f32 %v1224_v7  ;;  %v1171_v19 = vmul.f32 %v2267_v5, %v1165_v14  ;;  %v1267_v61 = vmul.f32 0.5, %v3264_v21 }
 0x36a   : > { %v3298_v25 = vpop.eup %2268  ;;  %2276 = vrcp.f32 %v1145_v24  ;;  %v1234_v28 = vmul.f32 1.442695, %v1223_v1 }
 0x36b   : > { %v1182_v27 = vmul.f32 %v2265_v62, %v1176_v15  ;;  %v1177_v26 = vadd.f32 1.4214138, %v1171_v19  ;;  %v1160_v29 = vmul.f32 1.0614054, %v3298_v25  ;;  %2278 = vpow2.f32 %v1226_v18 }
 0x36c   : > { %v3301_v31 = vpop.eup %2270  ;;  %2280 = vpow2.f32 %v1228_v48  ;;  %v1266_v48 = vmul.f32 0.5, %v3259_v16 }
 0x36d   : > { %v1188_v30 = vadd.f32 -0.28449672, %v1182_v27  ;;  %v1183_v33 = vmul.f32 %v2267_v5, %v1177_v26  ;;  %v1166_v36 = vadd.f32 -1.4531521, %v1160_v29  ;;  %v1161_v49 = vmul.f32 1.0614054, %v3301_v31 }
 0x36e   : > { %2282 = vpow2.f32 %v1230_v60 }
 0x36f   : > { %v1194_v47 = vmul.f32 %v2265_v62, %v1188_v30  ;;  %v1189_v50 = vadd.f32 -0.28449672, %v1183_v33  ;;  %v1172_v53 = vmul.f32 %v3298_v25, %v1166_v36  ;;  %v1167_v55 = vadd.f32 -1.4531521, %v1161_v49 }
 0x370   : > { %2284 = vpow2.f32 %v1232_v63 }
 0x371   : > { %v1200_v54 = vadd.f32 0.2548296, %v1194_v47  ;;  %v1195_v58 = vmul.f32 %v2267_v5, %v1189_v50  ;;  %v1178_v59 = vadd.f32 1.4214138, %v1172_v53  ;;  %v1173_v51 = vmul.f32 %v3301_v31, %v1167_v55 }
 0x372   : > { %v3305_v56 = vpop.eup %2272  ;;  %2286 = vpow2.f32 %v1234_v28  ;;  %v1269_v28 = vmul.f32 0.5, %v3277_v43  ;;  %v1270_v43 = vmul.f32 0.5, %v3285_v52 }
 0x373   : > { %v1206_v2 = vmul.f32 %v2265_v62, %v1200_v54  ;;  %v1162_v3 = vmul.f32 1.0614054, %v3305_v56  ;;  %v2275_v6 = vpop.eup %2274  ;;  %v1201_v7 = vadd.f32 0.2548296, %v1195_v58  ;;  %v1184_v8 = vmul.f32 %v3298_v25, %v1178_v59 }
 0x374   : > { %v1179_v11 = vadd.f32 1.4214138, %v1173_v51  ;;  %v3310_v14 = vpop.eup %2276 }
 0x375   : > { %v1236_v9 = vmul.f32 %v2275_v6, %v1206_v2  ;;  %v1168_v13 = vadd.f32 -1.4531521, %v1162_v3  ;;  %v1207_v12 = vmul.f32 %v2267_v5, %v1201_v7  ;;  %v1190_v15 = vadd.f32 -0.28449672, %v1184_v8  ;;  %v2279_v62 = vpop.eup %2278 }
 0x376   : > { %v1185_v19 = vmul.f32 %v3301_v31, %v1179_v11  ;;  %v1163_v22 = vmul.f32 1.0614054, %v3310_v14  ;;  %v2281_v44 = vpop.eup %2280 }
 0x377   : > { %v1242_v18 = vsub.f32 1.0, %v1236_v9  ;;  %v1174_v24 = vmul.f32 %v3305_v56, %v1168_v13  ;;  %v1237_v27 = vmul.f32 %v2279_v62, %v1207_v12  ;;  %v1196_v10 = vmul.f32 %v3298_v25, %v1190_v15 }
 0x378   : > { %v1191_v29 = vadd.f32 -0.28449672, %v1185_v19  ;;  %v1169_v30 = vadd.f32 -1.4531521, %v1163_v22 }
 0x379   : > { %v1254_v26 = vsub.f32 0.0, %v1242_v18  ;;  %v1243_v5 = vsub.f32 1.0, %v1237_v27  ;;  %v1202_v33 = vadd.f32 0.2548296, %v1196_v10  ;;  %v1180_v36 = vadd.f32 1.4214138, %v1174_v24 }
 0x37a   : > { %v1197_v46 = vmul.f32 %v3301_v31, %v1191_v29  ;;  %v1175_v47 = vmul.f32 %v3310_v14, %v1169_v30 }
 0x37b   : > { %v1260_v37 = vsel %vm1248_vm1, %v1242_v18, %v1254_v26  ;;  %v1255_v49 = vsub.f32 0.0, %v1243_v5  ;;  %v1208_v50 = vmul.f32 %v3298_v25, %v1202_v33  ;;  %v1186_v53 = vmul.f32 %v3305_v56, %v1180_v36  ;;  %v2283_v25 = vpop.eup %2282 }
 0x37c   : > { %v1272_v54 = vadd.f32 1.0, %v1260_v37  ;;  %v1203_v20 = vadd.f32 0.2548296, %v1197_v46  ;;  %v1181_v55 = vadd.f32 1.4214138, %v1175_v47  ;;  %v2285_v63 = vpop.eup %2284  ;;  %v1271_v47 = vmul.f32 0.5, %v3292_v0 }
 0x37d   : > { %v1261_v58 = vsel %vm1249_vm2, %v1243_v5, %v1255_v49  ;;  %v1238_v59 = vmul.f32 %v2281_v44, %v1208_v50  ;;  %v1192_v60 = vadd.f32 -0.28449672, %v1186_v53  ;;  %v2287_v10 = vpop.eup %2286  ;;  %v1859_v53 = vld [vmem:[#allocation17] ss:$0 sm:$0xff] }
 0x37e   : > { %v1273_v2 = vadd.f32 1.0, %v1261_v58  ;;  %v1209_v16 = vmul.f32 %v3301_v31, %v1203_v20  ;;  %v1187_v51 = vmul.f32 %v3310_v14, %v1181_v55  ;;  %v1278_v7 = vmul.f32 %v1272_v54, %v1266_v48 }
 0x37f   : > { %v1244_v3 = vsub.f32 1.0, %v1238_v59  ;;  %v1198_v6 = vmul.f32 %v3305_v56, %v1192_v60  ;;  %v1455_v54 = vstv %s1454_s24 }
 0x380   : > { %v1279_v8 = vmul.f32 %v1273_v2, %v1267_v61  ;;  %v1239_v23 = vmul.f32 %v2283_v25, %v1209_v16  ;;  %v1193_v1 = vadd.f32 -0.28449672, %v1187_v51 }
 0x381   : > { %v1256_v9 = vsub.f32 0.0, %v1244_v3  ;;  %v1204_v11 = vadd.f32 0.2548296, %v1198_v6 }
 0x382   : > { %v1290_v13 = vpack.c.bf16 %v1279_v8, %v1278_v7  ;;  %v1245_v12 = vsub.f32 1.0, %v1239_v23  ;;  %v1199_v21 = vmul.f32 %v3310_v14, %v1193_v1 }
 0x383   : > { %v1262_v15 = vsel %vm1250_vm3, %v1244_v3, %v1256_v9  ;;  %v1210_v31 = vmul.f32 %v3305_v56, %v1204_v11 }
 0x384   : > { %v1257_v62 = vsub.f32 0.0, %v1245_v12  ;;  %2035 = vmatmul.mubr.bf16.vlgmr.msra.gmra.mrb[16].mxu0 %v1290_v13  ;;  %v1205_v18 = vadd.f32 0.2548296, %v1199_v21  ;;  %v1274_v19 = vadd.f32 1.0, %v1262_v15 }
 0x385   : > { %v1240_v22 = vmul.f32 %v2285_v63, %v1210_v31 }
 0x386   : > { %v1263_v24 = vsel %vm1251_vm4, %v1245_v12, %v1257_v62  ;;  %v1211_v27 = vmul.f32 %v3310_v14, %v1205_v18  ;;  %v1280_v56 = vmul.f32 %v1274_v19, %v1268_v40 }
 0x387   : > { %v1275_v26 = vadd.f32 1.0, %v1263_v24  ;;  %v1246_v29 = vsub.f32 1.0, %v1240_v22 }
 0x388   : > { %v1241_v30 = vmul.f32 %v2287_v10, %v1211_v27 }
 0x389   : > { %v1281_v5 = vmul.f32 %v1275_v26, %v1269_v28  ;;  %v1258_v33 = vsub.f32 0.0, %v1246_v29 }
 0x38a   : > { %v1247_v36 = vsub.f32 1.0, %v1241_v30 }
 0x38b   : > { %v1291_v37 = vpack.c.bf16 %v1281_v5, %v1280_v56  ;;  %v1264_v45 = vsel %vm1252_vm5, %v1246_v29, %v1258_v33 }
 0x38c   : > { %v1259_v46 = vsub.f32 0.0, %v1247_v36  ;;  %v1276_v14 = vadd.f32 1.0, %v1264_v45 }
 0x38d   : > { %2039 = vmatmul.mubr.bf16.vlgmr.msra.gmra.mrb[16].mxu1 %v1291_v37 }
 0x38e   : > { %2042 = vmatprep.mubr.msk.bf16.mxu1 %vm2707_vm0, %v2706_v17  ;;  %v1265_v32 = vsel %vm1253_vm6, %v1247_v36, %v1259_v46  ;;  %v1282_v49 = vmul.f32 %v1276_v14, %v1270_v43 }
 0x38f   : > { %v1277_v48 = vadd.f32 1.0, %v1265_v32 }
 0x391   : > { %v1283_v50 = vmul.f32 %v1277_v48, %v1271_v47 }
 0x393   : > { %v1292_v57 = vpack.c.bf16 %v1283_v50, %v1282_v49 }
 0x395   : > { %2043 = vmatmul.mubr.bf16.gmra.mrb[20].mxu1 %v1292_v57 }
 0x457   : > { %v1391_v44 = vpop.f32.mrb[16].mxu0 }
 0x458   : > { %v1448_v4 = vadd.f32 %v1859_v53, %v1391_v44  ;;  %v2036_v20 = vpop.f32.mrb[17].mxu0 }
 0x459   : > { %v1394_v55 = vpop.f32.mrb[18].mxu0 }
 0x45a   : > { %v1456_v58 = vmul.f32 %v1455_v54, %v1448_v4  ;;  %v1449_v59 = vadd.f32 %v1859_v53, %v1394_v55  ;;  %v2037_v17 = vpop.f32.mrb[19].mxu0 }
 0x45c   : > { %v1457_v60 = vmul.f32 %v1455_v54, %v1449_v59  ;;  %v3341_v52 = vadd.f32 %v1456_v58, %v3198_v34 }
 0x45e   : > { %1468 = vadd.xlane.f32.xlu0 %v3341_v52  ;;  %v3345_v0 = vadd.f32 %v1457_v60, %v3201_v35  ;;  %v1486_v34 = vmul.f32 %v3341_v52, %v3341_v52 }
 0x460   : > { %v1399_v61 = vpop.f32.mrb[16].mxu1  ;;  %v1487_v2 = vmul.f32 %v3345_v0, %v3345_v0 }
 0x461   : > { %v1450_v16 = vadd.f32 %v1859_v53, %v1399_v61  ;;  %v2040_v51 = vpop.f32.mrb[17].mxu1 }
 0x462   : > { %v1402_v25 = vpop.f32.mrb[18].mxu1  ;;  %1470 = vadd.xlane.f32.xlu0 %v3345_v0  ;;  %1494 = vadd.xlane.f32.xlu1 %v1487_v2 }
 0x463   : > { %v1458_v3 = vmul.f32 %v1455_v54, %v1450_v16  ;;  %v1451_v6 = vadd.f32 %v1859_v53, %v1402_v25  ;;  %v2041_v7 = vpop.f32.mrb[19].mxu1 }
 0x464   : > { %v1860_v7 = vld [vmem:[#allocation19] ss:$0 sm:$0xff] }
 0x465   : > { %v1459_v8 = vmul.f32 %v1455_v54, %v1451_v6  ;;  %v3353_v35 = vadd.f32 %v1458_v3, %v3214_v38 }
 0x466   : > { %1492 = vadd.xlane.f32.xlu0 %v1486_v34 }
 0x467   : > { %1472 = vadd.xlane.f32.xlu1 %v3353_v35  ;;  %v1488_v1 = vmul.f32 %v3353_v35, %v3353_v35  ;;  %v3359_v13 = vadd.f32 %v1459_v8, %v3217_v39 }
 0x468   : > { %v1407_v23 = vpop.f32.mrb[20].mxu1 }
 0x469   : > { %v1452_v9 = vadd.f32 %v1859_v53, %v1407_v23  ;;  %v2044_v11 = vpop.f32.mrb[21].mxu1  ;;  %v1489_v62 = vmul.f32 %v3359_v13, %v3359_v13 }
 0x46a   : > { %v1410_v12 = vpop.f32.mrb[22].mxu1  ;;  %1496 = vadd.xlane.f32.xlu0 %v1488_v1 }
 0x46b   : > { %v1460_v21 = vmul.f32 %v1455_v54, %v1452_v9  ;;  %v1453_v15 = vadd.f32 %v1859_v53, %v1410_v12  ;;  %v2045_v31 = vpop.f32.mrb[23].mxu1  ;;  %1474 = vadd.xlane.f32.xlu1 %v3359_v13  ;;  %v1861_v12 = vld [vmem:[#allocation20] ss:$0 sm:$0xff] }
 0x46d   : > { %v1461_v38 = vmul.f32 %v1455_v54, %v1453_v15  ;;  %v3363_v63 = vadd.f32 %v1460_v21, %v3224_v41 }
 0x46f   : > { %1476 = vadd.xlane.f32.xlu0 %v3363_v63  ;;  %1498 = vadd.xlane.f32.xlu1 %v1489_v62  ;;  %v1490_v39 = vmul.f32 %v3363_v63, %v3363_v63  ;;  %v3371_v18 = vadd.f32 %v1461_v38, %v3227_v42 }
 0x471   : > { %v1491_v19 = vmul.f32 %v3371_v18, %v3371_v18 }
 0x473   : > { %1500 = vadd.xlane.f32.xlu0 %v1490_v39  ;;  %1478 = vadd.xlane.f32.xlu1 %v3371_v18 }
 0x477   : > { %1502 = vadd.xlane.f32.xlu1 %v1491_v19 }
 0x4eb   : > { %v1469_v41 = vpop.xlane.xlu0 %1468 }
 0x4ec   : > { %v1480_v27 = vmul.f32 0.03125, %v1469_v41 }
 0x4ee   : > { %v1510_v29 = vmul.f32 %v1480_v27, %v1480_v27  ;;  %v1528_v6 = vsub.f32 %v3341_v52, %v1480_v27 }
 0x4ef   : > { %v1471_v22 = vpop.xlane.xlu0 %1470  ;;  %v1495_v24 = vpop.xlane.xlu1 %1494 }
 0x4f0   : > { %v1481_v10 = vmul.f32 0.03125, %v1471_v22  ;;  %v1505_v28 = vmul.f32 0.03125, %v1495_v24 }
 0x4f2   : > { %v1511_v40 = vmul.f32 %v1481_v10, %v1481_v10  ;;  %v1529_v16 = vsub.f32 %v3345_v0, %v1481_v10 }
 0x4f3   : > { %v1493_v26 = vpop.xlane.xlu0 %1492 }
 0x4f4   : > { %v1517_v30 = vsub.f32 %v1505_v28, %v1511_v40  ;;  %v1504_v56 = vmul.f32 0.03125, %v1493_v26  ;;  %v1473_v42 = vpop.xlane.xlu1 %1472 }
 0x4f5   : > { %v1482_v5 = vmul.f32 0.03125, %v1473_v42 }
 0x4f6   : > { %v1523_v33 = vmax.f32 %v1517_v30, 0.0  ;;  %v1516_v36 = vsub.f32 %v1504_v56, %v1510_v29 }
 0x4f7   : > { %v1497_v37 = vpop.xlane.xlu0 %1496  ;;  %v1512_v14 = vmul.f32 %v1482_v5, %v1482_v5  ;;  %v1530_v0 = vsub.f32 %v3353_v35, %v1482_v5 }
 0x4f8   : > { %v1535_v45 = vadd.f32 1e-05, %v1523_v33  ;;  %v1522_v46 = vmax.f32 %v1516_v36, 0.0  ;;  %v1506_v32 = vmul.f32 0.03125, %v1497_v37  ;;  %v1475_v43 = vpop.xlane.xlu1 %1474 }
 0x4f9   : > { %v1483_v47 = vmul.f32 0.03125, %v1475_v43 }
 0x4fa   : > { %2288 = vrsqrt.f32 %v1535_v45  ;;  %v1534_v48 = vadd.f32 1e-05, %v1522_v46  ;;  %v1518_v49 = vsub.f32 %v1506_v32, %v1512_v14 }
 0x4fb   : > { %v1513_v44 = vmul.f32 %v1483_v47, %v1483_v47  ;;  %v1531_v35 = vsub.f32 %v3359_v13, %v1483_v47 }
 0x4fc   : > { %2290 = vrsqrt.f32 %v1534_v48  ;;  %v1524_v50 = vmax.f32 %v1518_v49, 0.0  ;;  %v1477_v57 = vpop.xlane.xlu0 %1476  ;;  %v1499_v53 = vpop.xlane.xlu1 %1498 }
 0x4fd   : > { %v1484_v54 = vmul.f32 0.03125, %v1477_v57  ;;  %v1507_v4 = vmul.f32 0.03125, %v1499_v53 }
 0x4fe   : > { %v1536_v20 = vadd.f32 1e-05, %v1524_v50 }
 0x4ff   : > { %v1519_v55 = vsub.f32 %v1507_v4, %v1513_v44  ;;  %v1514_v17 = vmul.f32 %v1484_v54, %v1484_v54  ;;  %v1532_v26 = vsub.f32 %v3363_v63, %v1484_v54 }
 0x500   : > { %2292 = vrsqrt.f32 %v1536_v20  ;;  %v1501_v58 = vpop.xlane.xlu0 %1500  ;;  %v1479_v59 = vpop.xlane.xlu1 %1478 }
 0x501   : > { %v1525_v60 = vmax.f32 %v1519_v55, 0.0  ;;  %v1508_v61 = vmul.f32 0.03125, %v1501_v58  ;;  %v1485_v2 = vmul.f32 0.03125, %v1479_v59 }
 0x503   : > { %v1537_v51 = vadd.f32 1e-05, %v1525_v60  ;;  %v1520_v25 = vsub.f32 %v1508_v61, %v1514_v17  ;;  %v1515_v34 = vmul.f32 %v1485_v2, %v1485_v2  ;;  %v1533_v33 = vsub.f32 %v3371_v18, %v1485_v2 }
 0x504   : > { %v2289_v3 = vpop.eup %2288  ;;  %v1503_v8 = vpop.xlane.xlu1 %1502 }
 0x505   : > { %v1547_v23 = vmul.f32 %v2289_v3, %v1529_v16  ;;  %2294 = vrsqrt.f32 %v1537_v51  ;;  %v1526_v1 = vmax.f32 %v1520_v25, 0.0  ;;  %v1509_v9 = vmul.f32 0.03125, %v1503_v8 }
 0x506   : > { %v2291_v11 = vpop.eup %2290 }
 0x507   : > { %v1560_v21 = vmul.f32 %v1860_v7, %v1547_v23  ;;  %v1546_v15 = vmul.f32 %v2291_v11, %v1528_v6  ;;  %v1538_v31 = vadd.f32 1e-05, %v1526_v1  ;;  %v1521_v38 = vsub.f32 %v1509_v9, %v1515_v34 }
 0x509   : > { %v1573_v62 = vadd.f32 %v1861_v12, %v1560_v21  ;;  %v1559_v39 = vmul.f32 %v1860_v7, %v1546_v15  ;;  %2296 = vrsqrt.f32 %v1538_v31  ;;  %v1527_v52 = vmax.f32 %v1521_v38, 0.0 }
 0x50a   : > { %v2293_v19 = vpop.eup %2292 }
 0x50b   : > { %1579 = vst [vmem:[%s3381_s14 + $0x8] sm:$0xff] %v1573_v62  ;;  %v1572_v41 = vadd.f32 %v1861_v12, %v1559_v39  ;;  %v1548_v22 = vmul.f32 %v2293_v19, %v1530_v0  ;;  %v1539_v24 = vadd.f32 1e-05, %v1527_v52 }
 0x50d   : > { %1578 = vst [vmem:[%s3381_s14] sm:$0xff] %v1572_v41  ;;  %v1561_v27 = vmul.f32 %v1860_v7, %v1548_v22  ;;  %2298 = vrsqrt.f32 %v1539_v24 }
 0x50f   : > { %v2295_v10 = vpop.eup %2294  ;;  %v1574_v40 = vadd.f32 %v1861_v12, %v1561_v27 }
 0x510   : > { %v1549_v28 = vmul.f32 %v2295_v10, %v1531_v35 }
 0x511   : > { %1580 = vst [vmem:[%s3381_s14 + $0x10] sm:$0xff] %v1574_v40 }
 0x512   : > { %v1562_v29 = vmul.f32 %v1860_v7, %v1549_v28 }
 0x513   : > { %v2297_v30 = vpop.eup %2296 }
 0x514   : > { %v1575_v56 = vadd.f32 %v1861_v12, %v1562_v29  ;;  %v1550_v42 = vmul.f32 %v2297_v30, %v1532_v26 }
 0x516   : > { %1581 = vst [vmem:[%s3381_s14 + $0x18] sm:$0xff] %v1575_v56  ;;  %v1563_v5 = vmul.f32 %v1860_v7, %v1550_v42 }
 0x517   : > { %v2299_v13 = vpop.eup %2298 }
 0x518   : > { %v1576_v36 = vadd.f32 %v1861_v12, %v1563_v5  ;;  %v1551_v37 = vmul.f32 %v2299_v13, %v1533_v33 }
 0x51a   : > { %1582 = vst [vmem:[%s3381_s14 + $0x20] sm:$0xff] %v1576_v36  ;;  %v1564_v45 = vmul.f32 %v1860_v7, %v1551_v37 }
 0x51c   : > { %v1577_v63 = vadd.f32 %v1861_v12, %v1564_v45 }
 0x51e   : > { %1583 = vst [vmem:[%s3381_s14 + $0x28] sm:$0xff] %v1577_v63 }
 0x51f   : > { %2597 = shalt.err (!%p2594_p3)
}
 0x520   : > { %s2598_s26 = scalar_lea.hbm %s3396_s15, 768  ;;  %s2602_s25 = scalar_lea.hbm %s3514_s11, 1536 }
 0x521   : > { %p2599_p11 = scmp.ne.s32.totalorder %s3396_s15, %s2598_s26  ;;  %p2603_p13 = scmp.lt.u32.totalorder %s3396_s15, %s3514_s11 }
 0x522   : > { %p2604_p4 = scmp.lt.u32.totalorder %s2602_s25, %s2598_s26  ;;  %p2606_p0 = scmp.lt.u32.totalorder %s2598_s26, %s3396_s15 }
 0x523   : > { %p2600_p6 = pnand %p2599_p11, %p3515_p7 }
 0x524   : > { %p2605_p9 = por %p2604_p4, %p2603_p13 }
 0x525   : > { %p2601_p2 = pneg %p2600_p6 }
 0x526   : > { %p2607_p5 = por %p2606_p0, %p2605_p9 }
 0x528   : > { %p2608_p1 = pnand %p2607_p5, %p2601_p2 }
 0x52a   : > { %2611 = shalt.err (!%p2608_p1)
}
 0x52b   : > { %s2709_s14 = smov 128   ;;  %s2710_s13 = smov 8  }
 0x52c   : > { %2102 = dma.vmem_to_hbm [thread:$0]  (%p3515_p7), %s3398_s2, 768, %s3396_s15, %s1585_s18, %s2709_s14, %s2709_s14, %s2710_s13  }
 0x52d PF: > { %s1614_s0 = sand.u32 1, %s2670_s19   ;;  %p3516_p10 = scmp.ne.s32.totalorder %s3496_s1, 0 }
 0x52e   : > { %p3517_p12 = scmp.ge.s32.totalorder %s2690_s10, 2  ;;  %s1615_s17 = scalar_lea.sflag [#allocation7], %s1614_s0 }
 0x530   : > { %p2137_p8 = pnand %p3517_p12, %p3516_p10 }
 0x532   : > { %2665 = dma.done.wait (!%p2137_p8), %s1615_s17, 768  }
 0x533   : > { %2667 = vsyncadd (!%p2137_p8), %s1615_s17, 4294966528  ;;  %s35_s10 = sadd.s32 1, %s2690_s10   ;;  %s3518_s27 = smov %s3525_s22 }
 0x534   : > { %p32_p3 = scmp.ge.s32.totalorder %s35_s10, 4   ;;  %s3519_s19 = smov %s2674_s20 }
 0x535   : > { %s3520_s20 = smov %s2678_s21  ;;  %s3521_s21 = smov %s3030_s30 }
 0x536   : > { %s3522_s22 = smov %s2686_s23  ;;  %s3523_s23 = smov %s3518_s27 }
 0x537   :  { %34 = sbr.rel (!%p32_p3) target bundleno = 24 (0x18), region = 166 }
 0x53e   :  { %1620 = vsyncpa [#allocation6], 1 }
 0x53f   :  { %1622 = vsyncpa [#allocation6 + $0x1], 1 }
 0x540   :  { %1623 = vsyncpa [#allocation9], 1 }
 0x541   :  { %1625 = vsyncpa [#allocation9 + $0x1], 1 }
 0x542   :  { %1626 = vsyncpa [#allocation12], 1 }
 0x543   :  { %1627 = vsyncpa [#allocation15], 1 }
 0x544   :  { %1628 = vsyncpa [#allocation18], 1 }
 0x545   :  { %1629 = vsyncpa [#allocation21], 1 }
 0x546   :  { %1630 = vsyncpa [#allocation7], 1 }
 0x547   :  { %1632 = vsyncpa [#allocation7 + $0x1], 1 }

// kernel: tpu_custom_call.1
= control target key start
LH: loop header
LB: loop body
LE: loop exit
PB: predicated region body
PF: predicated region fallthrough
CT: control target
= control target key end

     0   :  { %s3448_s0 = inlined_call_operand.hbm [shape: f32[4,24,128], index: 0, kind: input, shape index: {}]   ;;  %s3449_s1 = inlined_call_operand.hbm [shape: bf16[4,128,128], index: 1, kind: input, shape index: {}]   ;;  %s3450_s2 = inlined_call_operand.hbm [shape: bf16[24,128], index: 2, kind: input, shape index: {}]   ;;  %s3451_s3 = inlined_call_operand.hbm [shape: bf16[128,128], index: 3, kind: input, shape index: {}]   ;;  %s3452_s4 = inlined_call_operand.hbm [shape: bf16[128,128], index: 4, kind: input, shape index: {}]   ;;  %s3453_s5 = inlined_call_operand.hbm [shape: f32[1,128], index: 5, kind: input, shape index: {}]   ;;  %s3454_s6 = inlined_call_operand.hbm [shape: bf16[128,128], index: 6, kind: input, shape index: {}]   ;;  %s3455_s7 = inlined_call_operand.hbm [shape: f32[1,128], index: 7, kind: input, shape index: {}]   ;;  %s3456_s8 = inlined_call_operand.hbm [shape: f32[1,128], index: 8, kind: input, shape index: {}]   ;;  %s3457_s9 = inlined_call_operand.hbm [shape: f32[1,128], index: 9, kind: input, shape index: {}]   ;;  %s3458_s10 = inlined_call_operand.<no memory space> [shape: f32[1,1], index: 10, kind: input, shape index: {}]   ;;  %s3459_s11 = inlined_call_operand.hbm [shape: f32[4,24,128], index: 11, kind: output, shape index: {}]  }
   0x1   :  { %3469 = sst [smem:[#allocation33_spill]] %s3448_s0 }
   0x2   :  { %3470 = sst [smem:[#allocation34_spill]] %s3449_s1 }
   0x3   :  { %3471 = sst [smem:[#allocation35_spill]] %s3450_s2 }
   0x4   :  { %3472 = sst [smem:[#allocation36_spill]] %s3451_s3 }
   0x5   :  { %3473 = sst [smem:[#allocation37_spill]] %s3452_s4 }
   0x6   :  { %3474 = sst [smem:[#allocation38_spill]] %s3453_s5 }
   0x7   :  { %3475 = sst [smem:[#allocation39_spill]] %s3454_s6 }
   0x8   :  { %3476 = sst [smem:[#allocation40_spill]] %s3455_s7 }
   0x9   :  { %3477 = sst [smem:[#allocation41_spill]] %s3456_s8 }
   0xa   :  { %3478 = sst [smem:[#allocation42_spill]] %s3459_s11 }
   0xb   :  { %16 = sst [smem:[#allocation4]] %s3458_s10 }
   0xc   :  { %17 = vsyncpa [#allocation6], 0 }
   0xd   :  { %19 = vsyncpa [#allocation6 + $0x1], 0 }
   0xe   :  { %20 = vsyncpa [#allocation9], 0 }
   0xf   :  { %22 = vsyncpa [#allocation9 + $0x1], 0 }
  0x10   :  { %23 = vsyncpa [#allocation12], 0 }
  0x11   :  { %24 = vsyncpa [#allocation15], 0 }
  0x12   :  { %25 = vsyncpa [#allocation18], 0 }
  0x13   :  { %26 = vsyncpa [#allocation21], 0 }
  0x14   :  { %27 = vsyncpa [#allocation7], 0 }
  0x15   :  { %29 = vsyncpa [#allocation7 + $0x1], 0  ;;  %s2774_s19 = smov 0   ;;  %s2776_s20 = smov 0  }
  0x16   :  { %s2778_s21 = smov 0   ;;  %s2780_s22 = smov 0  }
  0x17   :  { %s2782_s23 = smov 0   ;;  %s2784_s10 = smov 0  }
  0x18 LB: > { %3479 = sst [smem:[#allocation31_spill]] %s2682_s22  ;;  %s2805_s24 = sadd.s32 4294967295, %s2690_s10   ;;  %s2690_s10 = sphi %s2784_s10, %s35_s10   ;;  %s2686_s23 = sphi %s2782_s23, %s3523_s23   ;;  %s2682_s22 = sphi %s2780_s22, %s3522_s22   ;;  %s2678_s21 = sphi %s2778_s21, %s3521_s21   ;;  %s2674_s20 = sphi %s2776_s20, %s3520_s20   ;;  %s2670_s19 = sphi %s2774_s19, %s3519_s19  }
  0x19   : > { %p1789_p0 = scmp.ge.s32.totalorder %s2690_s10, 1  ;;  %p3463_p1 = scmp.eq.s32.totalorder %s2805_s24, 0 }
  0x1a   : > { %p339_p2 = scmp.lt.s32.totalorder %s2690_s10, 3  ;;  %s2692_s26 = smov [#allocation10]  }
  0x1b   : > { %s351_s27 = sshll.u32 %s2692_s26, 4  ;;  %s2693_s29 = smov [#allocation11]   ;;  %s2814_s27 = int_to_ptr.vmem [resolvable:$true] %s351_s27 }
  0x1c   : > { %p2810_p3 = pnand %p1789_p0, %p339_p2  ;;  %s366_s30 = sshll.u32 %s2693_s29, 4  ;;  %s2825_s30 = int_to_ptr.vmem [resolvable:$true] %s366_s30 }
  0x1d   : > { %s2694_s12 = smov [#allocation14]   ;;  %s3483_s2 = sld [smem:[#allocation35_spill]] }
  0x1e   : > { %s3480_s25 = scalar_select %p2810_p3, 1, 0 }
  0x1f   : > { %p2104_p4 = pneg %p2810_p3  ;;  %s2827_s13 = sshll.u32 %s2694_s12, 4  ;;  %s398_s13 = int_to_ptr.vmem [resolvable:$true] %s2827_s13 }
  0x20   : > { %3481 = sst [smem:[#allocation32_spill]] %s3480_s25 }
  0x21   : > { %p2821_p6 = pnand %p2104_p4, %p3463_p1 }
  0x23   : > { %s2300_s16 = scalar_lea.hbm %s3483_s2, 192  ;;  %p2837_p8 = pneg %p2821_p6 }
  0x24   : > { %p2301_p7 = scmp.ne.s32.totalorder %s3483_s2, %s2300_s16  ;;  %p2307_p11 = scmp.lt.u32.totalorder %s2300_s16, %s3483_s2 }
  0x26   : > { %p2303_p9 = pnand %p2837_p8, %p2301_p7 }
  0x28   : > { %p2304_p10 = pneg %p2303_p9 }
  0x2a   : > { %p2309_p12 = pnand %p2307_p11, %p2304_p10 }
  0x2c   : > { %2312 = shalt.err (!%p2309_p12)
}
  0x2d   : > { %s2313_s14 = scalar_lea.vmem %s2814_s27, 192  ;;  %p2321_p4 = scmp.lt.s32.totalorder %s2814_s27, %s2814_s27 }
  0x2e   : > { %p2314_p13 = scmp.ne.s32.totalorder %s2814_s27, %s2313_s14  ;;  %p2322_p5 = scmp.lt.s32.totalorder %s2313_s14, %s2313_s14 }
  0x30   : > { %p2316_p0 = pnand %p2314_p13, %p2837_p8  ;;  %p2323_p7 = por %p2322_p5, %p2321_p4 }
  0x32   : > { %p2317_p2 = pneg %p2316_p0 }
  0x34   : > { %p2324_p9 = pnand %p2323_p7, %p2317_p2 }
  0x36   : > { %2327 = shalt.err (!%p2324_p9)
}
  0x37   : > { %s3465_s15 = smov 64   ;;  %s3467_s16 = smov 4  }
  0x38   : > { %2107 = dma.hbm_to_vmem [thread:$0]  (!%p2821_p6), %s3483_s2, 192, %s2814_s27, [#allocation9], %s3465_s15, %s3465_s15, %s3467_s16  }
  0x39   : > { %s3485_s3 = sld [smem:[#allocation36_spill]] }
  0x3f   : > { %s2328_s14 = scalar_lea.hbm %s3485_s3, 1024 }
  0x40   : > { %p2329_p5 = scmp.ne.s32.totalorder %s3485_s3, %s2328_s14  ;;  %p2335_p12 = scmp.lt.u32.totalorder %s2328_s14, %s3485_s3 }
  0x42   : > { %p2331_p10 = pnand %p2329_p5, %p2837_p8 }
  0x44   : > { %p2332_p11 = pneg %p2331_p10 }
  0x46   : > { %p2337_p13 = pnand %p2335_p12, %p2332_p11 }
  0x48   : > { %2340 = shalt.err (!%p2337_p13)
}
  0x49   : > { %s2341_s27 = scalar_lea.vmem %s2825_s30, 1024  ;;  %p2349_p7 = scmp.lt.s32.totalorder %s2825_s30, %s2825_s30 }
  0x4a   : > { %p2342_p0 = scmp.ne.s32.totalorder %s2825_s30, %s2341_s27  ;;  %p2350_p9 = scmp.lt.s32.totalorder %s2341_s27, %s2341_s27 }
  0x4c   : > { %p2344_p2 = pnand %p2342_p0, %p2837_p8  ;;  %p2351_p5 = por %p2350_p9, %p2349_p7 }
  0x4e   : > { %p2345_p4 = pneg %p2344_p2 }
  0x50   : > { %p2352_p10 = pnand %p2351_p5, %p2345_p4 }
  0x52   : > { %2355 = shalt.err (!%p2352_p10)
}
  0x53   : > { %2110 = dma.hbm_to_vmem [thread:$0]  (!%p2821_p6), %s3485_s3, 1024, %s2825_s30, [#allocation12], %s3465_s15, %s3465_s15, %s3467_s16  }
  0x54   : > { %s3486_s5 = sld [smem:[#allocation38_spill]] }
  0x5a   : > { %s2356_s17 = scalar_lea.hbm %s3486_s5, 16 }
  0x5b   : > { %p2357_p11 = scmp.ne.s32.totalorder %s3486_s5, %s2356_s17  ;;  %p2363_p0 = scmp.lt.u32.totalorder %s2356_s17, %s3486_s5 }
  0x5d   : > { %p2359_p12 = pnand %p2357_p11, %p2837_p8 }
  0x5f   : > { %p2360_p13 = pneg %p2359_p12 }
  0x61   : > { %p2365_p2 = pnand %p2363_p0, %p2360_p13 }
  0x63   : > { %2368 = shalt.err (!%p2365_p2)
}
  0x64   : > { %s2369_s27 = scalar_lea.vmem %s398_s13, 16  ;;  %s2376_s30 = scalar_lea.vmem %s398_s13, 32 }
  0x65   : > { %p2370_p4 = scmp.ne.s32.totalorder %s398_s13, %s2369_s27  ;;  %p2377_p5 = scmp.lt.s32.totalorder %s398_s13, %s398_s13 }
  0x66   : > { %p2378_p10 = scmp.lt.s32.totalorder %s2376_s30, %s2369_s27 }
  0x67   : > { %p2372_p7 = pnand %p2370_p4, %p2837_p8 }
  0x68   : > { %p2379_p1 = por %p2378_p10, %p2377_p5 }
  0x69   : > { %p2373_p9 = pneg %p2372_p7 }
  0x6b   : > { %p2380_p3 = pnand %p2379_p1, %p2373_p9 }
  0x6d   : > { %2383 = shalt.err (!%p2380_p3)
}
  0x6e   : > { %2116 = dma.hbm_to_vmem [thread:$0]  (!%p2821_p6), %s3486_s5, 16, %s398_s13, [#allocation15]  }
  0x6f   : > { %s2697_s22 = smov [#allocation17]   ;;  %s2698_s17 = smov [#allocation13]  }
  0x70   : > { %s424_s25 = sshll.u32 %s2697_s22, 4  ;;  %s381_s18 = sshll.u32 %s2698_s17, 4  ;;  %s425_s25 = int_to_ptr.vmem [resolvable:$true] %s424_s25  ;;  %s382_s18 = int_to_ptr.vmem [resolvable:$true] %s381_s18 }
  0x71   : > { %s3487_s7 = sld [smem:[#allocation40_spill]] }
  0x77   : > { %s2384_s14 = scalar_lea.hbm %s3487_s7, 16 }
  0x78   : > { %p2385_p1 = scmp.ne.s32.totalorder %s3487_s7, %s2384_s14  ;;  %p2391_p12 = scmp.lt.u32.totalorder %s2384_s14, %s3487_s7 }
  0x7a   : > { %p2387_p3 = pnand %p2385_p1, %p2837_p8 }
  0x7c   : > { %p2388_p11 = pneg %p2387_p3 }
  0x7e   : > { %p2393_p13 = pnand %p2391_p12, %p2388_p11 }
  0x80   : > { %2396 = shalt.err (!%p2393_p13)
}
  0x81   : > { %s2397_s13 = scalar_lea.vmem %s425_s25, 16  ;;  %s2404_s11 = scalar_lea.vmem %s425_s25, 32 }
  0x82   : > { %p2398_p0 = scmp.ne.s32.totalorder %s425_s25, %s2397_s13  ;;  %p2405_p7 = scmp.lt.s32.totalorder %s425_s25, %s425_s25 }
  0x83   : > { %p2406_p9 = scmp.lt.s32.totalorder %s2404_s11, %s2397_s13 }
  0x84   : > { %p2400_p2 = pnand %p2398_p0, %p2837_p8 }
  0x85   : > { %p2407_p5 = por %p2406_p9, %p2405_p7 }
  0x86   : > { %p2401_p4 = pneg %p2400_p2 }
  0x88   : > { %p2408_p10 = pnand %p2407_p5, %p2401_p4 }
  0x8a   : > { %2411 = shalt.err (!%p2408_p10)
}
  0x8b   : > { %2122 = dma.hbm_to_vmem [thread:$0]  (!%p2821_p6), %s3487_s7, 16, %s425_s25, [#allocation18]  }
  0x8c   : > { %s3488_s4 = sld [smem:[#allocation37_spill]] }
  0x92   : > { %s2412_s12 = scalar_lea.hbm %s3488_s4, 1024 }
  0x93   : > { %p2413_p1 = scmp.ne.s32.totalorder %s3488_s4, %s2412_s12  ;;  %p2419_p12 = scmp.lt.u32.totalorder %s2412_s12, %s3488_s4 }
  0x95   : > { %p2415_p3 = pnand %p2413_p1, %p2837_p8 }
  0x97   : > { %p2416_p11 = pneg %p2415_p3 }
  0x99   : > { %p2421_p13 = pnand %p2419_p12, %p2416_p11 }
  0x9b   : > { %2424 = shalt.err (!%p2421_p13)
}
  0x9c   : > { %s2425_s13 = scalar_lea.vmem %s382_s18, 1024  ;;  %p2433_p7 = scmp.lt.s32.totalorder %s382_s18, %s382_s18 }
  0x9d   : > { %p2426_p0 = scmp.ne.s32.totalorder %s382_s18, %s2425_s13  ;;  %p2434_p9 = scmp.lt.s32.totalorder %s2425_s13, %s2425_s13 }
  0x9f   : > { %p2428_p2 = pnand %p2426_p0, %p2837_p8  ;;  %p2435_p5 = por %p2434_p9, %p2433_p7 }
  0xa1   : > { %p2429_p4 = pneg %p2428_p2 }
  0xa3   : > { %p2436_p10 = pnand %p2435_p5, %p2429_p4 }
  0xa5   : > { %2439 = shalt.err (!%p2436_p10)
}
  0xa6   : > { %s3489_s25 = smov 64   ;;  %s2699_s17 = smov [#allocation16]  }
  0xa7   : > { %2113 = dma.hbm_to_vmem [thread:$0]  (!%p2821_p6), %s3488_s4, 1024, %s382_s18, [#allocation12], %s3489_s25, %s3489_s25, %s3467_s16  }
  0xa8   : > { %s410_s15 = sshll.u32 %s2699_s17, 4  ;;  %s2700_s29 = smov [#allocation19]   ;;  %s411_s15 = int_to_ptr.vmem [resolvable:$true] %s410_s15 }
  0xa9   : > { %s435_s12 = sshll.u32 %s2700_s29, 4  ;;  %s3490_s6 = sld [smem:[#allocation39_spill]]  ;;  %s436_s12 = int_to_ptr.vmem [resolvable:$true] %s435_s12 }
  0xaf   : > { %s2440_s30 = scalar_lea.hbm %s3490_s6, 1024 }
  0xb0   : > { %p2441_p1 = scmp.ne.s32.totalorder %s3490_s6, %s2440_s30  ;;  %p2447_p12 = scmp.lt.u32.totalorder %s2440_s30, %s3490_s6 }
  0xb2   : > { %p2443_p3 = pnand %p2441_p1, %p2837_p8 }
  0xb4   : > { %p2444_p11 = pneg %p2443_p3 }
  0xb6   : > { %p2449_p13 = pnand %p2447_p12, %p2444_p11 }
  0xb8   : > { %2452 = shalt.err (!%p2449_p13)
}
  0xb9   : > { %s2453_s18 = scalar_lea.vmem %s411_s15, 1024  ;;  %p2461_p7 = scmp.lt.s32.totalorder %s411_s15, %s411_s15 }
  0xba   : > { %p2454_p0 = scmp.ne.s32.totalorder %s411_s15, %s2453_s18  ;;  %p2462_p9 = scmp.lt.s32.totalorder %s2453_s18, %s2453_s18 }
  0xbc   : > { %p2456_p2 = pnand %p2454_p0, %p2837_p8  ;;  %p2463_p5 = por %p2462_p9, %p2461_p7 }
  0xbe   : > { %p2457_p4 = pneg %p2456_p2 }
  0xc0   : > { %p2464_p10 = pnand %p2463_p5, %p2457_p4 }
  0xc2   : > { %2467 = shalt.err (!%p2464_p10)
}
  0xc3   : > { %2119 = dma.hbm_to_vmem [thread:$0]  (!%p2821_p6), %s3490_s6, 1024, %s411_s15, [#allocation15], %s3489_s25, %s3489_s25, %s3467_s16  }
  0xc4   : > { %s3491_s8 = sld [smem:[#allocation41_spill]] }
  0xca   : > { %s2468_s14 = scalar_lea.hbm %s3491_s8, 16 }
  0xcb   : > { %p2469_p1 = scmp.ne.s32.totalorder %s3491_s8, %s2468_s14  ;;  %p2475_p12 = scmp.lt.u32.totalorder %s2468_s14, %s3491_s8 }
  0xcd   : > { %p2471_p3 = pnand %p2469_p1, %p2837_p8 }
  0xcf   : > { %p2472_p11 = pneg %p2471_p3 }
  0xd1   : > { %p2477_p13 = pnand %p2475_p12, %p2472_p11 }
  0xd3   : > { %2480 = shalt.err (!%p2477_p13)
}
  0xd4   : > { %s2481_s11 = scalar_lea.vmem %s436_s12, 16  ;;  %s2488_s15 = scalar_lea.vmem %s436_s12, 32 }
  0xd5   : > { %p2482_p0 = scmp.ne.s32.totalorder %s436_s12, %s2481_s11  ;;  %p2489_p7 = scmp.lt.s32.totalorder %s436_s12, %s436_s12 }
  0xd6   : > { %p2490_p9 = scmp.lt.s32.totalorder %s2488_s15, %s2481_s11 }
  0xd7   : > { %p2484_p2 = pnand %p2482_p0, %p2837_p8 }
  0xd8   : > { %p2491_p5 = por %p2490_p9, %p2489_p7 }
  0xd9   : > { %p2485_p4 = pneg %p2484_p2 }
  0xdb   : > { %p2492_p10 = pnand %p2491_p5, %p2485_p4 }
  0xdd   : > { %2495 = shalt.err (!%p2492_p10)
}
  0xde   : > { %2125 = dma.hbm_to_vmem [thread:$0]  (!%p2821_p6), %s3491_s8, 16, %s436_s12, [#allocation18]  }
  0xdf   : > { %s2701_s22 = smov [#allocation20]   ;;  %s2496_s27 = scalar_lea.hbm %s3457_s9, 16 }
  0xe0   : > { %s446_s17 = sshll.u32 %s2701_s22, 4  ;;  %p2497_p1 = scmp.ne.s32.totalorder %s3457_s9, %s2496_s27  ;;  %s447_s17 = int_to_ptr.vmem [resolvable:$true] %s446_s17 }
  0xe1   : > { %p2503_p12 = scmp.lt.u32.totalorder %s2496_s27, %s3457_s9 }
  0xe2   : > { %p2499_p3 = pnand %p2497_p1, %p2837_p8 }
  0xe4   : > { %p2500_p11 = pneg %p2499_p3 }
  0xe6   : > { %p2505_p13 = pnand %p2503_p12, %p2500_p11 }
  0xe8   : > { %2508 = shalt.err (!%p2505_p13)
}
  0xe9   : > { %s2509_s12 = scalar_lea.vmem %s447_s17, 16  ;;  %s2516_s15 = scalar_lea.vmem %s447_s17, 32 }
  0xea   : > { %p2510_p0 = scmp.ne.s32.totalorder %s447_s17, %s2509_s12  ;;  %p2517_p7 = scmp.lt.s32.totalorder %s447_s17, %s447_s17 }
  0xeb   : > { %p2518_p9 = scmp.lt.s32.totalorder %s2516_s15, %s2509_s12 }
  0xec   : > { %p2512_p2 = pnand %p2510_p0, %p2837_p8 }
  0xed   : > { %p2519_p5 = por %p2518_p9, %p2517_p7 }
  0xee   : > { %p2513_p4 = pneg %p2512_p2 }
  0xf0   : > { %p2520_p10 = pnand %p2519_p5, %p2513_p4 }
  0xf2   : > { %2523 = shalt.err (!%p2520_p10)
}
  0xf3   : > { %2128 = dma.hbm_to_vmem [thread:$0]  (!%p2821_p6), %s3457_s9, 16, %s447_s17, [#allocation21]  }
  0xf4   : > { %s1788_s26 = sadd.s32 4294967294, %s2690_s10   ;;  %s47_s22 = sadd.s32 1, %s2686_s23 }
  0xf5   : > { %p49_p8 = scmp.ge.s32.totalorder %s47_s22, 2  ;;  %s54_s28 = sadd.s32 1, %s2678_s21 }
  0xf6   : > { %p61_p1 = scmp.ne.s32.totalorder %s2678_s21, %s2674_s20  ;;  %p62_p3 = scmp.eq.s32.totalorder %s2690_s10, 0 }
  0xf7   : > { %s3525_s22 = smov (%p49_p8, %s47_s22), 0  ;;  %p67_p12 = scmp.ne.s32.totalorder %s2674_s20, %s2670_s19 }
  0xf8   : > { %p3010_p11 = por %p62_p3, %p61_p1  ;;  %s51_s17 = ssub.s32 %s2686_s23, %s3525_s22 }
  0xf9   : > { %p326_p6 = scmp.eq.s32.totalorder %s2805_s24, 1  ;;  %p52_p13 = scmp.eq.s32.totalorder %s51_s17, 0 }
  0xfa   : > { %p3493_p0 = scmp.eq.s32.totalorder %s2805_s24, 0  ;;  %p332_p7 = scmp.eq.s32.totalorder %s1788_s26, 1 }
  0xfb   : > { %p3025_p4 = por %p326_p6, %p61_p1  ;;  %p2148_p5 = scmp.lt.s32.totalorder %s2690_s10, 2 }
  0xfc   : > { %p3021_p2 = por %p3493_p0, %p67_p12  ;;  %p3032_p9 = por %p332_p7, %p67_p12 }
  0xfd   : > { %s3495_s27 = scalar_select %p3025_p4, 1, 0 }
  0xfe   : > { %s3030_s30 = scalar_select %p52_p13, %s2678_s21, %s54_s28  }
  0xff   : > { %s3496_s1 = scalar_select %p3032_p9, 1, 0 }
 0x100   : > { %s3038_s13 = sand.u32 1, %s2678_s21   ;;  %s2063_s11 = smul.u32 768, %s2686_s23 }
 0x101   : > { %s2062_s12 = smul.u32 48, %s3038_s13  ;;  %s3497_s0 = sld [smem:[#allocation33_spill]] }
 0x102   : > { %p3049_p10 = pnand %p2148_p5, %p3010_p11  ;;  %s461_s16 = scalar_lea.sflag [#allocation6], %s3038_s13 }
 0x103   : > { %s464_s28 = scalar_lea.vmem [#allocation5], %s2062_s12 }
 0x104   : > { %s472_s17 = sshll.u32 %s464_s28, 4  ;;  %p2526_p1 = pneg %p3049_p10  ;;  %s3053_s17 = int_to_ptr.vmem [resolvable:$true] %s472_s17 }
 0x107   : > { %s3045_s2 = scalar_lea.hbm %s3497_s0, %s2063_s11  ;;  %s2529_s15 = scalar_lea.hbm %s3497_s0, 1536 }
 0x108   : > { %s2524_s3 = scalar_lea.hbm %s3045_s2, 768  ;;  %p2530_p11 = scmp.lt.u32.totalorder %s3045_s2, %s3497_s0 }
 0x109   : > { %p2525_p8 = scmp.ne.s32.totalorder %s3045_s2, %s2524_s3  ;;  %p2531_p6 = scmp.lt.u32.totalorder %s2529_s15, %s2524_s3 }
 0x10a   : > { %p2533_p0 = scmp.lt.u32.totalorder %s2524_s3, %s3045_s2 }
 0x10b   : > { %p2527_p3 = pnand %p2526_p1, %p2525_p8  ;;  %p2532_p13 = por %p2531_p6, %p2530_p11 }
 0x10d   : > { %p2528_p12 = pneg %p2527_p3  ;;  %p2534_p7 = por %p2533_p0, %p2532_p13 }
 0x10f   : > { %p2535_p5 = pnand %p2534_p7, %p2528_p12 }
 0x111   : > { %2538 = shalt.err (!%p2535_p5)
}
 0x112   : > { %s2539_s12 = scalar_lea.vmem %s3053_s17, 768  ;;  %s2702_s28 = smov [#allocation5]  }
 0x113   : > { %p2540_p8 = scmp.ne.s32.totalorder %s3053_s17, %s2539_s12  ;;  %s2544_s29 = sshll.u32 %s2702_s28, 4  ;;  %s2545_s29 = int_to_ptr.vmem [resolvable:$false] %s2544_s29 }
 0x114   : > { %s2546_s4 = scalar_lea.vmem %s2545_s29, 1536  ;;  %p2547_p4 = scmp.lt.s32.totalorder %s3053_s17, %s2545_s29 }
 0x115   : > { %p2542_p3 = pnand %p2540_p8, %p2526_p1  ;;  %p2548_p11 = scmp.lt.s32.totalorder %s2546_s4, %s2539_s12 }
 0x117   : > { %p2543_p9 = pneg %p2542_p3  ;;  %p2549_p6 = por %p2548_p11, %p2547_p4 }
 0x119   : > { %p2550_p13 = pnand %p2549_p6, %p2543_p9 }
 0x11b   : > { %2553 = shalt.err (!%p2550_p13)
}
 0x11c   : > { %s2703_s3 = smov 128   ;;  %s2704_s11 = smov 8  }
 0x11d   : > { %2132 = dma.hbm_to_vmem [thread:$0]  (!%p3049_p10), %s3045_s2, 768, %s3053_s17, %s461_s16, %s2703_s3, %s2703_s3, %s2704_s11  }
 0x11e   : > { %s482_s15 = sand.u32 1, %s2690_s10   ;;  %s1802_s18 = sshll.u32 %s3038_s13, 7 }
 0x11f   : > { %s1868_s28 = sshll.u32 %s2686_s23, 11  ;;  %s486_s12 = scalar_lea.vmem [#allocation8], %s1802_s18 }
 0x120   : > { %s494_s29 = sshll.u32 %s486_s12, 4  ;;  %s3499_s5 = sld [smem:[#allocation34_spill]]  ;;  %s3091_s29 = int_to_ptr.vmem [resolvable:$true] %s494_s29 }
 0x121   : > { %s3093_s7 = scalar_lea.sflag [#allocation9], %s482_s15 }
 0x126   : > { %s3089_s6 = scalar_lea.hbm %s3499_s5, %s1868_s28  ;;  %s2559_s0 = scalar_lea.hbm %s3499_s5, 4096 }
 0x127   : > { %s2554_s8 = scalar_lea.hbm %s3089_s6, 2048  ;;  %p2560_p0 = scmp.lt.u32.totalorder %s3089_s6, %s3499_s5 }
 0x128   : > { %p2555_p4 = scmp.ne.s32.totalorder %s3089_s6, %s2554_s8  ;;  %p2561_p7 = scmp.lt.u32.totalorder %s2559_s0, %s2554_s8 }
 0x129   : > { %p2563_p8 = scmp.lt.u32.totalorder %s2554_s8, %s3089_s6 }
 0x12a   : > { %p2557_p9 = pnand %p2555_p4, %p2526_p1  ;;  %p2562_p5 = por %p2561_p7, %p2560_p0 }
 0x12c   : > { %p2558_p12 = pneg %p2557_p9  ;;  %p2564_p3 = por %p2563_p8, %p2562_p5 }
 0x12e   : > { %p2565_p11 = pnand %p2564_p3, %p2558_p12 }
 0x130   : > { %2568 = shalt.err (!%p2565_p11)
}
 0x131   : > { %s2569_s3 = scalar_lea.vmem %s3091_s29, 2048  ;;  %s2705_s11 = smov [#allocation8]  }
 0x132   : > { %p2570_p6 = scmp.ne.s32.totalorder %s3091_s29, %s2569_s3  ;;  %s2574_s15 = sshll.u32 %s2705_s11, 4  ;;  %s2575_s15 = int_to_ptr.vmem [resolvable:$false] %s2574_s15 }
 0x133   : > { %s2576_s18 = scalar_lea.vmem %s2575_s15, 4096  ;;  %p2577_p9 = scmp.lt.s32.totalorder %s3091_s29, %s2575_s15 }
 0x134   : > { %p2572_p13 = pnand %p2570_p6, %p2526_p1  ;;  %p2578_p0 = scmp.lt.s32.totalorder %s2576_s18, %s2569_s3 }
 0x136   : > { %p2573_p4 = pneg %p2572_p13  ;;  %p2579_p7 = por %p2578_p0, %p2577_p9 }
 0x138   : > { %p2580_p5 = pnand %p2579_p7, %p2573_p4 }
 0x13a   : > { %2583 = shalt.err (!%p2580_p5)
}
 0x13b   : > { %s3500_s8 = smov 4   ;;  %s3501_s28 = sld [smem:[#allocation32_spill]] }
 0x13c   : > { %2135 = dma.hbm_to_vmem [thread:$0]  (!%p3049_p10), %s3089_s6, 2048, %s3091_s29, %s3093_s7, %s3489_s25, %s3489_s25, %s3500_s8  }
 0x141   : > { %p3502_p1 = scmp.ne.s32.totalorder %s3501_s28, 0 }
 0x142   : > { %s3125_s12 = sand.u32 (!%p3502_p1), 1, %s2674_s20  }
 0x143   : > { %506 = sbr.rel (%p3502_p1) target bundleno = 1325 (0x52d), region = 64  ;;  %s509_s16 = scalar_lea.sflag (!%p3502_p1), [#allocation6], %s3125_s12 }
 0x144   : > { %s2064_s4 = smul.u32 (!%p3502_p1), 48, %s3125_s12 }
 0x146   : > { %s3131_s26 = scalar_lea.vmem (!%p3502_p1), [#allocation5], %s2064_s4 }
 0x14a   : > { %2637 = dma.done.wait (%p3021_p2), %s509_s16, 768  }
 0x14b   : > { %2639 = vsyncadd (%p3021_p2), %s509_s16, 4294966528  ;;  %s517_s6 = sand.u32 1, %s2805_s24   ;;  %s1807_s7 = sshll.u32 %s3125_s12, 7 }
 0x14c   : > { %s518_s25 = scalar_lea.sflag [#allocation9], %s517_s6  ;;  %s3139_s29 = scalar_lea.vmem [#allocation8], %s1807_s7 }
 0x14d   : > { %2641 = dma.done.wait (%p3021_p2), %s518_s25, 2048  }
 0x14e   : > { %2643 = vsyncadd (%p3021_p2), %s518_s25, 4294965248  ;;  %p3503_p10 = scmp.eq.s32.totalorder %s2805_s24, 0 }
 0x150   : > { %2645 = dma.done.wait (%p3503_p10), [#allocation9], 192   ;;  %p3504_p12 = pmov %p3503_p10 }
 0x151   : > { %p3505_p8 = pmov %p3503_p10 }
 0x152   : > { %2647 = vsyncadd (%p3504_p12), [#allocation9], 4294967104 }
 0x153   : > { %2649 = dma.done.wait (%p3505_p8), [#allocation12], 2048   ;;  %p3506_p3 = pmov %p3505_p8 }
 0x155   : > { %2651 = vsyncadd (%p3506_p3), [#allocation12], 4294965248  ;;  %p3507_p11 = pmov %p3506_p3 }
 0x156   : > { %p3508_p6 = pmov %p3506_p3 }
 0x157   : > { %2653 = dma.done.wait (%p3507_p11), [#allocation15], 1040  }
 0x158   : > { %2655 = vsyncadd (%p3508_p6), [#allocation15], 4294966256  ;;  %p3509_p2 = pmov %p3506_p3 }
 0x15a   : > { %2657 = dma.done.wait (%p3509_p2), [#allocation18], 32   ;;  %p3510_p13 = pmov %p3509_p2 }
 0x15b   : > { %p3511_p4 = pmov %p3509_p2 }
 0x15c   : > { %2659 = vsyncadd (%p3510_p13), [#allocation18], 4294967264 }
 0x15d   : > { %2661 = dma.done.wait (%p3511_p4), [#allocation21], 16   ;;  %p3512_p9 = pmov %p3509_p2 }
 0x15e   : > { %v2222_v0 = vld [vmem:[%s3139_s29] sm:$0xff]   ;;  %v2224_v2 = vld [vmem:[%s3139_s29 + $0x8] sm:$0xff]   ;;  %v2226_v4 = vld [vmem:[%s3139_s29 + $0x10] sm:$0xff]   ;;  %v2706_v17 = vmov 0.0   ;;  %vm2707_vm0 = vmmov 0   ;;  %s1454_s24 = sld [smem:[#allocation4]] }
 0x15f   : > { %2663 = vsyncadd (%p3512_p9), [#allocation21], 4294967280  ;;  %v2223_v1 = vld [vmem:[%s3139_s29 + $0x40] sm:$0xff]   ;;  %1922 = vmatprep.subr.bf16.mxu0 %v2222_v0  ;;  %v2225_v3 = vld [vmem:[%s3139_s29 + $0x48] sm:$0xff]   ;;  %s3381_s14 = scalar_lea.vmem [#allocation22], %s2064_s4  ;;  %s3513_s13 = sld [smem:[#allocation31_spill]] }
 0x160   : > { %1942 = vmatprep.subr.bf16.mxu1 %v2223_v1  ;;  %1923 = vmatpush3.bf16.xpose.msra.mxu0 %v2222_v0  ;;  %v2227_v5 = vld [vmem:[%s3139_s29 + $0x50] sm:$0xff]   ;;  %v2228_v6 = vld [vmem:[%s3139_s29 + $0x18] sm:$0xff]   ;;  %v2238_v7 = vld [vmem:[#allocation10] sm:$0xff]   ;;  %s1599_s2 = sshll.u32 %s3381_s14, 4  ;;  %s3514_s11 = sld [smem:[#allocation42_spill]]  ;;  %s3398_s2 = int_to_ptr.vmem [resolvable:$true] %s1599_s2 }
 0x161   : > { %1943 = vmatpush3.bf16.xpose.msra.mxu1 %v2223_v1  ;;  %1924 = vmatprep.subr.bf16.mxu0 %v2224_v2  ;;  %v2229_v8 = vld [vmem:[%s3139_s29 + $0x58] sm:$0xff]   ;;  %v2230_v9 = vld [vmem:[%s3139_s29 + $0x20] sm:$0xff]   ;;  %v2232_v11 = vld [vmem:[%s3139_s29 + $0x28] sm:$0xff]   ;;  %s1585_s18 = scalar_lea.sflag [#allocation7], %s3125_s12  ;;  %s2584_s8 = scalar_lea.vmem %s3398_s2, 768 }
 0x162   : > { %1944 = vmatprep.subr.bf16.mxu1 %v2225_v3  ;;  %1938 = vmatprep.mubr.bf16.mxu0 %v2238_v7  ;;  %v2231_v10 = vld [vmem:[%s3139_s29 + $0x60] sm:$0xff]   ;;  %v2233_v12 = vld [vmem:[%s3139_s29 + $0x68] sm:$0xff]   ;;  %v2234_v13 = vld [vmem:[%s3139_s29 + $0x30] sm:$0xff]   ;;  %p2585_p0 = scmp.ne.s32.totalorder %s3398_s2, %s2584_s8  ;;  %p3515_p7 = scmp.ne.s32.totalorder %s3495_s27, 0 }
 0x163   : > { %1958 = vmatprep.mubr.bf16.mxu1 %v2238_v7  ;;  %v2235_v14 = vld [vmem:[%s3139_s29 + $0x70] sm:$0xff]   ;;  %v2236_v15 = vld [vmem:[%s3139_s29 + $0x38] sm:$0xff]   ;;  %v2239_v18 = vld [vmem:[#allocation10 + $0x8] ss:$0 sps:$4 sm:$0xff]   ;;  %s2708_s28 = smov [#allocation22]  }
 0x164   : > { %v2237_v16 = vld [vmem:[%s3139_s29 + $0x78] sm:$0xff]   ;;  %v2241_v19 = vld [vmem:[#allocation13] sm:$0xff]   ;;  %v2247_v25 = vld [vmem:[#allocation13 + $0x18] sm:$0xff]   ;;  %p2586_p5 = pnand %p2585_p0, %p3515_p7  ;;  %s2588_s4 = sshll.u32 %s2708_s28, 4  ;;  %s2589_s4 = int_to_ptr.vmem [resolvable:$false] %s2588_s4 }
 0x165   : > { %v2240_v20 = vld [vmem:[#allocation11] sm:$0xff]   ;;  %v2243_v21 = vld [vmem:[#allocation13 + $0x8] sm:$0xff]   ;;  %v2245_v23 = vld [vmem:[#allocation13 + $0x10] sm:$0xff]   ;;  %s2065_s0 = smul.u32 768, %s3513_s13  ;;  %s2590_s16 = scalar_lea.vmem %s2589_s4, 1536 }
 0x166   : > { %v2242_v22 = vld [vmem:[#allocation11 + $0x8] sm:$0xff]   ;;  %v2244_v24 = vld [vmem:[#allocation11 + $0x10] sm:$0xff]   ;;  %v2246_v26 = vld [vmem:[#allocation11 + $0x18] sm:$0xff]   ;;  %p2587_p1 = pneg %p2586_p5  ;;  %p2591_p10 = scmp.lt.s32.totalorder %s3398_s2, %s2589_s4 }
 0x167   : > { %v2249_v27 = vld [vmem:[#allocation13 + $0x20] sm:$0xff]   ;;  %v2251_v29 = vld [vmem:[#allocation13 + $0x28] sm:$0xff]   ;;  %v2253_v31 = vld [vmem:[#allocation13 + $0x30] sm:$0xff]   ;;  %s3396_s15 = scalar_lea.hbm %s3514_s11, %s2065_s0  ;;  %p2592_p12 = scmp.lt.s32.totalorder %s2590_s16, %s2584_s8 }
 0x168   : > { %1925 = vmatpush3.bf16.xpose.msra.mxu0 %v2224_v2  ;;  %v2248_v28 = vld [vmem:[#allocation11 + $0x20] sm:$0xff]   ;;  %v2250_v30 = vld [vmem:[#allocation11 + $0x28] sm:$0xff]   ;;  %v2252_v32 = vld [vmem:[#allocation11 + $0x30] sm:$0xff]  }
 0x169   : > { %1945 = vmatpush3.bf16.xpose.msra.mxu1 %v2225_v3  ;;  %1926 = vmatprep.subr.bf16.mxu0 %v2226_v4  ;;  %v2254_v33 = vld [vmem:[#allocation11 + $0x38] sm:$0xff]   ;;  %v2256_v3 = vld [vmem:[#allocation16] sm:$0xff]   ;;  %p2593_p8 = por %p2592_p12, %p2591_p10 }
 0x16a   : > { %1946 = vmatprep.subr.bf16.mxu1 %v2227_v5  ;;  %v3198_v34 = vld [vmem:[%s3131_s26] sm:$0xff]  ;;  %v3201_v35 = vld [vmem:[%s3131_s26 + $0x8] sm:$0xff]  ;;  %v3214_v38 = vld [vmem:[%s3131_s26 + $0x10] sm:$0xff] }
 0x16b   : > { %v2255_v36 = vld [vmem:[#allocation13 + $0x38] sm:$0xff]   ;;  %v861_v37 = vpack.c.bf16 %v3201_v35, %v3198_v34  ;;  %v2260_v7 = vld [vmem:[#allocation16 + $0x20] sm:$0xff]   ;;  %p2594_p3 = pnand %p2593_p8, %p2587_p1 }
 0x16c   : > { %v3217_v39 = vld [vmem:[%s3131_s26 + $0x18] sm:$0xff]  ;;  %v3224_v41 = vld [vmem:[%s3131_s26 + $0x20] sm:$0xff]  ;;  %v3227_v42 = vld [vmem:[%s3131_s26 + $0x28] sm:$0xff] }
 0x16d   : > { %v862_v40 = vpack.c.bf16 %v3217_v39, %v3214_v38  ;;  %v863_v43 = vpack.c.bf16 %v3227_v42, %v3224_v41 }
 0x170   : > { %1927 = vmatpush3.bf16.xpose.msra.mxu0 %v2226_v4  ;;  %v2257_v4 = vld [vmem:[#allocation16 + $0x8] sm:$0xff]  }
 0x171   : > { %1947 = vmatpush3.bf16.xpose.msra.mxu1 %v2227_v5  ;;  %1928 = vmatprep.subr.bf16.mxu0 %v2228_v6  ;;  %v2258_v5 = vld [vmem:[#allocation16 + $0x10] sm:$0xff]  }
 0x172   : > { %1948 = vmatprep.subr.bf16.mxu1 %v2229_v8 }
 0x178   : > { %1929 = vmatpush3.bf16.xpose.msra.mxu0 %v2228_v6  ;;  %v2259_v6 = vld [vmem:[#allocation16 + $0x18] sm:$0xff]  }
 0x179   : > { %1949 = vmatpush3.bf16.xpose.msra.mxu1 %v2229_v8  ;;  %1930 = vmatprep.subr.bf16.mxu0 %v2230_v9  ;;  %v2261_v8 = vld [vmem:[#allocation16 + $0x28] sm:$0xff]  }
 0x17a   : > { %1950 = vmatprep.subr.bf16.mxu1 %v2231_v10 }
 0x180   : > { %1931 = vmatpush3.bf16.xpose.msra.mxu0 %v2230_v9  ;;  %v2262_v9 = vld [vmem:[#allocation16 + $0x30] sm:$0xff]  }
 0x181   : > { %1951 = vmatpush3.bf16.xpose.msra.mxu1 %v2231_v10  ;;  %1932 = vmatprep.subr.bf16.mxu0 %v2232_v11  ;;  %v2263_v10 = vld [vmem:[#allocation16 + $0x38] sm:$0xff]  }
 0x182   : > { %1952 = vmatprep.subr.bf16.mxu1 %v2233_v12 }
 0x188   : > { %1933 = vmatpush3.bf16.xpose.msra.mxu0 %v2232_v11 }
 0x189   : > { %1953 = vmatpush3.bf16.xpose.msra.mxu1 %v2233_v12  ;;  %1934 = vmatprep.subr.bf16.mxu0 %v2234_v13  ;;  %v1850_v12 = vld [vmem:[#allocation14] ss:$0 sm:$0xff] }
 0x18a   : > { %1954 = vmatprep.subr.bf16.mxu1 %v2235_v14 }
 0x190   : > { %1935 = vmatpush3.bf16.xpose.msra.mxu0 %v2234_v13 }
 0x191   : > { %1955 = vmatpush3.bf16.xpose.msra.mxu1 %v2235_v14  ;;  %1936 = vmatprep.subr.bf16.mxu0 %v2236_v15 }
 0x192   : > { %1956 = vmatprep.subr.bf16.mxu1 %v2237_v16 }
 0x198   : > { %1937 = vmatpush3.bf16.xpose.msra.mxu0 %v2236_v15 }
 0x199   : > { %1957 = vmatpush3.bf16.xpose.msra.mxu1 %v2237_v16  ;;  %1962 = vmatprep.subr.bf16.mxu0 %v2706_v17 }
 0x19a   : > { %1990 = vmatprep.subr.bf16.mxu1 %v2706_v17 }
 0x19f   : > { %1939 = vmatmul.mubr.bf16.vlgmr.msra.gmra.mrb[0].mxu0 %v2239_v18 }
 0x1a0   : > { %1959 = vmatmul.mubr.bf16.vlgmr.msra.gmra.mrb[0].mxu1 %v2239_v18  ;;  %1963 = vmatpush3.bf16.msra.mxu0 %v2241_v19 }
 0x1a1   : > { %1991 = vmatpush3.bf16.msra.mxu1 %v2240_v20  ;;  %1964 = vmatprep.subr.bf16.mxu0 %v2706_v17 }
 0x1a2   : > { %1992 = vmatprep.subr.bf16.mxu1 %v2706_v17  ;;  %2006 = vmatprep.mubr.msk.bf16.mxu1 %vm2707_vm0, %v2706_v17 }
 0x1a3   : > { %1978 = vmatprep.mubr.msk.bf16.mxu0 %vm2707_vm0, %v2706_v17 }
 0x1a4   : > { %1965 = vmatpush3.bf16.msra.mxu0 %v2243_v21 }
 0x1a5   : > { %1993 = vmatpush3.bf16.msra.mxu1 %v2242_v22  ;;  %1966 = vmatprep.subr.bf16.mxu0 %v2706_v17 }
 0x1a6   : > { %1994 = vmatprep.subr.bf16.mxu1 %v2706_v17 }
 0x1a8   : > { %1967 = vmatpush3.bf16.msra.mxu0 %v2245_v23 }
 0x1a9   : > { %1995 = vmatpush3.bf16.msra.mxu1 %v2244_v24  ;;  %1968 = vmatprep.subr.bf16.mxu0 %v2706_v17 }
 0x1aa   : > { %1996 = vmatprep.subr.bf16.mxu1 %v2706_v17 }
 0x1ac   : > { %1969 = vmatpush3.bf16.msra.mxu0 %v2247_v25 }
 0x1ad   : > { %1997 = vmatpush3.bf16.msra.mxu1 %v2246_v26  ;;  %1970 = vmatprep.subr.bf16.mxu0 %v2706_v17 }
 0x1ae   : > { %1998 = vmatprep.subr.bf16.mxu1 %v2706_v17 }
 0x1b0   : > { %1971 = vmatpush3.bf16.msra.mxu0 %v2249_v27 }
 0x1b1   : > { %1999 = vmatpush3.bf16.msra.mxu1 %v2248_v28  ;;  %1972 = vmatprep.subr.bf16.mxu0 %v2706_v17 }
 0x1b2   : > { %2000 = vmatprep.subr.bf16.mxu1 %v2706_v17 }
 0x1b4   : > { %1973 = vmatpush3.bf16.msra.mxu0 %v2251_v29 }
 0x1b5   : > { %2001 = vmatpush3.bf16.msra.mxu1 %v2250_v30  ;;  %1974 = vmatprep.subr.bf16.mxu0 %v2706_v17 }
 0x1b6   : > { %2002 = vmatprep.subr.bf16.mxu1 %v2706_v17 }
 0x1b8   : > { %1975 = vmatpush3.bf16.msra.mxu0 %v2253_v31 }
 0x1b9   : > { %2003 = vmatpush3.bf16.msra.mxu1 %v2252_v32  ;;  %1976 = vmatprep.subr.bf16.mxu0 %v2706_v17 }
 0x1ba   : > { %2004 = vmatprep.subr.bf16.mxu1 %v2706_v17 }
 0x1bc   : > { %1977 = vmatpush3.bf16.msra.mxu0 %v2255_v36 }
 0x1bd   : > { %2005 = vmatpush3.bf16.msra.mxu1 %v2254_v33  ;;  %2018 = vmatprep.subr.bf16.mxu0 %v2706_v17 }
 0x1be   : > { %2046 = vmatprep.subr.bf16.mxu1 %v2706_v17 }
 0x1c0   : > { %2007 = vmatmul.mubr.bf16.vlgmr.msra.gmra.mrb[4].mxu1 %v861_v37 }
 0x1c1   : > { %2010 = vmatprep.mubr.msk.bf16.mxu1 %vm2707_vm0, %v2706_v17  ;;  %2054 = vmatpush3.bf16.msra.mxu1 %v2256_v3 }
 0x1c2   : > { %2047 = vmatprep.subr.bf16.mxu1 %v2706_v17 }
 0x1c5   : > { %2055 = vmatpush3.bf16.msra.mxu1 %v2257_v4 }
 0x1c6   : > { %2048 = vmatprep.subr.bf16.mxu1 %v2706_v17 }
 0x1c8   : > { %2011 = vmatmul.mubr.bf16.gmra.mrb[8].mxu1 %v862_v40 }
 0x1c9   : > { %2014 = vmatprep.mubr.msk.bf16.mxu1 %vm2707_vm0, %v2706_v17  ;;  %2056 = vmatpush3.bf16.msra.mxu1 %v2258_v5 }
 0x1ca   : > { %2049 = vmatprep.subr.bf16.mxu1 %v2706_v17 }
 0x1cd   : > { %2057 = vmatpush3.bf16.msra.mxu1 %v2259_v6 }
 0x1ce   : > { %2050 = vmatprep.subr.bf16.mxu1 %v2706_v17 }
 0x1d0   : > { %2015 = vmatmul.mubr.bf16.gmra.mrb[12].mxu1 %v863_v43 }
 0x1d1   : > { %2038 = vmatprep.mubr.msk.bf16.mxu1 %vm2707_vm0, %v2706_v17  ;;  %2058 = vmatpush3.bf16.msra.mxu1 %v2260_v7 }
 0x1d2   : > { %2051 = vmatprep.subr.bf16.mxu1 %v2706_v17 }
 0x1d5   : > { %2059 = vmatpush3.bf16.msra.mxu1 %v2261_v8 }
 0x1d6   : > { %2052 = vmatprep.subr.bf16.mxu1 %v2706_v17 }
 0x1d9   : > { %2060 = vmatpush3.bf16.msra.mxu1 %v2262_v9 }
 0x1da   : > { %2053 = vmatprep.subr.bf16.mxu1 %v2706_v17 }
 0x1dd   : > { %2061 = vmatpush3.bf16.msra.mxu1 %v2263_v10 }
 0x272   : > { %v1940_v44 = vpop.f32.mrb[0].mxu0 }
 0x273   : > { %v1960_v45 = vpop.f32.mrb[0].mxu1  ;;  %v733_v46 = vpop.f32.mrb[1].mxu0 }
 0x274   : > { %v829_v47 = vpop.f32.mrb[1].mxu1  ;;  %v1941_v48 = vpop.f32.mrb[2].mxu0 }
 0x275   : > { %v844_v49 = vpack.c.bf16 %v829_v47, %v1940_v44  ;;  %v736_v50 = vpop.f32.mrb[3].mxu0  ;;  %v1961_v51 = vpop.f32.mrb[2].mxu1 }
 0x276   : > { %v843_v52 = vpack.c.bf16 %v736_v50, %v733_v46  ;;  %v832_v53 = vpop.f32.mrb[3].mxu1 }
 0x277   : > { %v845_v54 = vpack.c.bf16 %v1960_v45, %v832_v53 }
 0x278   : > { %1979 = vmatmul.mubr.bf16.vlgmr.msra.gmra.mrb[4].mxu0 %v843_v52 }
 0x279   : > { %1982 = vmatprep.mubr.msk.bf16.mxu0 %vm2707_vm0, %v2706_v17  ;;  %2019 = vmatpush3.bf16.msra.mxu0 %v2256_v3 }
 0x27a   : > { %2020 = vmatprep.subr.bf16.mxu0 %v2706_v17 }
 0x27d   : > { %2021 = vmatpush3.bf16.msra.mxu0 %v2257_v4 }
 0x27e   : > { %2022 = vmatprep.subr.bf16.mxu0 %v2706_v17 }
 0x280   : > { %1983 = vmatmul.mubr.bf16.gmra.mrb[8].mxu0 %v844_v49 }
 0x281   : > { %1986 = vmatprep.mubr.msk.bf16.mxu0 %vm2707_vm0, %v2706_v17  ;;  %2023 = vmatpush3.bf16.msra.mxu0 %v2258_v5 }
 0x282   : > { %2024 = vmatprep.subr.bf16.mxu0 %v2706_v17 }
 0x285   : > { %2025 = vmatpush3.bf16.msra.mxu0 %v2259_v6 }
 0x286   : > { %2026 = vmatprep.subr.bf16.mxu0 %v2706_v17 }
 0x288   : > { %1987 = vmatmul.mubr.bf16.gmra.mrb[12].mxu0 %v845_v54 }
 0x289   : > { %2034 = vmatprep.mubr.msk.bf16.mxu0 %vm2707_vm0, %v2706_v17  ;;  %2027 = vmatpush3.bf16.msra.mxu0 %v2260_v7 }
 0x28a   : > { %2028 = vmatprep.subr.bf16.mxu0 %v2706_v17 }
 0x28d   : > { %2029 = vmatpush3.bf16.msra.mxu0 %v2261_v8 }
 0x28e   : > { %2030 = vmatprep.subr.bf16.mxu0 %v2706_v17 }
 0x291   : > { %2031 = vmatpush3.bf16.msra.mxu0 %v2262_v9 }
 0x292   : > { %2032 = vmatprep.subr.bf16.mxu0 %v2706_v17 }
 0x293   : > { %v1086_v55 = vpop.f32.mrb[4].mxu1 }
 0x294   : > { %v2008_v56 = vpop.f32.mrb[5].mxu1 }
 0x295   : > { %v1089_v57 = vpop.f32.mrb[6].mxu1  ;;  %2033 = vmatpush3.bf16.msra.mxu0 %v2263_v10 }
 0x296   : > { %v2009_v58 = vpop.f32.mrb[7].mxu1 }
 0x29b   : > { %v1094_v59 = vpop.f32.mrb[8].mxu1 }
 0x29c   : > { %v2012_v60 = vpop.f32.mrb[9].mxu1 }
 0x29d   : > { %v3239_v61 = vpop.f32.mrb[10].mxu1 }
 0x29e   : > { %v2013_v62 = vpop.f32.mrb[11].mxu1 }
 0x2a3   : > { %v3241_v63 = vpop.f32.mrb[12].mxu1 }
 0x2a4   : > { %v2016_v0 = vpop.f32.mrb[13].mxu1 }
 0x2a5   : > { %v3243_v1 = vpop.f32.mrb[14].mxu1 }
 0x2a6   : > { %v2017_v2 = vpop.f32.mrb[15].mxu1 }
 0x34b   : > { %v981_v11 = vpop.f32.mrb[4].mxu0 }
 0x34c   : > { %v1087_v13 = vadd.f32 %v1086_v55, %v981_v11  ;;  %v1980_v14 = vpop.f32.mrb[5].mxu0 }
 0x34d   : > { %v984_v15 = vpop.f32.mrb[6].mxu0 }
 0x34e   : > { %v3259_v16 = vadd.f32 %v1850_v12, %v1087_v13  ;;  %v1090_v18 = vadd.f32 %v1089_v57, %v984_v15  ;;  %v1981_v19 = vpop.f32.mrb[7].mxu0 }
 0x350   : > { %v3262_v20 = vmul.f32 0.70710677, %v3259_v16  ;;  %v3264_v21 = vadd.f32 %v1850_v12, %v1090_v18 }
 0x352   : > { %v1128_v22 = vand.u32 2147483647, %v3262_v20  ;;  %v3268_v23 = vmul.f32 0.70710677, %v3264_v21  ;;  %vm1248_vm1 = vcmp.ge.f32.partialorder %v3262_v20, 0.0 }
 0x353   : > { %v989_v24 = vpop.f32.mrb[8].mxu0 }
 0x354   : > { %v1134_v25 = vmul.f32 0.3275911, %v1128_v22  ;;  %v1129_v26 = vand.u32 2147483647, %v3268_v23  ;;  %v1095_v27 = vadd.f32 %v1094_v59, %v989_v24  ;;  %v1984_v28 = vpop.f32.mrb[9].mxu0  ;;  %v1212_v49 = vsub.f32 0.0, %v1128_v22 }
 0x355   : > { %v992_v31 = vpop.f32.mrb[10].mxu0  ;;  %vm1249_vm2 = vcmp.ge.f32.partialorder %v3268_v23, 0.0 }
 0x356   : > { %v1140_v29 = vadd.f32 1.0, %v1134_v25  ;;  %v1135_v30 = vmul.f32 0.3275911, %v1129_v26  ;;  %v3271_v32 = vadd.f32 %v1850_v12, %v1095_v27  ;;  %v1098_v33 = vadd.f32 %v3239_v61, %v992_v31  ;;  %v1985_v36 = vpop.f32.mrb[11].mxu0 }
 0x357   : > { %v1218_v59 = vmul.f32 %v1212_v49, %v1128_v22  ;;  %v1213_v60 = vsub.f32 0.0, %v1129_v26 }
 0x358   : > { %2264 = vrcp.f32 %v1140_v29  ;;  %v1141_v37 = vadd.f32 1.0, %v1135_v30  ;;  %v3275_v40 = vmul.f32 0.70710677, %v3271_v32  ;;  %v3277_v43 = vadd.f32 %v1850_v12, %v1098_v33 }
 0x359   : > { %v1224_v7 = vmul.f32 1.442695, %v1218_v59  ;;  %v1219_v8 = vmul.f32 %v1213_v60, %v1129_v26 }
 0x35a   : > { %2266 = vrcp.f32 %v1141_v37  ;;  %v1130_v44 = vand.u32 2147483647, %v3275_v40  ;;  %v3281_v45 = vmul.f32 0.70710677, %v3277_v43  ;;  %vm1250_vm3 = vcmp.ge.f32.partialorder %v3275_v40, 0.0 }
 0x35b   : > { %v997_v46 = vpop.f32.mrb[12].mxu0  ;;  %v1226_v18 = vmul.f32 1.442695, %v1219_v8  ;;  %v1268_v40 = vmul.f32 0.5, %v3271_v32 }
 0x35c   : > { %v1103_v47 = vadd.f32 %v3241_v63, %v997_v46  ;;  %v1988_v48 = vpop.f32.mrb[13].mxu0  ;;  %v1136_v50 = vmul.f32 0.3275911, %v1130_v44  ;;  %v1131_v51 = vand.u32 2147483647, %v3281_v45  ;;  %v1214_v13 = vsub.f32 0.0, %v1130_v44 }
 0x35d   : > { %v1000_v53 = vpop.f32.mrb[14].mxu0  ;;  %vm1251_vm4 = vcmp.ge.f32.partialorder %v3281_v45, 0.0 }
 0x35e   : > { %v3285_v52 = vadd.f32 %v1850_v12, %v1103_v47  ;;  %v1142_v54 = vadd.f32 1.0, %v1136_v50  ;;  %v1137_v55 = vmul.f32 0.3275911, %v1131_v51  ;;  %v1989_v56 = vpop.f32.mrb[15].mxu0  ;;  %v1106_v58 = vadd.f32 %v3243_v1, %v1000_v53 }
 0x35f   : > { %v1215_v22 = vsub.f32 0.0, %v1131_v51  ;;  %v1220_v28 = vmul.f32 %v1214_v13, %v1130_v44 }
 0x360   : > { %v3288_v57 = vmul.f32 0.70710677, %v3285_v52  ;;  %2268 = vrcp.f32 %v1142_v54  ;;  %v1143_v61 = vadd.f32 1.0, %v1137_v55  ;;  %v3292_v0 = vadd.f32 %v1850_v12, %v1106_v58 }
 0x361   : > { %v1221_v37 = vmul.f32 %v1215_v22, %v1131_v51  ;;  %v1228_v48 = vmul.f32 1.442695, %v1220_v28 }
 0x362   : > { %v2265_v62 = vpop.eup %2264  ;;  %v1132_v63 = vand.u32 2147483647, %v3288_v57  ;;  %2270 = vrcp.f32 %v1143_v61  ;;  %v3295_v4 = vmul.f32 0.70710677, %v3292_v0  ;;  %vm1252_vm5 = vcmp.ge.f32.partialorder %v3288_v57, 0.0 }
 0x363   : > { %v1158_v2 = vmul.f32 1.0614054, %v2265_v62  ;;  %v1230_v60 = vmul.f32 1.442695, %v1221_v37 }
 0x364   : > { %v1138_v3 = vmul.f32 0.3275911, %v1132_v63  ;;  %v2267_v5 = vpop.eup %2266  ;;  %v1133_v10 = vand.u32 2147483647, %v3295_v4  ;;  %v1216_v46 = vsub.f32 0.0, %v1132_v63  ;;  %vm1253_vm6 = vcmp.ge.f32.partialorder %v3295_v4, 0.0 }
 0x365   : > { %v1164_v6 = vadd.f32 -1.4531521, %v1158_v2  ;;  %v1159_v1 = vmul.f32 1.0614054, %v2267_v5 }
 0x366   : > { %v1144_v9 = vadd.f32 1.0, %v1138_v3  ;;  %v1139_v12 = vmul.f32 0.3275911, %v1133_v10  ;;  %v1217_v44 = vsub.f32 0.0, %v1133_v10  ;;  %v1222_v61 = vmul.f32 %v1216_v46, %v1132_v63 }
 0x367   : > { %v1170_v11 = vmul.f32 %v2265_v62, %v1164_v6  ;;  %v1165_v14 = vadd.f32 -1.4531521, %v1159_v1 }
 0x368   : > { %2272 = vrcp.f32 %v1144_v9  ;;  %v1145_v24 = vadd.f32 1.0, %v1139_v12  ;;  %v1223_v1 = vmul.f32 %v1217_v44, %v1133_v10  ;;  %v1232_v63 = vmul.f32 1.442695, %v1222_v61 }
 0x369   : > { %v1176_v15 = vadd.f32 1.4214138, %v1170_v11  ;;  %2274 = vpow2.f32 %v1224_v7  ;;  %v1171_v19 = vmul.f32 %v2267_v5, %v1165_v14  ;;  %v1267_v61 = vmul.f32 0.5, %v3264_v21 }
 0x36a   : > { %v3298_v25 = vpop.eup %2268  ;;  %2276 = vrcp.f32 %v1145_v24  ;;  %v1234_v28 = vmul.f32 1.442695, %v1223_v1 }
 0x36b   : > { %v1182_v27 = vmul.f32 %v2265_v62, %v1176_v15  ;;  %v1177_v26 = vadd.f32 1.4214138, %v1171_v19  ;;  %v1160_v29 = vmul.f32 1.0614054, %v3298_v25  ;;  %2278 = vpow2.f32 %v1226_v18 }
 0x36c   : > { %v3301_v31 = vpop.eup %2270  ;;  %2280 = vpow2.f32 %v1228_v48  ;;  %v1266_v48 = vmul.f32 0.5, %v3259_v16 }
 0x36d   : > { %v1188_v30 = vadd.f32 -0.28449672, %v1182_v27  ;;  %v1183_v33 = vmul.f32 %v2267_v5, %v1177_v26  ;;  %v1166_v36 = vadd.f32 -1.4531521, %v1160_v29  ;;  %v1161_v49 = vmul.f32 1.0614054, %v3301_v31 }
 0x36e   : > { %2282 = vpow2.f32 %v1230_v60 }
 0x36f   : > { %v1194_v47 = vmul.f32 %v2265_v62, %v1188_v30  ;;  %v1189_v50 = vadd.f32 -0.28449672, %v1183_v33  ;;  %v1172_v53 = vmul.f32 %v3298_v25, %v1166_v36  ;;  %v1167_v55 = vadd.f32 -1.4531521, %v1161_v49 }
 0x370   : > { %2284 = vpow2.f32 %v1232_v63 }
 0x371   : > { %v1200_v54 = vadd.f32 0.2548296, %v1194_v47  ;;  %v1195_v58 = vmul.f32 %v2267_v5, %v1189_v50  ;;  %v1178_v59 = vadd.f32 1.4214138, %v1172_v53  ;;  %v1173_v51 = vmul.f32 %v3301_v31, %v1167_v55 }
 0x372   : > { %v3305_v56 = vpop.eup %2272  ;;  %2286 = vpow2.f32 %v1234_v28  ;;  %v1269_v28 = vmul.f32 0.5, %v3277_v43  ;;  %v1270_v43 = vmul.f32 0.5, %v3285_v52 }
 0x373   : > { %v1206_v2 = vmul.f32 %v2265_v62, %v1200_v54  ;;  %v1162_v3 = vmul.f32 1.0614054, %v3305_v56  ;;  %v2275_v6 = vpop.eup %2274  ;;  %v1201_v7 = vadd.f32 0.2548296, %v1195_v58  ;;  %v1184_v8 = vmul.f32 %v3298_v25, %v1178_v59 }
 0x374   : > { %v1179_v11 = vadd.f32 1.4214138, %v1173_v51  ;;  %v3310_v14 = vpop.eup %2276 }
 0x375   : > { %v1236_v9 = vmul.f32 %v2275_v6, %v1206_v2  ;;  %v1168_v13 = vadd.f32 -1.4531521, %v1162_v3  ;;  %v1207_v12 = vmul.f32 %v2267_v5, %v1201_v7  ;;  %v1190_v15 = vadd.f32 -0.28449672, %v1184_v8  ;;  %v2279_v62 = vpop.eup %2278 }
 0x376   : > { %v1185_v19 = vmul.f32 %v3301_v31, %v1179_v11  ;;  %v1163_v22 = vmul.f32 1.0614054, %v3310_v14  ;;  %v2281_v44 = vpop.eup %2280 }
 0x377   : > { %v1242_v18 = vsub.f32 1.0, %v1236_v9  ;;  %v1174_v24 = vmul.f32 %v3305_v56, %v1168_v13  ;;  %v1237_v27 = vmul.f32 %v2279_v62, %v1207_v12  ;;  %v1196_v10 = vmul.f32 %v3298_v25, %v1190_v15 }
 0x378   : > { %v1191_v29 = vadd.f32 -0.28449672, %v1185_v19  ;;  %v1169_v30 = vadd.f32 -1.4531521, %v1163_v22 }
 0x379   : > { %v1254_v26 = vsub.f32 0.0, %v1242_v18  ;;  %v1243_v5 = vsub.f32 1.0, %v1237_v27  ;;  %v1202_v33 = vadd.f32 0.2548296, %v1196_v10  ;;  %v1180_v36 = vadd.f32 1.4214138, %v1174_v24 }
 0x37a   : > { %v1197_v46 = vmul.f32 %v3301_v31, %v1191_v29  ;;  %v1175_v47 = vmul.f32 %v3310_v14, %v1169_v30 }
 0x37b   : > { %v1260_v37 = vsel %vm1248_vm1, %v1242_v18, %v1254_v26  ;;  %v1255_v49 = vsub.f32 0.0, %v1243_v5  ;;  %v1208_v50 = vmul.f32 %v3298_v25, %v1202_v33  ;;  %v1186_v53 = vmul.f32 %v3305_v56, %v1180_v36  ;;  %v2283_v25 = vpop.eup %2282 }
 0x37c   : > { %v1272_v54 = vadd.f32 1.0, %v1260_v37  ;;  %v1203_v20 = vadd.f32 0.2548296, %v1197_v46  ;;  %v1181_v55 = vadd.f32 1.4214138, %v1175_v47  ;;  %v2285_v63 = vpop.eup %2284  ;;  %v1271_v47 = vmul.f32 0.5, %v3292_v0 }
 0x37d   : > { %v1261_v58 = vsel %vm1249_vm2, %v1243_v5, %v1255_v49  ;;  %v1238_v59 = vmul.f32 %v2281_v44, %v1208_v50  ;;  %v1192_v60 = vadd.f32 -0.28449672, %v1186_v53  ;;  %v2287_v10 = vpop.eup %2286  ;;  %v1859_v53 = vld [vmem:[#allocation17] ss:$0 sm:$0xff] }
 0x37e   : > { %v1273_v2 = vadd.f32 1.0, %v1261_v58  ;;  %v1209_v16 = vmul.f32 %v3301_v31, %v1203_v20  ;;  %v1187_v51 = vmul.f32 %v3310_v14, %v1181_v55  ;;  %v1278_v7 = vmul.f32 %v1272_v54, %v1266_v48 }
 0x37f   : > { %v1244_v3 = vsub.f32 1.0, %v1238_v59  ;;  %v1198_v6 = vmul.f32 %v3305_v56, %v1192_v60  ;;  %v1455_v54 = vstv %s1454_s24 }
 0x380   : > { %v1279_v8 = vmul.f32 %v1273_v2, %v1267_v61  ;;  %v1239_v23 = vmul.f32 %v2283_v25, %v1209_v16  ;;  %v1193_v1 = vadd.f32 -0.28449672, %v1187_v51 }
 0x381   : > { %v1256_v9 = vsub.f32 0.0, %v1244_v3  ;;  %v1204_v11 = vadd.f32 0.2548296, %v1198_v6 }
 0x382   : > { %v1290_v13 = vpack.c.bf16 %v1279_v8, %v1278_v7  ;;  %v1245_v12 = vsub.f32 1.0, %v1239_v23  ;;  %v1199_v21 = vmul.f32 %v3310_v14, %v1193_v1 }
 0x383   : > { %v1262_v15 = vsel %vm1250_vm3, %v1244_v3, %v1256_v9  ;;  %v1210_v31 = vmul.f32 %v3305_v56, %v1204_v11 }
 0x384   : > { %v1257_v62 = vsub.f32 0.0, %v1245_v12  ;;  %2035 = vmatmul.mubr.bf16.vlgmr.msra.gmra.mrb[16].mxu0 %v1290_v13  ;;  %v1205_v18 = vadd.f32 0.2548296, %v1199_v21  ;;  %v1274_v19 = vadd.f32 1.0, %v1262_v15 }
 0x385   : > { %v1240_v22 = vmul.f32 %v2285_v63, %v1210_v31 }
 0x386   : > { %v1263_v24 = vsel %vm1251_vm4, %v1245_v12, %v1257_v62  ;;  %v1211_v27 = vmul.f32 %v3310_v14, %v1205_v18  ;;  %v1280_v56 = vmul.f32 %v1274_v19, %v1268_v40 }
 0x387   : > { %v1275_v26 = vadd.f32 1.0, %v1263_v24  ;;  %v1246_v29 = vsub.f32 1.0, %v1240_v22 }
 0x388   : > { %v1241_v30 = vmul.f32 %v2287_v10, %v1211_v27 }
 0x389   : > { %v1281_v5 = vmul.f32 %v1275_v26, %v1269_v28  ;;  %v1258_v33 = vsub.f32 0.0, %v1246_v29 }
 0x38a   : > { %v1247_v36 = vsub.f32 1.0, %v1241_v30 }
 0x38b   : > { %v1291_v37 = vpack.c.bf16 %v1281_v5, %v1280_v56  ;;  %v1264_v45 = vsel %vm1252_vm5, %v1246_v29, %v1258_v33 }
 0x38c   : > { %v1259_v46 = vsub.f32 0.0, %v1247_v36  ;;  %v1276_v14 = vadd.f32 1.0, %v1264_v45 }
 0x38d   : > { %2039 = vmatmul.mubr.bf16.vlgmr.msra.gmra.mrb[16].mxu1 %v1291_v37 }
 0x38e   : > { %2042 = vmatprep.mubr.msk.bf16.mxu1 %vm2707_vm0, %v2706_v17  ;;  %v1265_v32 = vsel %vm1253_vm6, %v1247_v36, %v1259_v46  ;;  %v1282_v49 = vmul.f32 %v1276_v14, %v1270_v43 }
 0x38f   : > { %v1277_v48 = vadd.f32 1.0, %v1265_v32 }
 0x391   : > { %v1283_v50 = vmul.f32 %v1277_v48, %v1271_v47 }
 0x393   : > { %v1292_v57 = vpack.c.bf16 %v1283_v50, %v1282_v49 }
 0x395   : > { %2043 = vmatmul.mubr.bf16.gmra.mrb[20].mxu1 %v1292_v57 }
 0x457   : > { %v1391_v44 = vpop.f32.mrb[16].mxu0 }
 0x458   : > { %v1448_v4 = vadd.f32 %v1859_v53, %v1391_v44  ;;  %v2036_v20 = vpop.f32.mrb[17].mxu0 }
 0x459   : > { %v1394_v55 = vpop.f32.mrb[18].mxu0 }
 0x45a   : > { %v1456_v58 = vmul.f32 %v1455_v54, %v1448_v4  ;;  %v1449_v59 = vadd.f32 %v1859_v53, %v1394_v55  ;;  %v2037_v17 = vpop.f32.mrb[19].mxu0 }
 0x45c   : > { %v1457_v60 = vmul.f32 %v1455_v54, %v1449_v59  ;;  %v3341_v52 = vadd.f32 %v1456_v58, %v3198_v34 }
 0x45e   : > { %1468 = vadd.xlane.f32.xlu0 %v3341_v52  ;;  %v3345_v0 = vadd.f32 %v1457_v60, %v3201_v35  ;;  %v1486_v34 = vmul.f32 %v3341_v52, %v3341_v52 }
 0x460   : > { %v1399_v61 = vpop.f32.mrb[16].mxu1  ;;  %v1487_v2 = vmul.f32 %v3345_v0, %v3345_v0 }
 0x461   : > { %v1450_v16 = vadd.f32 %v1859_v53, %v1399_v61  ;;  %v2040_v51 = vpop.f32.mrb[17].mxu1 }
 0x462   : > { %v1402_v25 = vpop.f32.mrb[18].mxu1  ;;  %1470 = vadd.xlane.f32.xlu0 %v3345_v0  ;;  %1494 = vadd.xlane.f32.xlu1 %v1487_v2 }
 0x463   : > { %v1458_v3 = vmul.f32 %v1455_v54, %v1450_v16  ;;  %v1451_v6 = vadd.f32 %v1859_v53, %v1402_v25  ;;  %v2041_v7 = vpop.f32.mrb[19].mxu1 }
 0x464   : > { %v1860_v7 = vld [vmem:[#allocation19] ss:$0 sm:$0xff] }
 0x465   : > { %v1459_v8 = vmul.f32 %v1455_v54, %v1451_v6  ;;  %v3353_v35 = vadd.f32 %v1458_v3, %v3214_v38 }
 0x466   : > { %1492 = vadd.xlane.f32.xlu0 %v1486_v34 }
 0x467   : > { %1472 = vadd.xlane.f32.xlu1 %v3353_v35  ;;  %v1488_v1 = vmul.f32 %v3353_v35, %v3353_v35  ;;  %v3359_v13 = vadd.f32 %v1459_v8, %v3217_v39 }
 0x468   : > { %v1407_v23 = vpop.f32.mrb[20].mxu1 }
 0x469   : > { %v1452_v9 = vadd.f32 %v1859_v53, %v1407_v23  ;;  %v2044_v11 = vpop.f32.mrb[21].mxu1  ;;  %v1489_v62 = vmul.f32 %v3359_v13, %v3359_v13 }
 0x46a   : > { %v1410_v12 = vpop.f32.mrb[22].mxu1  ;;  %1496 = vadd.xlane.f32.xlu0 %v1488_v1 }
 0x46b   : > { %v1460_v21 = vmul.f32 %v1455_v54, %v1452_v9  ;;  %v1453_v15 = vadd.f32 %v1859_v53, %v1410_v12  ;;  %v2045_v31 = vpop.f32.mrb[23].mxu1  ;;  %1474 = vadd.xlane.f32.xlu1 %v3359_v13  ;;  %v1861_v12 = vld [vmem:[#allocation20] ss:$0 sm:$0xff] }
 0x46d   : > { %v1461_v38 = vmul.f32 %v1455_v54, %v1453_v15  ;;  %v3363_v63 = vadd.f32 %v1460_v21, %v3224_v41 }
 0x46f   : > { %1476 = vadd.xlane.f32.xlu0 %v3363_v63  ;;  %1498 = vadd.xlane.f32.xlu1 %v1489_v62  ;;  %v1490_v39 = vmul.f32 %v3363_v63, %v3363_v63  ;;  %v3371_v18 = vadd.f32 %v1461_v38, %v3227_v42 }
 0x471   : > { %v1491_v19 = vmul.f32 %v3371_v18, %v3371_v18 }
 0x473   : > { %1500 = vadd.xlane.f32.xlu0 %v1490_v39  ;;  %1478 = vadd.xlane.f32.xlu1 %v3371_v18 }
 0x477   : > { %1502 = vadd.xlane.f32.xlu1 %v1491_v19 }
 0x4eb   : > { %v1469_v41 = vpop.xlane.xlu0 %1468 }
 0x4ec   : > { %v1480_v27 = vmul.f32 0.03125, %v1469_v41 }
 0x4ee   : > { %v1510_v29 = vmul.f32 %v1480_v27, %v1480_v27  ;;  %v1528_v6 = vsub.f32 %v3341_v52, %v1480_v27 }
 0x4ef   : > { %v1471_v22 = vpop.xlane.xlu0 %1470  ;;  %v1495_v24 = vpop.xlane.xlu1 %1494 }
 0x4f0   : > { %v1481_v10 = vmul.f32 0.03125, %v1471_v22  ;;  %v1505_v28 = vmul.f32 0.03125, %v1495_v24 }
 0x4f2   : > { %v1511_v40 = vmul.f32 %v1481_v10, %v1481_v10  ;;  %v1529_v16 = vsub.f32 %v3345_v0, %v1481_v10 }
 0x4f3   : > { %v1493_v26 = vpop.xlane.xlu0 %1492 }
 0x4f4   : > { %v1517_v30 = vsub.f32 %v1505_v28, %v1511_v40  ;;  %v1504_v56 = vmul.f32 0.03125, %v1493_v26  ;;  %v1473_v42 = vpop.xlane.xlu1 %1472 }
 0x4f5   : > { %v1482_v5 = vmul.f32 0.03125, %v1473_v42 }
 0x4f6   : > { %v1523_v33 = vmax.f32 %v1517_v30, 0.0  ;;  %v1516_v36 = vsub.f32 %v1504_v56, %v1510_v29 }
 0x4f7   : > { %v1497_v37 = vpop.xlane.xlu0 %1496  ;;  %v1512_v14 = vmul.f32 %v1482_v5, %v1482_v5  ;;  %v1530_v0 = vsub.f32 %v3353_v35, %v1482_v5 }
 0x4f8   : > { %v1535_v45 = vadd.f32 1e-05, %v1523_v33  ;;  %v1522_v46 = vmax.f32 %v1516_v36, 0.0  ;;  %v1506_v32 = vmul.f32 0.03125, %v1497_v37  ;;  %v1475_v43 = vpop.xlane.xlu1 %1474 }
 0x4f9   : > { %v1483_v47 = vmul.f32 0.03125, %v1475_v43 }
 0x4fa   : > { %2288 = vrsqrt.f32 %v1535_v45  ;;  %v1534_v48 = vadd.f32 1e-05, %v1522_v46  ;;  %v1518_v49 = vsub.f32 %v1506_v32, %v1512_v14 }
 0x4fb   : > { %v1513_v44 = vmul.f32 %v1483_v47, %v1483_v47  ;;  %v1531_v35 = vsub.f32 %v3359_v13, %v1483_v47 }
 0x4fc   : > { %2290 = vrsqrt.f32 %v1534_v48  ;;  %v1524_v50 = vmax.f32 %v1518_v49, 0.0  ;;  %v1477_v57 = vpop.xlane.xlu0 %1476  ;;  %v1499_v53 = vpop.xlane.xlu1 %1498 }
 0x4fd   : > { %v1484_v54 = vmul.f32 0.03125, %v1477_v57  ;;  %v1507_v4 = vmul.f32 0.03125, %v1499_v53 }
 0x4fe   : > { %v1536_v20 = vadd.f32 1e-05, %v1524_v50 }
 0x4ff   : > { %v1519_v55 = vsub.f32 %v1507_v4, %v1513_v44  ;;  %v1514_v17 = vmul.f32 %v1484_v54, %v1484_v54  ;;  %v1532_v26 = vsub.f32 %v3363_v63, %v1484_v54 }
 0x500   : > { %2292 = vrsqrt.f32 %v1536_v20  ;;  %v1501_v58 = vpop.xlane.xlu0 %1500  ;;  %v1479_v59 = vpop.xlane.xlu1 %1478 }
 0x501   : > { %v1525_v60 = vmax.f32 %v1519_v55, 0.0  ;;  %v1508_v61 = vmul.f32 0.03125, %v1501_v58  ;;  %v1485_v2 = vmul.f32 0.03125, %v1479_v59 }
 0x503   : > { %v1537_v51 = vadd.f32 1e-05, %v1525_v60  ;;  %v1520_v25 = vsub.f32 %v1508_v61, %v1514_v17  ;;  %v1515_v34 = vmul.f32 %v1485_v2, %v1485_v2  ;;  %v1533_v33 = vsub.f32 %v3371_v18, %v1485_v2 }
 0x504   : > { %v2289_v3 = vpop.eup %2288  ;;  %v1503_v8 = vpop.xlane.xlu1 %1502 }
 0x505   : > { %v1547_v23 = vmul.f32 %v2289_v3, %v1529_v16  ;;  %2294 = vrsqrt.f32 %v1537_v51  ;;  %v1526_v1 = vmax.f32 %v1520_v25, 0.0  ;;  %v1509_v9 = vmul.f32 0.03125, %v1503_v8 }
 0x506   : > { %v2291_v11 = vpop.eup %2290 }
 0x507   : > { %v1560_v21 = vmul.f32 %v1860_v7, %v1547_v23  ;;  %v1546_v15 = vmul.f32 %v2291_v11, %v1528_v6  ;;  %v1538_v31 = vadd.f32 1e-05, %v1526_v1  ;;  %v1521_v38 = vsub.f32 %v1509_v9, %v1515_v34 }
 0x509   : > { %v1573_v62 = vadd.f32 %v1861_v12, %v1560_v21  ;;  %v1559_v39 = vmul.f32 %v1860_v7, %v1546_v15  ;;  %2296 = vrsqrt.f32 %v1538_v31  ;;  %v1527_v52 = vmax.f32 %v1521_v38, 0.0 }
 0x50a   : > { %v2293_v19 = vpop.eup %2292 }
 0x50b   : > { %1579 = vst [vmem:[%s3381_s14 + $0x8] sm:$0xff] %v1573_v62  ;;  %v1572_v41 = vadd.f32 %v1861_v12, %v1559_v39  ;;  %v1548_v22 = vmul.f32 %v2293_v19, %v1530_v0  ;;  %v1539_v24 = vadd.f32 1e-05, %v1527_v52 }
 0x50d   : > { %1578 = vst [vmem:[%s3381_s14] sm:$0xff] %v1572_v41  ;;  %v1561_v27 = vmul.f32 %v1860_v7, %v1548_v22  ;;  %2298 = vrsqrt.f32 %v1539_v24 }
 0x50f   : > { %v2295_v10 = vpop.eup %2294  ;;  %v1574_v40 = vadd.f32 %v1861_v12, %v1561_v27 }
 0x510   : > { %v1549_v28 = vmul.f32 %v2295_v10, %v1531_v35 }
 0x511   : > { %1580 = vst [vmem:[%s3381_s14 + $0x10] sm:$0xff] %v1574_v40 }
 0x512   : > { %v1562_v29 = vmul.f32 %v1860_v7, %v1549_v28 }
 0x513   : > { %v2297_v30 = vpop.eup %2296 }
 0x514   : > { %v1575_v56 = vadd.f32 %v1861_v12, %v1562_v29  ;;  %v1550_v42 = vmul.f32 %v2297_v30, %v1532_v26 }
 0x516   : > { %1581 = vst [vmem:[%s3381_s14 + $0x18] sm:$0xff] %v1575_v56  ;;  %v1563_v5 = vmul.f32 %v1860_v7, %v1550_v42 }
 0x517   : > { %v2299_v13 = vpop.eup %2298 }
 0x518   : > { %v1576_v36 = vadd.f32 %v1861_v12, %v1563_v5  ;;  %v1551_v37 = vmul.f32 %v2299_v13, %v1533_v33 }
 0x51a   : > { %1582 = vst [vmem:[%s3381_s14 + $0x20] sm:$0xff] %v1576_v36  ;;  %v1564_v45 = vmul.f32 %v1860_v7, %v1551_v37 }
 0x51c   : > { %v1577_v63 = vadd.f32 %v1861_v12, %v1564_v45 }
 0x51e   : > { %1583 = vst [vmem:[%s3381_s14 + $0x28] sm:$0xff] %v1577_v63 }
 0x51f   : > { %2597 = shalt.err (!%p2594_p3)
}
 0x520   : > { %s2598_s26 = scalar_lea.hbm %s3396_s15, 768  ;;  %s2602_s25 = scalar_lea.hbm %s3514_s11, 1536 }
 0x521   : > { %p2599_p11 = scmp.ne.s32.totalorder %s3396_s15, %s2598_s26  ;;  %p2603_p13 = scmp.lt.u32.totalorder %s3396_s15, %s3514_s11 }
 0x522   : > { %p2604_p4 = scmp.lt.u32.totalorder %s2602_s25, %s2598_s26  ;;  %p2606_p0 = scmp.lt.u32.totalorder %s2598_s26, %s3396_s15 }
 0x523   : > { %p2600_p6 = pnand %p2599_p11, %p3515_p7 }
 0x524   : > { %p2605_p9 = por %p2604_p4, %p2603_p13 }
 0x525   : > { %p2601_p2 = pneg %p2600_p6 }
 0x526   : > { %p2607_p5 = por %p2606_p0, %p2605_p9 }
 0x528   : > { %p2608_p1 = pnand %p2607_p5, %p2601_p2 }
 0x52a   : > { %2611 = shalt.err (!%p2608_p1)
}
 0x52b   : > { %s2709_s14 = smov 128   ;;  %s2710_s13 = smov 8  }
 0x52c   : > { %2102 = dma.vmem_to_hbm [thread:$0]  (%p3515_p7), %s3398_s2, 768, %s3396_s15, %s1585_s18, %s2709_s14, %s2709_s14, %s2710_s13  }
 0x52d PF: > { %s1614_s0 = sand.u32 1, %s2670_s19   ;;  %p3516_p10 = scmp.ne.s32.totalorder %s3496_s1, 0 }
 0x52e   : > { %p3517_p12 = scmp.ge.s32.totalorder %s2690_s10, 2  ;;  %s1615_s17 = scalar_lea.sflag [#allocation7], %s1614_s0 }
 0x530   : > { %p2137_p8 = pnand %p3517_p12, %p3516_p10 }
 0x532   : > { %2665 = dma.done.wait (!%p2137_p8), %s1615_s17, 768  }
 0x533   : > { %2667 = vsyncadd (!%p2137_p8), %s1615_s17, 4294966528  ;;  %s35_s10 = sadd.s32 1, %s2690_s10   ;;  %s3518_s27 = smov %s3525_s22 }
 0x534   : > { %p32_p3 = scmp.ge.s32.totalorder %s35_s10, 4   ;;  %s3519_s19 = smov %s2674_s20 }
 0x535   : > { %s3520_s20 = smov %s2678_s21  ;;  %s3521_s21 = smov %s3030_s30 }
 0x536   : > { %s3522_s22 = smov %s2686_s23  ;;  %s3523_s23 = smov %s3518_s27 }
 0x537   :  { %34 = sbr.rel (!%p32_p3) target bundleno = 24 (0x18), region = 166 }
 0x53e   :  { %1620 = vsyncpa [#allocation6], 1 }
 0x53f   :  { %1622 = vsyncpa [#allocation6 + $0x1], 1 }
 0x540   :  { %1623 = vsyncpa [#allocation9], 1 }
 0x541   :  { %1625 = vsyncpa [#allocation9 + $0x1], 1 }
 0x542   :  { %1626 = vsyncpa [#allocation12], 1 }
 0x543   :  { %1627 = vsyncpa [#allocation15], 1 }
 0x544   :  { %1628 = vsyncpa [#allocation18], 1 }
 0x545   :  { %1629 = vsyncpa [#allocation21], 1 }
 0x546   :  { %1630 = vsyncpa [#allocation7], 1 }
 0x547   :  { %1632 = vsyncpa [#allocation7 + $0x1], 1 }

</bundles_post_ra>
